<compile_context>
chip_gen: v6e
topology: v6e:2x2x1
jax: 0.10.0
libtpu: 0.0.40
codegen_flags: <defaults>
</compile_context>

<pallas_src>
import jax
import jax.numpy as jnp
import numpy as np
from jax.experimental import pallas as pl
from jax.experimental.pallas import tpu as pltpu

KH = KW = 3
EPS = 1e-5
LANE = 128
SUBLANE = 8


def _round_up(x, m):
    return (x + m - 1) // m * m


def _pick_row_tile(h, target):
    """Largest divisor of h that is <= target (exact grid, no masking needed)."""
    for t in range(min(target, h), 0, -1):
        if h % t == 0:
            return t
    return 1


def _vmem_limit_bytes():
    """Per-generation VMEM budget: 3/4 of physical (48 MiB on v7x, 96 MiB v5e/v6e)."""
    try:
        cap = int(pltpu.get_tpu_info().vmem_capacity_bytes)
    except Exception:
        cap = 64 * 1024 * 1024
    return (cap * 3) // 4


def _make_phase1_kernel(TH, Wp, W, Cin_p, Cout_p):
    THp = TH + 2                 # halo of 1 row above + 1 below
    R = THp * Wp                 # merged rows of one haloed input slab
    Rbuf = R + SUBLANE           # extra zero rows so the largest tap offset is in-bounds
    M = TH * Wp                  # merged rows of one output tile (W padding kept)

    def kernel(x_hbm, w_ref, conv_ref, stats_ref, xbuf, sem, acc_ref):
        n = pl.program_id(0)
        i = pl.program_id(1)
        num_i = pl.num_programs(1)
        slot = i % 2

        def slab_copy(tile_idx, s):
            start = pl.multiple_of(tile_idx * (TH * Wp), TH * Wp)
            return pltpu.make_async_copy(
                x_hbm.at[n, pl.ds(start, Rbuf)], xbuf.at[s], sem.at[s])

        # First tile of this image: prime the pipeline (no previous prefetch exists).
        @pl.when(i == 0)
        def _():
            slab_copy(0, 0).start()

        # Wait for the slab this step consumes.
        slab_copy(i, slot).wait()

        # Prefetch the next row tile of the same image into the other slot; the DMA
        # overlaps with the matmuls below.
        @pl.when(i + 1 < num_i)
        def _():
            slab_copy(i + 1, 1 - slot).start()

        # 3x3 conv as 9 accumulated bf16 MXU matmuls with fp32 accumulation into a
        # VMEM scratch ref.  In the merged (rows*width, Cin) view the (kh, kw) tap is
        # the static row offset kh*Wp + kw; overreads past R land in the extra zero
        # rows and only ever feed the W-padding output columns (masked/cropped).
        # TODO(synk): the kw = 1, 2 taps are sublane-misaligned; a once-per-slab
        #             shifted copy (pltpu.roll on the XLU) would remove the per-tap
        #             relayout on real hardware.
        first = True
        for kh in range(KH):
            for kw in range(KW):
                off = kh * Wp + kw
                tap = jnp.dot(xbuf[slot, off:off + M, :], w_ref[kh * KW + kw],
                              preferred_element_type=jnp.float32)
                if first:
                    acc_ref[...] = tap
                    first = False
                else:
                    acc_ref[...] += tap

        acc = acc_ref[...]                                     # (M, Cout_p) fp32

        # Store the pre-BN conv tile in bf16 (halves the HBM traffic of the
        # intermediate); the W padding columns are kept so the store is unmasked and
        # lane-dense.
        conv_ref[...] = acc.astype(conv_ref.dtype)

        # Partial BN statistics (per-channel sum and sum of squares) from the fp32
        # accumulator, masking out the W padding columns (they contain wrap-around
        # tap contributions and must not contaminate the statistics).
        col = jax.lax.broadcasted_iota(jnp.int32, (M, 1), 0) % Wp
        masked = jnp.where(col < W, acc, 0.0)
        s1 = jnp.sum(masked, axis=0).reshape(1, Cout_p)
        s2 = jnp.sum(masked * masked, axis=0).reshape(1, Cout_p)

        @pl.when(i == 0)
        def _():
            stats_ref[...] = jnp.zeros_like(stats_ref)

        stats_ref[...] += jnp.concatenate([s1, s2], axis=0)

    return kernel


def _bn_apply_kernel(conv_ref, scale_ref, shift_ref, out_ref):
    # y = conv * scale + shift  ==  (conv - mean) * rsqrt(var+eps) * gamma + beta
    out_ref[...] = (conv_ref[...].astype(jnp.float32) * scale_ref[...]
                    + shift_ref[...]).astype(out_ref.dtype)


def conv_bn2d(x_nchw, weight_oihw, gamma, beta, *, row_tile=8):
    """Forward pass of ConvBn2d. x_nchw: (N, Cin, H, W); weight: (Cout, Cin, 3, 3).

    row_tile=8 fits the toy H=16.  For production shapes pick TH so that
    2x slab + 2x conv-out block + weights + fp32 accumulator fit the per-generation
    VMEM budget (~48 MiB v7x / ~96 MiB v5e/v6e), targeting >= 512 merged rows per
    grid step so the 256-wide MXU and the HBM pipeline stay busy.
    """
    N, Cin, H, W = x_nchw.shape
    Cout = weight_oihw.shape[0]

    Cin_p = _round_up(Cin, LANE)          # lane-dense channels
    Cout_p = _round_up(Cout, LANE)
    Wp = _round_up(W + 2, SUBLANE)        # padded width: >= W+2 and sublane aligned
    TH = _pick_row_tile(H, row_tile)
    T = H // TH
    THp = TH + 2
    R = THp * Wp
    M = TH * Wp
    HWp = H * Wp
    vmem_limit = _vmem_limit_bytes()

    # --- glue: NCHW -> NHWC bf16, zero pad (1 halo row top/bottom, 1 left column +
    # right columns up to Wp, lane-dense channels), flatten the (row, col) axes into
    # merged rows, and append SUBLANE zero rows so every slab DMA reads R + SUBLANE
    # rows without going out of bounds.
    # TODO(synk): a full-network port would keep activations NHWC/bf16 end to end so
    #             these transpose/pad passes disappear.
    x_nhwc = jnp.transpose(x_nchw, (0, 2, 3, 1)).astype(jnp.bfloat16)
    x_pad = jnp.pad(x_nhwc, ((0, 0), (1, 1), (1, Wp - W - 1), (0, Cin_p - Cin)))
    x_flat = jnp.pad(x_pad.reshape(N, (H + 2) * Wp, Cin_p),
                     ((0, 0), (0, SUBLANE), (0, 0)))

    w = jnp.transpose(weight_oihw, (2, 3, 1, 0)).reshape(KH * KW, Cin, Cout)
    w = jnp.pad(w, ((0, 0), (0, Cin_p - Cin), (0, Cout_p - Cout))).astype(jnp.bfloat16)

    # --- phase 1: conv (bf16 MXU, fp32 accum) + partial BN statistics.
    phase1 = _make_phase1_kernel(TH, Wp, W, Cin_p, Cout_p)
    conv_bf16, stats = pl.pallas_call(
        phase1,
        out_shape=(
            jax.ShapeDtypeStruct((N, HWp, Cout_p), jnp.bfloat16),
            jax.ShapeDtypeStruct((N, 2, Cout_p), jnp.float32),
        ),
        grid_spec=pltpu.PrefetchScalarGridSpec(
            num_scalar_prefetch=0,
            grid=(N, T),
            in_specs=[
                pl.BlockSpec(memory_space=pl.ANY),                 # activations stay in HBM
                pl.BlockSpec((KH * KW, Cin_p, Cout_p),
                             lambda n, i: (0, 0, 0)),              # weights resident in VMEM
            ],
            out_specs=[
                pl.BlockSpec((None, M, Cout_p), lambda n, i: (n, i, 0)),
                pl.BlockSpec((None, 2, Cout_p), lambda n, i: (n, 0, 0)),
            ],
            scratch_shapes=[
                pltpu.VMEM((2, R + SUBLANE, Cin_p), jnp.bfloat16),  # double-buffered slab
                pltpu.SemaphoreType.DMA((2,)),
                pltpu.VMEM((M, Cout_p), jnp.float32),               # fp32 accumulator
            ],
        ),
        compiler_params=pltpu.CompilerParams(
            dimension_semantics=("parallel", "arbitrary"),
            vmem_limit_bytes=vmem_limit,
        ),
    )(x_flat, w)

    # --- finalize BN statistics (tiny per-channel vectors; biased variance, fp32).
    m = float(N * H * W)
    s1 = jnp.sum(stats[:, 0, :], axis=0)
    s2 = jnp.sum(stats[:, 1, :], axis=0)
    mean = s1 / m
    var = jnp.maximum(s2 / m - mean * mean, 0.0)
    gamma_p = jnp.pad(gamma.astype(jnp.float32), (0, Cout_p - Cout),
                      constant_values=1.0)
    beta_p = jnp.pad(beta.astype(jnp.float32), (0, Cout_p - Cout))
    inv = jax.lax.rsqrt(var + EPS)
    scale = (gamma_p * inv).reshape(1, Cout_p)
    shift = (beta_p - mean * gamma_p * inv).reshape(1, Cout_p)

    # --- phase 2: cheap elementwise normalization, one whole image per grid step.
    # TODO(synk): in a full-network port this pass would be fused into the next
    #             layer's phase-1 load (removing a read+write of the activation).
    out_flat = pl.pallas_call(
        _bn_apply_kernel,
        out_shape=jax.ShapeDtypeStruct((N, HWp, Cout_p), x_nchw.dtype),
        grid_spec=pltpu.PrefetchScalarGridSpec(
            num_scalar_prefetch=0,
            grid=(N,),
            in_specs=[
                pl.BlockSpec((None, HWp, Cout_p), lambda n: (n, 0, 0)),
                pl.BlockSpec((1, Cout_p), lambda n: (0, 0)),
                pl.BlockSpec((1, Cout_p), lambda n: (0, 0)),
            ],
            out_specs=pl.BlockSpec((None, HWp, Cout_p), lambda n: (n, 0, 0)),
        ),
        compiler_params=pltpu.CompilerParams(
            dimension_semantics=("parallel",),
            vmem_limit_bytes=vmem_limit,
        ),
    )(conv_bf16, scale, shift)

    # Crop the W / channel padding once, at the very end, and go back to NCHW.
    out = out_flat.reshape(N, H, Wp, Cout_p)[:, :, :W, :Cout]
    return jnp.transpose(out, (0, 3, 1, 2))


def reference(x_nchw, weight_oihw, gamma, beta):
    """Pure-JAX reference: conv2d (pad=1) + training-mode BatchNorm2d."""
    y = jax.lax.conv_general_dilated(
        x_nchw, weight_oihw, window_strides=(1, 1), padding=((1, 1), (1, 1)),
        dimension_numbers=("NCHW", "OIHW", "NCHW"),
        precision=jax.lax.Precision.HIGHEST)
    mean = jnp.mean(y, axis=(0, 2, 3), keepdims=True)
    var = jnp.mean(jnp.square(y - mean), axis=(0, 2, 3), keepdims=True)
    y = (y - mean) * jax.lax.rsqrt(var + EPS)
    return y * gamma.reshape(1, -1, 1, 1) + beta.reshape(1, -1, 1, 1)


if __name__ == "__main__":
    N, Cin, Cout, H, W = 2, 4, 8, 16, 16

    key = jax.random.PRNGKey(0)
    k_x, k_w = jax.random.split(key)
    x = jax.random.normal(k_x, (N, Cin, H, W), jnp.float32)

    # Deterministic conv weight init (Kaiming-uniform-style bound, like nn.Conv2d).
    fan_in = Cin * KH * KW
    bound = 1.0 / float(np.sqrt(fan_in))
    weight = jax.random.uniform(k_w, (Cout, Cin, KH, KW), jnp.float32, -bound, bound)
    # BatchNorm2d default init: gamma = 1, beta = 0.
    gamma = jnp.ones((Cout,), jnp.float32)
    beta = jnp.zeros((Cout,), jnp.float32)

    out = jax.block_until_ready(jax.jit(conv_bn2d)(x, weight, gamma, beta))
    ref = jax.block_until_ready(reference(x, weight, gamma, beta))

    assert out.shape == (N, Cout, H, W) and out.dtype == jnp.float32
    # bf16 MXU inputs + bf16 intermediate vs the fp32 Precision.HIGHEST reference:
    # agreement is ~1e-2 relative, within the tolerance below.
    np.testing.assert_allclose(np.asarray(out), np.asarray(ref), rtol=2e-2, atol=3e-2)
    print("KERNEL_OK")
</pallas_src>

<mosaic_0001>
module attributes {stable_mosaic.version = 11 : i64} {
  func.func @kernel(%arg0: i32, %arg1: i32, %arg2: memref<2x440x128xbf16, #tpu.memory_space<any>>, %arg3: memref<9x128x128xbf16, #tpu.memory_space<vmem>>, %arg4: memref<1x192x128xbf16, #tpu.memory_space<vmem>>, %arg5: memref<1x2x128xf32, #tpu.memory_space<vmem>>, %arg6: memref<2x248x128xbf16, #tpu.memory_space<vmem>>, %arg7: memref<2x!tpu.dma_semaphore, #tpu.memory_space<semaphore_mem>>, %arg8: memref<192x128xf32, #tpu.memory_space<vmem>>) attributes {dimension_semantics = [#tpu.dimension_semantics<parallel>, #tpu.dimension_semantics<arbitrary>], iteration_bounds = array<i64: 2, 2>, scalar_prefetch = 0 : i64, scratch_operands = 3 : i64, tpu.core_type = #tpu.core_type<tc>, window_params = [{}, {pipeline_mode = #tpu.pipeline_mode<synchronous>, transform_indices = @transform_1, window_bounds = array<i64: 9, 128, 128>}, {transform_indices = @transform_2, window_bounds = array<i64: 1, 192, 128>}, {transform_indices = @transform_3, window_bounds = array<i64: 1, 2, 128>}]} {
    %c2_i32 = arith.constant 2 : i32
    %c0_i32 = arith.constant 0 : i32
    %0 = arith.cmpi eq, %c2_i32, %c0_i32 : i32
    %c1_i32 = arith.constant 1 : i32
    %1 = arith.select %0, %c1_i32, %c2_i32 : i32
    %2 = arith.remsi %arg1, %1 : i32
    %c0_i32_0 = arith.constant 0 : i32
    %3 = arith.cmpi ne, %2, %c0_i32_0 : i32
    %c0_i32_1 = arith.constant 0 : i32
    %4 = arith.cmpi slt, %2, %c0_i32_1 : i32
    %c0_i32_2 = arith.constant 0 : i32
    %5 = arith.cmpi slt, %1, %c0_i32_2 : i32
    %6 = arith.xori %4, %5 : i1
    %7 = arith.andi %6, %3 : i1
    %8 = arith.addi %2, %1 : i32
    %9 = arith.select %7, %8, %2 : i32
    %c0_i32_3 = arith.constant 0 : i32
    %10 = arith.cmpi eq, %arg1, %c0_i32_3 : i32
    %11 = arith.extui %10 : i1 to i32
    %c0_i32_4 = arith.constant 0 : i32
    %12 = arith.cmpi ne, %11, %c0_i32_4 : i32
    scf.if %12 {
      %c0_i32_104 = arith.constant 0 : i32
      %147 = tpu.assume_multiple %c0_i32_104, 192 : i32
      %c0_i32_105 = arith.constant 0 : i32
      %c0_i32_106 = arith.constant 0 : i32
      %c0_i32_107 = arith.constant 0 : i32
      %148 = tpu.memref_slice %arg2[%arg0, %147, %c0_i32_107] : memref<2x440x128xbf16, #tpu.memory_space<any>> -> memref<1x248x128xbf16, #tpu.memory_space<any>>
      %149 = tpu.memref_squeeze %148 : memref<1x248x128xbf16, #tpu.memory_space<any>> -> memref<248x128xbf16, #tpu.memory_space<any>>
      %c0_i32_108 = arith.constant 0 : i32
      %c0_i32_109 = arith.constant 0 : i32
      %150 = tpu.memref_slice %arg6[%c0_i32_105, %c0_i32_108, %c0_i32_109] : memref<2x248x128xbf16, #tpu.memory_space<vmem>> -> memref<1x248x128xbf16, #tpu.memory_space<vmem>>
      %151 = tpu.memref_squeeze %150 : memref<1x248x128xbf16, #tpu.memory_space<vmem>> -> memref<248x128xbf16, #tpu.memory_space<vmem>>
      %152 = tpu.memref_slice %arg7[%c0_i32_106] : memref<2x!tpu.dma_semaphore, #tpu.memory_space<semaphore_mem>> -> memref<1x!tpu.dma_semaphore, #tpu.memory_space<semaphore_mem>>
      %153 = tpu.memref_squeeze %152 : memref<1x!tpu.dma_semaphore, #tpu.memory_space<semaphore_mem>> -> memref<!tpu.dma_semaphore, #tpu.memory_space<semaphore_mem>>
      tpu.enqueue_dma source(%149 : memref<248x128xbf16, #tpu.memory_space<any>>) target(%151 : memref<248x128xbf16, #tpu.memory_space<vmem>>) target_semaphore(%153 : memref<!tpu.dma_semaphore, #tpu.memory_space<semaphore_mem>>)
    } else {
    }
    %c192_i32 = arith.constant 192 : i32
    %13 = arith.muli %arg1, %c192_i32 : i32
    %14 = tpu.assume_multiple %13, 192 : i32
    %c0_i32_5 = arith.constant 0 : i32
    %15 = tpu.memref_slice %arg2[%arg0, %14, %c0_i32_5] : memref<2x440x128xbf16, #tpu.memory_space<any>> -> memref<1x248x128xbf16, #tpu.memory_space<any>>
    %16 = tpu.memref_squeeze %15 : memref<1x248x128xbf16, #tpu.memory_space<any>> -> memref<248x128xbf16, #tpu.memory_space<any>>
    %c0_i32_6 = arith.constant 0 : i32
    %c0_i32_7 = arith.constant 0 : i32
    %17 = tpu.memref_slice %arg6[%9, %c0_i32_6, %c0_i32_7] : memref<2x248x128xbf16, #tpu.memory_space<vmem>> -> memref<1x248x128xbf16, #tpu.memory_space<vmem>>
    %18 = tpu.memref_squeeze %17 : memref<1x248x128xbf16, #tpu.memory_space<vmem>> -> memref<248x128xbf16, #tpu.memory_space<vmem>>
    %19 = tpu.memref_slice %arg7[%9] : memref<2x!tpu.dma_semaphore, #tpu.memory_space<semaphore_mem>> -> memref<1x!tpu.dma_semaphore, #tpu.memory_space<semaphore_mem>>
    %20 = tpu.memref_squeeze %19 : memref<1x!tpu.dma_semaphore, #tpu.memory_space<semaphore_mem>> -> memref<!tpu.dma_semaphore, #tpu.memory_space<semaphore_mem>>
    tpu.wait_dma2 semaphore(%20 : memref<!tpu.dma_semaphore, #tpu.memory_space<semaphore_mem>>) src(%16 : memref<248x128xbf16, #tpu.memory_space<any>>) dst(%18 : memref<248x128xbf16, #tpu.memory_space<vmem>>)
    %c1_i32_8 = arith.constant 1 : i32
    %21 = arith.addi %arg1, %c1_i32_8 : i32
    %c2_i32_9 = arith.constant 2 : i32
    %22 = arith.cmpi slt, %21, %c2_i32_9 : i32
    %23 = arith.extui %22 : i1 to i32
    %c0_i32_10 = arith.constant 0 : i32
    %24 = arith.cmpi ne, %23, %c0_i32_10 : i32
    scf.if %24 {
      %c1_i32_104 = arith.constant 1 : i32
      %147 = arith.addi %arg1, %c1_i32_104 : i32
      %c1_i32_105 = arith.constant 1 : i32
      %148 = arith.subi %c1_i32_105, %9 : i32
      %c192_i32_106 = arith.constant 192 : i32
      %149 = arith.muli %147, %c192_i32_106 : i32
      %150 = tpu.assume_multiple %149, 192 : i32
      %c0_i32_107 = arith.constant 0 : i32
      %151 = tpu.memref_slice %arg2[%arg0, %150, %c0_i32_107] : memref<2x440x128xbf16, #tpu.memory_space<any>> -> memref<1x248x128xbf16, #tpu.memory_space<any>>
      %152 = tpu.memref_squeeze %151 : memref<1x248x128xbf16, #tpu.memory_space<any>> -> memref<248x128xbf16, #tpu.memory_space<any>>
      %c0_i32_108 = arith.constant 0 : i32
      %c0_i32_109 = arith.constant 0 : i32
      %153 = tpu.memref_slice %arg6[%148, %c0_i32_108, %c0_i32_109] : memref<2x248x128xbf16, #tpu.memory_space<vmem>> -> memref<1x248x128xbf16, #tpu.memory_space<vmem>>
      %154 = tpu.memref_squeeze %153 : memref<1x248x128xbf16, #tpu.memory_space<vmem>> -> memref<248x128xbf16, #tpu.memory_space<vmem>>
      %155 = tpu.memref_slice %arg7[%148] : memref<2x!tpu.dma_semaphore, #tpu.memory_space<semaphore_mem>> -> memref<1x!tpu.dma_semaphore, #tpu.memory_space<semaphore_mem>>
      %156 = tpu.memref_squeeze %155 : memref<1x!tpu.dma_semaphore, #tpu.memory_space<semaphore_mem>> -> memref<!tpu.dma_semaphore, #tpu.memory_space<semaphore_mem>>
      tpu.enqueue_dma source(%152 : memref<248x128xbf16, #tpu.memory_space<any>>) target(%154 : memref<248x128xbf16, #tpu.memory_space<vmem>>) target_semaphore(%156 : memref<!tpu.dma_semaphore, #tpu.memory_space<semaphore_mem>>)
    } else {
    }
    %25 = arith.index_cast %9 : i32 to index
    %c0 = arith.constant 0 : index
    %c0_11 = arith.constant 0 : index
    %26 = vector.load %arg6[%25, %c0, %c0_11] : memref<2x248x128xbf16, #tpu.memory_space<vmem>>, vector<1x192x128xbf16>
    %27 = vector.shape_cast %26 : vector<1x192x128xbf16> to vector<192x128xbf16>
    %c0_12 = arith.constant 0 : index
    %c0_13 = arith.constant 0 : index
    %c0_14 = arith.constant 0 : index
    %28 = vector.load %arg3[%c0_12, %c0_13, %c0_14] : memref<9x128x128xbf16, #tpu.memory_space<vmem>>, vector<1x128x128xbf16>
    %29 = vector.shape_cast %28 : vector<1x128x128xbf16> to vector<128x128xbf16>
    %cst = arith.constant dense<0.000000e+00> : vector<192x128xf32>
    %30 = tpu.matmul %27, %29, %cst {dimension_numbers = #tpu.dot_dimension_numbers<[1], [0], [0], [1], [0, 0, 1, 1], [], []>} : vector<192x128xbf16>, vector<128x128xbf16>, vector<192x128xf32> -> vector<192x128xf32>
    %c0_15 = arith.constant 0 : index
    %c0_16 = arith.constant 0 : index
    %31 = vector.load %arg8[%c0_15, %c0_16] : memref<192x128xf32, #tpu.memory_space<vmem>>, vector<192x128xf32>
    tpu.vector_store %arg8[%c0_15, %c0_16], %30 {strides = array<i32>} : memref<192x128xf32, #tpu.memory_space<vmem>>, vector<192x128xf32>,
    %32 = arith.index_cast %9 : i32 to index
    %c1 = arith.constant 1 : index
    %c0_17 = arith.constant 0 : index
    %33 = vector.load %arg6[%32, %c1, %c0_17] : memref<2x248x128xbf16, #tpu.memory_space<vmem>>, vector<1x192x128xbf16>
    %34 = vector.shape_cast %33 : vector<1x192x128xbf16> to vector<192x128xbf16>
    %c1_18 = arith.constant 1 : index
    %c0_19 = arith.constant 0 : index
    %c0_20 = arith.constant 0 : index
    %35 = vector.load %arg3[%c1_18, %c0_19, %c0_20] : memref<9x128x128xbf16, #tpu.memory_space<vmem>>, vector<1x128x128xbf16>
    %36 = vector.shape_cast %35 : vector<1x128x128xbf16> to vector<128x128xbf16>
    %cst_21 = arith.constant dense<0.000000e+00> : vector<192x128xf32>
    %37 = tpu.matmul %34, %36, %cst_21 {dimension_numbers = #tpu.dot_dimension_numbers<[1], [0], [0], [1], [0, 0, 1, 1], [], []>} : vector<192x128xbf16>, vector<128x128xbf16>, vector<192x128xf32> -> vector<192x128xf32>
    %c0_22 = arith.constant 0 : index
    %c0_23 = arith.constant 0 : index
    %38 = vector.load %arg8[%c0_22, %c0_23] : memref<192x128xf32, #tpu.memory_space<vmem>>, vector<192x128xf32>
    %39 = arith.addf %38, %37 : vector<192x128xf32>
    %c0_24 = arith.constant 0 : index
    %c0_25 = arith.constant 0 : index
    %40 = vector.load %arg8[%c0_24, %c0_25] : memref<192x128xf32, #tpu.memory_space<vmem>>, vector<192x128xf32>
    tpu.vector_store %arg8[%c0_24, %c0_25], %39 {strides = array<i32>} : memref<192x128xf32, #tpu.memory_space<vmem>>, vector<192x128xf32>,
    %41 = arith.index_cast %9 : i32 to index
    %c2 = arith.constant 2 : index
    %c0_26 = arith.constant 0 : index
    %42 = vector.load %arg6[%41, %c2, %c0_26] : memref<2x248x128xbf16, #tpu.memory_space<vmem>>, vector<1x192x128xbf16>
    %43 = vector.shape_cast %42 : vector<1x192x128xbf16> to vector<192x128xbf16>
    %c2_27 = arith.constant 2 : index
    %c0_28 = arith.constant 0 : index
    %c0_29 = arith.constant 0 : index
    %44 = vector.load %arg3[%c2_27, %c0_28, %c0_29] : memref<9x128x128xbf16, #tpu.memory_space<vmem>>, vector<1x128x128xbf16>
    %45 = vector.shape_cast %44 : vector<1x128x128xbf16> to vector<128x128xbf16>
    %cst_30 = arith.constant dense<0.000000e+00> : vector<192x128xf32>
    %46 = tpu.matmul %43, %45, %cst_30 {dimension_numbers = #tpu.dot_dimension_numbers<[1], [0], [0], [1], [0, 0, 1, 1], [], []>} : vector<192x128xbf16>, vector<128x128xbf16>, vector<192x128xf32> -> vector<192x128xf32>
    %c0_31 = arith.constant 0 : index
    %c0_32 = arith.constant 0 : index
    %47 = vector.load %arg8[%c0_31, %c0_32] : memref<192x128xf32, #tpu.memory_space<vmem>>, vector<192x128xf32>
    %48 = arith.addf %47, %46 : vector<192x128xf32>
    %c0_33 = arith.constant 0 : index
    %c0_34 = arith.constant 0 : index
    %49 = vector.load %arg8[%c0_33, %c0_34] : memref<192x128xf32, #tpu.memory_space<vmem>>, vector<192x128xf32>
    tpu.vector_store %arg8[%c0_33, %c0_34], %48 {strides = array<i32>} : memref<192x128xf32, #tpu.memory_space<vmem>>, vector<192x128xf32>,
    %50 = arith.index_cast %9 : i32 to index
    %c24 = arith.constant 24 : index
    %c0_35 = arith.constant 0 : index
    %51 = vector.load %arg6[%50, %c24, %c0_35] : memref<2x248x128xbf16, #tpu.memory_space<vmem>>, vector<1x192x128xbf16>
    %52 = vector.shape_cast %51 : vector<1x192x128xbf16> to vector<192x128xbf16>
    %c3 = arith.constant 3 : index
    %c0_36 = arith.constant 0 : index
    %c0_37 = arith.constant 0 : index
    %53 = vector.load %arg3[%c3, %c0_36, %c0_37] : memref<9x128x128xbf16, #tpu.memory_space<vmem>>, vector<1x128x128xbf16>
    %54 = vector.shape_cast %53 : vector<1x128x128xbf16> to vector<128x128xbf16>
    %cst_38 = arith.constant dense<0.000000e+00> : vector<192x128xf32>
    %55 = tpu.matmul %52, %54, %cst_38 {dimension_numbers = #tpu.dot_dimension_numbers<[1], [0], [0], [1], [0, 0, 1, 1], [], []>} : vector<192x128xbf16>, vector<128x128xbf16>, vector<192x128xf32> -> vector<192x128xf32>
    %c0_39 = arith.constant 0 : index
    %c0_40 = arith.constant 0 : index
    %56 = vector.load %arg8[%c0_39, %c0_40] : memref<192x128xf32, #tpu.memory_space<vmem>>, vector<192x128xf32>
    %57 = arith.addf %56, %55 : vector<192x128xf32>
    %c0_41 = arith.constant 0 : index
    %c0_42 = arith.constant 0 : index
    %58 = vector.load %arg8[%c0_41, %c0_42] : memref<192x128xf32, #tpu.memory_space<vmem>>, vector<192x128xf32>
    tpu.vector_store %arg8[%c0_41, %c0_42], %57 {strides = array<i32>} : memref<192x128xf32, #tpu.memory_space<vmem>>, vector<192x128xf32>,
    %59 = arith.index_cast %9 : i32 to index
    %c25 = arith.constant 25 : index
    %c0_43 = arith.constant 0 : index
    %60 = vector.load %arg6[%59, %c25, %c0_43] : memref<2x248x128xbf16, #tpu.memory_space<vmem>>, vector<1x192x128xbf16>
    %61 = vector.shape_cast %60 : vector<1x192x128xbf16> to vector<192x128xbf16>
    %c4 = arith.constant 4 : index
    %c0_44 = arith.constant 0 : index
    %c0_45 = arith.constant 0 : index
    %62 = vector.load %arg3[%c4, %c0_44, %c0_45] : memref<9x128x128xbf16, #tpu.memory_space<vmem>>, vector<1x128x128xbf16>
    %63 = vector.shape_cast %62 : vector<1x128x128xbf16> to vector<128x128xbf16>
    %cst_46 = arith.constant dense<0.000000e+00> : vector<192x128xf32>
    %64 = tpu.matmul %61, %63, %cst_46 {dimension_numbers = #tpu.dot_dimension_numbers<[1], [0], [0], [1], [0, 0, 1, 1], [], []>} : vector<192x128xbf16>, vector<128x128xbf16>, vector<192x128xf32> -> vector<192x128xf32>
    %c0_47 = arith.constant 0 : index
    %c0_48 = arith.constant 0 : index
    %65 = vector.load %arg8[%c0_47, %c0_48] : memref<192x128xf32, #tpu.memory_space<vmem>>, vector<192x128xf32>
    %66 = arith.addf %65, %64 : vector<192x128xf32>
    %c0_49 = arith.constant 0 : index
    %c0_50 = arith.constant 0 : index
    %67 = vector.load %arg8[%c0_49, %c0_50] : memref<192x128xf32, #tpu.memory_space<vmem>>, vector<192x128xf32>
    tpu.vector_store %arg8[%c0_49, %c0_50], %66 {strides = array<i32>} : memref<192x128xf32, #tpu.memory_space<vmem>>, vector<192x128xf32>,
    %68 = arith.index_cast %9 : i32 to index
    %c26 = arith.constant 26 : index
    %c0_51 = arith.constant 0 : index
    %69 = vector.load %arg6[%68, %c26, %c0_51] : memref<2x248x128xbf16, #tpu.memory_space<vmem>>, vector<1x192x128xbf16>
    %70 = vector.shape_cast %69 : vector<1x192x128xbf16> to vector<192x128xbf16>
    %c5 = arith.constant 5 : index
    %c0_52 = arith.constant 0 : index
    %c0_53 = arith.constant 0 : index
    %71 = vector.load %arg3[%c5, %c0_52, %c0_53] : memref<9x128x128xbf16, #tpu.memory_space<vmem>>, vector<1x128x128xbf16>
    %72 = vector.shape_cast %71 : vector<1x128x128xbf16> to vector<128x128xbf16>
    %cst_54 = arith.constant dense<0.000000e+00> : vector<192x128xf32>
    %73 = tpu.matmul %70, %72, %cst_54 {dimension_numbers = #tpu.dot_dimension_numbers<[1], [0], [0], [1], [0, 0, 1, 1], [], []>} : vector<192x128xbf16>, vector<128x128xbf16>, vector<192x128xf32> -> vector<192x128xf32>
    %c0_55 = arith.constant 0 : index
    %c0_56 = arith.constant 0 : index
    %74 = vector.load %arg8[%c0_55, %c0_56] : memref<192x128xf32, #tpu.memory_space<vmem>>, vector<192x128xf32>
    %75 = arith.addf %74, %73 : vector<192x128xf32>
    %c0_57 = arith.constant 0 : index
    %c0_58 = arith.constant 0 : index
    %76 = vector.load %arg8[%c0_57, %c0_58] : memref<192x128xf32, #tpu.memory_space<vmem>>, vector<192x128xf32>
    tpu.vector_store %arg8[%c0_57, %c0_58], %75 {strides = array<i32>} : memref<192x128xf32, #tpu.memory_space<vmem>>, vector<192x128xf32>,
    %77 = arith.index_cast %9 : i32 to index
    %c48 = arith.constant 48 : index
    %c0_59 = arith.constant 0 : index
    %78 = vector.load %arg6[%77, %c48, %c0_59] : memref<2x248x128xbf16, #tpu.memory_space<vmem>>, vector<1x192x128xbf16>
    %79 = vector.shape_cast %78 : vector<1x192x128xbf16> to vector<192x128xbf16>
    %c6 = arith.constant 6 : index
    %c0_60 = arith.constant 0 : index
    %c0_61 = arith.constant 0 : index
    %80 = vector.load %arg3[%c6, %c0_60, %c0_61] : memref<9x128x128xbf16, #tpu.memory_space<vmem>>, vector<1x128x128xbf16>
    %81 = vector.shape_cast %80 : vector<1x128x128xbf16> to vector<128x128xbf16>
    %cst_62 = arith.constant dense<0.000000e+00> : vector<192x128xf32>
    %82 = tpu.matmul %79, %81, %cst_62 {dimension_numbers = #tpu.dot_dimension_numbers<[1], [0], [0], [1], [0, 0, 1, 1], [], []>} : vector<192x128xbf16>, vector<128x128xbf16>, vector<192x128xf32> -> vector<192x128xf32>
    %c0_63 = arith.constant 0 : index
    %c0_64 = arith.constant 0 : index
    %83 = vector.load %arg8[%c0_63, %c0_64] : memref<192x128xf32, #tpu.memory_space<vmem>>, vector<192x128xf32>
    %84 = arith.addf %83, %82 : vector<192x128xf32>
    %c0_65 = arith.constant 0 : index
    %c0_66 = arith.constant 0 : index
    %85 = vector.load %arg8[%c0_65, %c0_66] : memref<192x128xf32, #tpu.memory_space<vmem>>, vector<192x128xf32>
    tpu.vector_store %arg8[%c0_65, %c0_66], %84 {strides = array<i32>} : memref<192x128xf32, #tpu.memory_space<vmem>>, vector<192x128xf32>,
    %86 = arith.index_cast %9 : i32 to index
    %c49 = arith.constant 49 : index
    %c0_67 = arith.constant 0 : index
    %87 = vector.load %arg6[%86, %c49, %c0_67] : memref<2x248x128xbf16, #tpu.memory_space<vmem>>, vector<1x192x128xbf16>
    %88 = vector.shape_cast %87 : vector<1x192x128xbf16> to vector<192x128xbf16>
    %c7 = arith.constant 7 : index
    %c0_68 = arith.constant 0 : index
    %c0_69 = arith.constant 0 : index
    %89 = vector.load %arg3[%c7, %c0_68, %c0_69] : memref<9x128x128xbf16, #tpu.memory_space<vmem>>, vector<1x128x128xbf16>
    %90 = vector.shape_cast %89 : vector<1x128x128xbf16> to vector<128x128xbf16>
    %cst_70 = arith.constant dense<0.000000e+00> : vector<192x128xf32>
    %91 = tpu.matmul %88, %90, %cst_70 {dimension_numbers = #tpu.dot_dimension_numbers<[1], [0], [0], [1], [0, 0, 1, 1], [], []>} : vector<192x128xbf16>, vector<128x128xbf16>, vector<192x128xf32> -> vector<192x128xf32>
    %c0_71 = arith.constant 0 : index
    %c0_72 = arith.constant 0 : index
    %92 = vector.load %arg8[%c0_71, %c0_72] : memref<192x128xf32, #tpu.memory_space<vmem>>, vector<192x128xf32>
    %93 = arith.addf %92, %91 : vector<192x128xf32>
    %c0_73 = arith.constant 0 : index
    %c0_74 = arith.constant 0 : index
    %94 = vector.load %arg8[%c0_73, %c0_74] : memref<192x128xf32, #tpu.memory_space<vmem>>, vector<192x128xf32>
    tpu.vector_store %arg8[%c0_73, %c0_74], %93 {strides = array<i32>} : memref<192x128xf32, #tpu.memory_space<vmem>>, vector<192x128xf32>,
    %95 = arith.index_cast %9 : i32 to index
    %c50 = arith.constant 50 : index
    %c0_75 = arith.constant 0 : index
    %96 = vector.load %arg6[%95, %c50, %c0_75] : memref<2x248x128xbf16, #tpu.memory_space<vmem>>, vector<1x192x128xbf16>
    %97 = vector.shape_cast %96 : vector<1x192x128xbf16> to vector<192x128xbf16>
    %c8 = arith.constant 8 : index
    %c0_76 = arith.constant 0 : index
    %c0_77 = arith.constant 0 : index
    %98 = vector.load %arg3[%c8, %c0_76, %c0_77] : memref<9x128x128xbf16, #tpu.memory_space<vmem>>, vector<1x128x128xbf16>
    %99 = vector.shape_cast %98 : vector<1x128x128xbf16> to vector<128x128xbf16>
    %cst_78 = arith.constant dense<0.000000e+00> : vector<192x128xf32>
    %100 = tpu.matmul %97, %99, %cst_78 {dimension_numbers = #tpu.dot_dimension_numbers<[1], [0], [0], [1], [0, 0, 1, 1], [], []>} : vector<192x128xbf16>, vector<128x128xbf16>, vector<192x128xf32> -> vector<192x128xf32>
    %c0_79 = arith.constant 0 : index
    %c0_80 = arith.constant 0 : index
    %101 = vector.load %arg8[%c0_79, %c0_80] : memref<192x128xf32, #tpu.memory_space<vmem>>, vector<192x128xf32>
    %102 = arith.addf %101, %100 : vector<192x128xf32>
    %c0_81 = arith.constant 0 : index
    %c0_82 = arith.constant 0 : index
    %103 = vector.load %arg8[%c0_81, %c0_82] : memref<192x128xf32, #tpu.memory_space<vmem>>, vector<192x128xf32>
    tpu.vector_store %arg8[%c0_81, %c0_82], %102 {strides = array<i32>} : memref<192x128xf32, #tpu.memory_space<vmem>>, vector<192x128xf32>,
    %c0_83 = arith.constant 0 : index
    %c0_84 = arith.constant 0 : index
    %104 = vector.load %arg8[%c0_83, %c0_84] : memref<192x128xf32, #tpu.memory_space<vmem>>, vector<192x128xf32>
    %105 = arith.truncf %104 : vector<192x128xf32> to vector<192x128xbf16>
    %c0_85 = arith.constant 0 : index
    %c0_86 = arith.constant 0 : index
    %c0_87 = arith.constant 0 : index
    %106 = vector.load %arg4[%c0_85, %c0_86, %c0_87] : memref<1x192x128xbf16, #tpu.memory_space<vmem>>, vector<1x192x128xbf16>
    %107 = vector.shape_cast %106 : vector<1x192x128xbf16> to vector<192x128xbf16>
    %108 = vector.shape_cast %105 : vector<192x128xbf16> to vector<1x192x128xbf16>
    tpu.vector_store %arg4[%c0_85, %c0_86, %c0_87], %108 {strides = array<i32>} : memref<1x192x128xbf16, #tpu.memory_space<vmem>>, vector<1x192x128xbf16>,
    %109 = tpu.iota {dimensions = array<i32: 0>} : vector<192x1xi32>
    %c24_i32 = arith.constant 24 : i32
    %c0_i32_88 = arith.constant 0 : i32
    %110 = arith.cmpi eq, %c24_i32, %c0_i32_88 : i32
    %c1_i32_89 = arith.constant 1 : i32
    %111 = arith.select %110, %c1_i32_89, %c24_i32 : i32
    %112 = vector.broadcast %111 : i32 to vector<192x1xi32>
    %113 = arith.remsi %109, %112 : vector<192x1xi32>
    %c0_i32_90 = arith.constant 0 : i32
    %114 = vector.broadcast %c0_i32_90 : i32 to vector<192x1xi32>
    %115 = arith.cmpi ne, %113, %114 : vector<192x1xi32>
    %c0_i32_91 = arith.constant 0 : i32
    %116 = vector.broadcast %c0_i32_91 : i32 to vector<192x1xi32>
    %117 = arith.cmpi slt, %113, %116 : vector<192x1xi32>
    %c0_i32_92 = arith.constant 0 : i32
    %118 = arith.cmpi slt, %111, %c0_i32_92 : i32
    %119 = vector.broadcast %118 : i1 to vector<192x1xi1>
    %120 = vector.broadcast %119 : vector<192x1xi1> to vector<192x1xi1>
    %121 = arith.xori %117, %120 : vector<192x1xi1>
    %122 = arith.andi %121, %115 : vector<192x1xi1>
    %123 = vector.broadcast %111 : i32 to vector<192x1xi32>
    %124 = arith.addi %113, %123 : vector<192x1xi32>
    %125 = arith.select %122, %124, %113 : vector<192x1xi1>, vector<192x1xi32>
    %c16_i32 = arith.constant 16 : i32
    %126 = vector.broadcast %c16_i32 : i32 to vector<192x1xi32>
    %127 = arith.cmpi slt, %125, %126 : vector<192x1xi32>
    %cst_93 = arith.constant 0.000000e+00 : f32
    %128 = vector.shape_cast %127 : vector<192x1xi1> to vector<192x1xi1>
    %129 = vector.broadcast %128 : vector<192x1xi1> to vector<192x128xi1>
    %130 = vector.broadcast %cst_93 : f32 to vector<192x128xf32>
    %131 = arith.select %129, %104, %130 : vector<192x128xi1>, vector<192x128xf32>
    %cst_94 = arith.constant dense<0.000000e+00> : vector<128xf32>
    %132 = vector.multi_reduction <add>, %131, %cst_94 [0] : vector<192x128xf32> to vector<128xf32>
    %133 = vector.shape_cast %132 : vector<128xf32> to vector<1x128xf32>
    %134 = arith.mulf %131, %131 : vector<192x128xf32>
    %cst_95 = arith.constant dense<0.000000e+00> : vector<128xf32>
    %135 = vector.multi_reduction <add>, %134, %cst_95 [0] : vector<192x128xf32> to vector<128xf32>
    %136 = vector.shape_cast %135 : vector<128xf32> to vector<1x128xf32>
    %c0_i32_96 = arith.constant 0 : i32
    %137 = arith.cmpi eq, %arg1, %c0_i32_96 : i32
    %138 = arith.extui %137 : i1 to i32
    %c0_i32_97 = arith.constant 0 : i32
    %139 = arith.cmpi ne, %138, %c0_i32_97 : i32
    scf.if %139 {
      %cst_104 = arith.constant 0.000000e+00 : f32
      %147 = vector.broadcast %cst_104 : f32 to vector<2x128xf32>
      %c0_105 = arith.constant 0 : index
      %c0_106 = arith.constant 0 : index
      %c0_107 = arith.constant 0 : index
      %148 = vector.load %arg5[%c0_105, %c0_106, %c0_107] : memref<1x2x128xf32, #tpu.memory_space<vmem>>, vector<1x2x128xf32>
      %149 = vector.shape_cast %148 : vector<1x2x128xf32> to vector<2x128xf32>
      %150 = vector.shape_cast %147 : vector<2x128xf32> to vector<1x2x128xf32>
      tpu.vector_store %arg5[%c0_105, %c0_106, %c0_107], %150 {strides = array<i32>} : memref<1x2x128xf32, #tpu.memory_space<vmem>>, vector<1x2x128xf32>,
    } else {
    }
    %c0_98 = arith.constant 0 : index
    %c0_99 = arith.constant 0 : index
    %c0_100 = arith.constant 0 : index
    %140 = vector.load %arg5[%c0_98, %c0_99, %c0_100] : memref<1x2x128xf32, #tpu.memory_space<vmem>>, vector<1x2x128xf32>
    %141 = vector.shape_cast %140 : vector<1x2x128xf32> to vector<2x128xf32>
    %142 = tpu.concatenate %133, %136 in 0 : vector<1x128xf32>, vector<1x128xf32> -> vector<2x128xf32>
    %143 = arith.addf %141, %142 : vector<2x128xf32>
    %c0_101 = arith.constant 0 : index
    %c0_102 = arith.constant 0 : index
    %c0_103 = arith.constant 0 : index
    %144 = vector.load %arg5[%c0_101, %c0_102, %c0_103] : memref<1x2x128xf32, #tpu.memory_space<vmem>>, vector<1x2x128xf32>
    %145 = vector.shape_cast %144 : vector<1x2x128xf32> to vector<2x128xf32>
    %146 = vector.shape_cast %143 : vector<2x128xf32> to vector<1x2x128xf32>
    tpu.vector_store %arg5[%c0_101, %c0_102, %c0_103], %146 {strides = array<i32>} : memref<1x2x128xf32, #tpu.memory_space<vmem>>, vector<1x2x128xf32>,
    return
  }
  func.func @transform_1(%arg0: i32, %arg1: i32) -> (i32, i32, i32) {
    %c0_i32 = arith.constant 0 : i32
    %c0_i32_0 = arith.constant 0 : i32
    %c0_i32_1 = arith.constant 0 : i32
    %c0_i32_2 = arith.constant 0 : i32
    return %c0_i32, %c0_i32_0, %c0_i32_1 : i32, i32, i32
  }
  func.func @transform_2(%arg0: i32, %arg1: i32) -> (i32, i32, i32) {
    %c0_i32 = arith.constant 0 : i32
    %c0_i32_0 = arith.constant 0 : i32
    return %arg0, %arg1, %c0_i32 : i32, i32, i32
  }
  func.func @transform_3(%arg0: i32, %arg1: i32) -> (i32, i32, i32) {
    %c0_i32 = arith.constant 0 : i32
    %c0_i32_0 = arith.constant 0 : i32
    %c0_i32_1 = arith.constant 0 : i32
    return %arg0, %c0_i32, %c0_i32_0 : i32, i32, i32
  }
}

module attributes {stable_mosaic.version = 11 : i64} {
  func.func @_bn_apply_kernel(%arg0: i32, %arg1: memref<1x384x128xbf16, #tpu.memory_space<vmem>>, %arg2: memref<1x128xf32, #tpu.memory_space<vmem>>, %arg3: memref<1x128xf32, #tpu.memory_space<vmem>>, %arg4: memref<1x384x128xf32, #tpu.memory_space<vmem>>) attributes {dimension_semantics = [#tpu.dimension_semantics<parallel>], iteration_bounds = array<i64: 2>, scalar_prefetch = 0 : i64, scratch_operands = 0 : i64, tpu.core_type = #tpu.core_type<tc>, window_params = [{transform_indices = @transform_0, window_bounds = array<i64: 1, 384, 128>}, {pipeline_mode = #tpu.pipeline_mode<synchronous>, transform_indices = @transform_1, window_bounds = array<i64: 1, 128>}, {pipeline_mode = #tpu.pipeline_mode<synchronous>, transform_indices = @transform_2, window_bounds = array<i64: 1, 128>}, {transform_indices = @transform_3, window_bounds = array<i64: 1, 384, 128>}]} {
    %c0 = arith.constant 0 : index
    %c0_0 = arith.constant 0 : index
    %c0_1 = arith.constant 0 : index
    %0 = vector.load %arg1[%c0, %c0_0, %c0_1] : memref<1x384x128xbf16, #tpu.memory_space<vmem>>, vector<1x384x128xbf16>
    %1 = vector.shape_cast %0 : vector<1x384x128xbf16> to vector<384x128xbf16>
    %2 = arith.extf %1 : vector<384x128xbf16> to vector<384x128xf32>
    %c0_2 = arith.constant 0 : index
    %c0_3 = arith.constant 0 : index
    %3 = vector.load %arg2[%c0_2, %c0_3] : memref<1x128xf32, #tpu.memory_space<vmem>>, vector<1x128xf32>
    %4 = vector.broadcast %3 : vector<1x128xf32> to vector<384x128xf32>
    %5 = arith.mulf %2, %4 : vector<384x128xf32>
    %c0_4 = arith.constant 0 : index
    %c0_5 = arith.constant 0 : index
    %6 = vector.load %arg3[%c0_4, %c0_5] : memref<1x128xf32, #tpu.memory_space<vmem>>, vector<1x128xf32>
    %7 = vector.broadcast %6 : vector<1x128xf32> to vector<384x128xf32>
    %8 = arith.addf %5, %7 : vector<384x128xf32>
    %c0_6 = arith.constant 0 : index
    %c0_7 = arith.constant 0 : index
    %c0_8 = arith.constant 0 : index
    %9 = vector.load %arg4[%c0_6, %c0_7, %c0_8] : memref<1x384x128xf32, #tpu.memory_space<vmem>>, vector<1x384x128xf32>
    %10 = vector.shape_cast %9 : vector<1x384x128xf32> to vector<384x128xf32>
    %11 = vector.shape_cast %8 : vector<384x128xf32> to vector<1x384x128xf32>
    tpu.vector_store %arg4[%c0_6, %c0_7, %c0_8], %11 {strides = array<i32>} : memref<1x384x128xf32, #tpu.memory_space<vmem>>, vector<1x384x128xf32>,
    return
  }
  func.func @transform_0(%arg0: i32) -> (i32, i32, i32) {
    %c0_i32 = arith.constant 0 : i32
    %c0_i32_0 = arith.constant 0 : i32
    %c0_i32_1 = arith.constant 0 : i32
    return %arg0, %c0_i32, %c0_i32_0 : i32, i32, i32
  }
  func.func @transform_1(%arg0: i32) -> (i32, i32) {
    %c0_i32 = arith.constant 0 : i32
    %c0_i32_0 = arith.constant 0 : i32
    %c0_i32_1 = arith.constant 0 : i32
    return %c0_i32, %c0_i32_0 : i32, i32
  }
  func.func @transform_2(%arg0: i32) -> (i32, i32) {
    %c0_i32 = arith.constant 0 : i32
    %c0_i32_0 = arith.constant 0 : i32
    %c0_i32_1 = arith.constant 0 : i32
    return %c0_i32, %c0_i32_0 : i32, i32
  }
  func.func @transform_3(%arg0: i32) -> (i32, i32, i32) {
    %c0_i32 = arith.constant 0 : i32
    %c0_i32_0 = arith.constant 0 : i32
    %c0_i32_1 = arith.constant 0 : i32
    return %arg0, %c0_i32, %c0_i32_0 : i32, i32, i32
  }
}

</mosaic_0001>

<bundles_post_ra>
// kernel: conv_bn2d.3
= control target key start
LH: loop header
LB: loop body
LE: loop exit
PB: predicated region body
PF: predicated region fallthrough
CT: control target
= control target key end

     0   :  { %s648_s12 = smov 0   ;;  %s847_s0 = inlined_call_operand.vmem [shape: bf16[2,384,128], index: 0, kind: input, shape index: {}]   ;;  %s848_s1 = inlined_call_operand.vmem [shape: f32[1,128], index: 1, kind: input, shape index: {}]   ;;  %s849_s2 = inlined_call_operand.vmem [shape: f32[1,128], index: 2, kind: input, shape index: {}]   ;;  %s850_s3 = inlined_call_operand.vmem [shape: f32[2,384,128], index: 3, kind: output, shape index: {}]  }
   0x1 LB: > { %s480_s13 = sadd.s32 4294967295, %s626_s12   ;;  %p484_p0 = scmp.ge.s32.totalorder %s626_s12, 1  ;;  %s626_s12 = sphi %s648_s12, %s13_s12  }
   0x2   : > { %p137_p1 = scmp.lt.s32.totalorder %s626_s12, 3 }
   0x4   : > { %p138_p2 = pnand %p484_p0, %p137_p1 }
   0x5   : > { %p161_p3 = scmp.lt.s32.totalorder (!%p138_p2), %s480_s13, 1 }
   0x6   : > { %141 = sbr.rel (%p138_p2) target bundleno = 56 (0x38), region = 32 }
   0xb   : > { %s852_s13 = smov (!%p161_p3, %s480_s13), 1  ;;  %v664_v0 = vld [vmem:[%s848_s1] ss:$0 sm:$0xff] }
   0xc   : > { %s610_s14 = smul.u32 192, %s852_s13  ;;  %v673_v9 = vld [vmem:[%s849_s2] ss:$0 sm:$0xff] }
   0xd   : > { %s611_s20 = smul.u32 384, %s852_s13 }
   0xe   : > { %s659_s17 = scalar_lea.vmem %s847_s0, %s610_s14 }
   0xf   : > { %v492_v1 = vld [vmem:[%s659_s17] sm:$0xff]   ;;  %v587_v2 = vld [vmem:[%s659_s17 + $0x8] sm:$0xff]   ;;  %v588_v3 = vld [vmem:[%s659_s17 + $0x10] sm:$0xff]   ;;  %s682_s25 = scalar_lea.vmem %s850_s3, %s611_s20 }
  0x10   : > { %v493_v4 = vunpack.c.l.bf16 %v492_v1  ;;  %v494_v5 = vunpack.c.h.bf16 %v492_v1  ;;  %v497_v6 = vunpack.c.l.bf16 %v587_v2  ;;  %v498_v7 = vunpack.c.h.bf16 %v587_v2  ;;  %v589_v8 = vld [vmem:[%s659_s17 + $0x18] sm:$0xff]   ;;  %v590_v22 = vld [vmem:[%s659_s17 + $0x20] sm:$0xff]   ;;  %v591_v23 = vld [vmem:[%s659_s17 + $0x28] sm:$0xff]  }
  0x11   : > { %v501_v10 = vunpack.c.l.bf16 %v588_v3  ;;  %v502_v11 = vunpack.c.h.bf16 %v588_v3  ;;  %v505_v12 = vunpack.c.l.bf16 %v589_v8  ;;  %v506_v13 = vunpack.c.h.bf16 %v589_v8  ;;  %v592_v28 = vld [vmem:[%s659_s17 + $0x30] sm:$0xff]   ;;  %v593_v29 = vld [vmem:[%s659_s17 + $0x38] sm:$0xff]   ;;  %v594_v50 = vld [vmem:[%s659_s17 + $0x40] sm:$0xff]  }
  0x12   : > { %v274_v14 = vmul.f32 %v493_v4, %v664_v0  ;;  %v275_v15 = vmul.f32 %v494_v5, %v664_v0  ;;  %v276_v16 = vmul.f32 %v497_v6, %v664_v0  ;;  %v277_v17 = vmul.f32 %v498_v7, %v664_v0  ;;  %v595_v51 = vld [vmem:[%s659_s17 + $0x48] sm:$0xff]   ;;  %v596_v56 = vld [vmem:[%s659_s17 + $0x50] sm:$0xff]   ;;  %v597_v57 = vld [vmem:[%s659_s17 + $0x58] sm:$0xff]  }
  0x13   : > { %v278_v18 = vmul.f32 %v501_v10, %v664_v0  ;;  %v279_v19 = vmul.f32 %v502_v11, %v664_v0  ;;  %v280_v20 = vmul.f32 %v505_v12, %v664_v0  ;;  %v281_v21 = vmul.f32 %v506_v13, %v664_v0 }
  0x14   : > { %v329_v24 = vadd.f32 %v673_v9, %v274_v14  ;;  %v330_v25 = vadd.f32 %v673_v9, %v275_v15  ;;  %v331_v26 = vadd.f32 %v673_v9, %v276_v16  ;;  %v332_v27 = vadd.f32 %v673_v9, %v277_v17  ;;  %v598_v16 = vld [vmem:[%s659_s17 + $0x60] sm:$0xff]   ;;  %v599_v17 = vld [vmem:[%s659_s17 + $0x68] sm:$0xff]  }
  0x15   : > { %v333_v30 = vadd.f32 %v673_v9, %v278_v18  ;;  %v334_v31 = vadd.f32 %v673_v9, %v279_v19  ;;  %v335_v32 = vadd.f32 %v673_v9, %v280_v20  ;;  %v336_v33 = vadd.f32 %v673_v9, %v281_v21 }
  0x16   : > { %377 = vst [vmem:[%s682_s25] sm:$0xff] %v329_v24  ;;  %378 = vst [vmem:[%s682_s25 + $0x8] sm:$0xff] %v330_v25  ;;  %v509_v34 = vunpack.c.l.bf16 %v590_v22  ;;  %v510_v35 = vunpack.c.h.bf16 %v590_v22  ;;  %v513_v36 = vunpack.c.l.bf16 %v591_v23  ;;  %v514_v37 = vunpack.c.h.bf16 %v591_v23  ;;  %v600_v22 = vld [vmem:[%s659_s17 + $0x70] sm:$0xff]   ;;  %v601_v23 = vld [vmem:[%s659_s17 + $0x78] sm:$0xff]  }
  0x17   : > { %379 = vst [vmem:[%s682_s25 + $0x10] sm:$0xff] %v331_v26  ;;  %380 = vst [vmem:[%s682_s25 + $0x18] sm:$0xff] %v332_v27  ;;  %v517_v38 = vunpack.c.l.bf16 %v592_v28  ;;  %v518_v39 = vunpack.c.h.bf16 %v592_v28  ;;  %v521_v40 = vunpack.c.l.bf16 %v593_v29  ;;  %v522_v41 = vunpack.c.h.bf16 %v593_v29 }
  0x18   : > { %381 = vst [vmem:[%s682_s25 + $0x20] sm:$0xff] %v333_v30  ;;  %382 = vst [vmem:[%s682_s25 + $0x28] sm:$0xff] %v334_v31  ;;  %v282_v42 = vmul.f32 %v509_v34, %v664_v0  ;;  %v283_v43 = vmul.f32 %v510_v35, %v664_v0  ;;  %v284_v44 = vmul.f32 %v513_v36, %v664_v0  ;;  %v525_v62 = vunpack.c.l.bf16 %v594_v50 }
  0x19   : > { %383 = vst [vmem:[%s682_s25 + $0x30] sm:$0xff] %v335_v32  ;;  %384 = vst [vmem:[%s682_s25 + $0x38] sm:$0xff] %v336_v33  ;;  %v285_v45 = vmul.f32 %v514_v37, %v664_v0  ;;  %v286_v46 = vmul.f32 %v517_v38, %v664_v0  ;;  %v287_v47 = vmul.f32 %v518_v39, %v664_v0  ;;  %v526_v63 = vunpack.c.h.bf16 %v594_v50  ;;  %v604_v50 = vld [vmem:[%s659_s17 + $0x90] sm:$0xff]  }
  0x1a   : > { %v288_v48 = vmul.f32 %v521_v40, %v664_v0  ;;  %v289_v49 = vmul.f32 %v522_v41, %v664_v0  ;;  %v337_v52 = vadd.f32 %v673_v9, %v282_v42  ;;  %v338_v53 = vadd.f32 %v673_v9, %v283_v43 }
  0x1b   : > { %v339_v54 = vadd.f32 %v673_v9, %v284_v44  ;;  %v340_v55 = vadd.f32 %v673_v9, %v285_v45  ;;  %v341_v58 = vadd.f32 %v673_v9, %v286_v46  ;;  %v342_v59 = vadd.f32 %v673_v9, %v287_v47  ;;  %v602_v44 = vld [vmem:[%s659_s17 + $0x80] sm:$0xff]   ;;  %v603_v45 = vld [vmem:[%s659_s17 + $0x88] sm:$0xff]  }
  0x1c   : > { %v343_v60 = vadd.f32 %v673_v9, %v288_v48  ;;  %v344_v61 = vadd.f32 %v673_v9, %v289_v49  ;;  %385 = vst [vmem:[%s682_s25 + $0x40] sm:$0xff] %v337_v52  ;;  %386 = vst [vmem:[%s682_s25 + $0x48] sm:$0xff] %v338_v53  ;;  %v529_v1 = vunpack.c.l.bf16 %v595_v51  ;;  %v530_v2 = vunpack.c.h.bf16 %v595_v51  ;;  %v605_v51 = vld [vmem:[%s659_s17 + $0x98] sm:$0xff]  }
  0x1d   : > { %387 = vst [vmem:[%s682_s25 + $0x50] sm:$0xff] %v339_v54  ;;  %388 = vst [vmem:[%s682_s25 + $0x58] sm:$0xff] %v340_v55  ;;  %v533_v3 = vunpack.c.l.bf16 %v596_v56  ;;  %v534_v4 = vunpack.c.h.bf16 %v596_v56  ;;  %v537_v5 = vunpack.c.l.bf16 %v597_v57  ;;  %v538_v6 = vunpack.c.h.bf16 %v597_v57 }
  0x1e   : > { %389 = vst [vmem:[%s682_s25 + $0x60] sm:$0xff] %v341_v58  ;;  %390 = vst [vmem:[%s682_s25 + $0x68] sm:$0xff] %v342_v59  ;;  %v290_v7 = vmul.f32 %v525_v62, %v664_v0  ;;  %v291_v8 = vmul.f32 %v526_v63, %v664_v0  ;;  %v292_v10 = vmul.f32 %v529_v1, %v664_v0  ;;  %v541_v28 = vunpack.c.l.bf16 %v598_v16 }
  0x1f   : > { %391 = vst [vmem:[%s682_s25 + $0x70] sm:$0xff] %v343_v60  ;;  %392 = vst [vmem:[%s682_s25 + $0x78] sm:$0xff] %v344_v61  ;;  %v293_v11 = vmul.f32 %v530_v2, %v664_v0  ;;  %v294_v12 = vmul.f32 %v533_v3, %v664_v0  ;;  %v295_v13 = vmul.f32 %v534_v4, %v664_v0  ;;  %v542_v29 = vunpack.c.h.bf16 %v598_v16  ;;  %v608_v16 = vld [vmem:[%s659_s17 + $0xb0] sm:$0xff]  }
  0x20   : > { %v296_v14 = vmul.f32 %v537_v5, %v664_v0  ;;  %v297_v15 = vmul.f32 %v538_v6, %v664_v0  ;;  %v345_v18 = vadd.f32 %v673_v9, %v290_v7  ;;  %v346_v19 = vadd.f32 %v673_v9, %v291_v8 }
  0x21   : > { %v347_v20 = vadd.f32 %v673_v9, %v292_v10  ;;  %v348_v21 = vadd.f32 %v673_v9, %v293_v11  ;;  %v349_v24 = vadd.f32 %v673_v9, %v294_v12  ;;  %v350_v25 = vadd.f32 %v673_v9, %v295_v13  ;;  %v606_v10 = vld [vmem:[%s659_s17 + $0xa0] sm:$0xff]   ;;  %v607_v11 = vld [vmem:[%s659_s17 + $0xa8] sm:$0xff]  }
  0x22   : > { %v351_v26 = vadd.f32 %v673_v9, %v296_v14  ;;  %v352_v27 = vadd.f32 %v673_v9, %v297_v15  ;;  %393 = vst [vmem:[%s682_s25 + $0x80] sm:$0xff] %v345_v18  ;;  %394 = vst [vmem:[%s682_s25 + $0x88] sm:$0xff] %v346_v19  ;;  %v545_v30 = vunpack.c.l.bf16 %v599_v17  ;;  %v546_v31 = vunpack.c.h.bf16 %v599_v17  ;;  %v609_v17 = vld [vmem:[%s659_s17 + $0xb8] sm:$0xff]  }
  0x23   : > { %395 = vst [vmem:[%s682_s25 + $0x90] sm:$0xff] %v347_v20  ;;  %396 = vst [vmem:[%s682_s25 + $0x98] sm:$0xff] %v348_v21  ;;  %v549_v32 = vunpack.c.l.bf16 %v600_v22  ;;  %v550_v33 = vunpack.c.h.bf16 %v600_v22  ;;  %v553_v34 = vunpack.c.l.bf16 %v601_v23  ;;  %v554_v35 = vunpack.c.h.bf16 %v601_v23 }
  0x24   : > { %397 = vst [vmem:[%s682_s25 + $0xa0] sm:$0xff] %v349_v24  ;;  %398 = vst [vmem:[%s682_s25 + $0xa8] sm:$0xff] %v350_v25  ;;  %v298_v36 = vmul.f32 %v541_v28, %v664_v0  ;;  %v299_v37 = vmul.f32 %v542_v29, %v664_v0  ;;  %v300_v38 = vmul.f32 %v545_v30, %v664_v0  ;;  %v557_v56 = vunpack.c.l.bf16 %v602_v44 }
  0x25   : > { %399 = vst [vmem:[%s682_s25 + $0xb0] sm:$0xff] %v351_v26  ;;  %400 = vst [vmem:[%s682_s25 + $0xb8] sm:$0xff] %v352_v27  ;;  %v301_v39 = vmul.f32 %v546_v31, %v664_v0  ;;  %v302_v40 = vmul.f32 %v549_v32, %v664_v0  ;;  %v303_v41 = vmul.f32 %v550_v33, %v664_v0  ;;  %v558_v57 = vunpack.c.h.bf16 %v602_v44 }
  0x26   : > { %v304_v42 = vmul.f32 %v553_v34, %v664_v0  ;;  %v305_v43 = vmul.f32 %v554_v35, %v664_v0  ;;  %v353_v46 = vadd.f32 %v673_v9, %v298_v36  ;;  %v354_v47 = vadd.f32 %v673_v9, %v299_v37 }
  0x27   : > { %v355_v48 = vadd.f32 %v673_v9, %v300_v38  ;;  %v356_v49 = vadd.f32 %v673_v9, %v301_v39  ;;  %v357_v52 = vadd.f32 %v673_v9, %v302_v40  ;;  %v358_v53 = vadd.f32 %v673_v9, %v303_v41 }
  0x28   : > { %v359_v54 = vadd.f32 %v673_v9, %v304_v42  ;;  %v360_v55 = vadd.f32 %v673_v9, %v305_v43  ;;  %401 = vst [vmem:[%s682_s25 + $0xc0] sm:$0xff] %v353_v46  ;;  %402 = vst [vmem:[%s682_s25 + $0xc8] sm:$0xff] %v354_v47  ;;  %v561_v58 = vunpack.c.l.bf16 %v603_v45  ;;  %v562_v59 = vunpack.c.h.bf16 %v603_v45 }
  0x29   : > { %403 = vst [vmem:[%s682_s25 + $0xd0] sm:$0xff] %v355_v48  ;;  %404 = vst [vmem:[%s682_s25 + $0xd8] sm:$0xff] %v356_v49  ;;  %v565_v60 = vunpack.c.l.bf16 %v604_v50  ;;  %v566_v61 = vunpack.c.h.bf16 %v604_v50  ;;  %v569_v62 = vunpack.c.l.bf16 %v605_v51  ;;  %v570_v63 = vunpack.c.h.bf16 %v605_v51 }
  0x2a   : > { %405 = vst [vmem:[%s682_s25 + $0xe0] sm:$0xff] %v357_v52  ;;  %406 = vst [vmem:[%s682_s25 + $0xe8] sm:$0xff] %v358_v53  ;;  %v306_v1 = vmul.f32 %v557_v56, %v664_v0  ;;  %v307_v2 = vmul.f32 %v558_v57, %v664_v0  ;;  %v308_v3 = vmul.f32 %v561_v58, %v664_v0  ;;  %v573_v22 = vunpack.c.l.bf16 %v606_v10 }
  0x2b   : > { %407 = vst [vmem:[%s682_s25 + $0xf0] sm:$0xff] %v359_v54  ;;  %408 = vst [vmem:[%s682_s25 + $0xf8] sm:$0xff] %v360_v55  ;;  %v309_v4 = vmul.f32 %v562_v59, %v664_v0  ;;  %v310_v5 = vmul.f32 %v565_v60, %v664_v0  ;;  %v311_v6 = vmul.f32 %v566_v61, %v664_v0  ;;  %v574_v23 = vunpack.c.h.bf16 %v606_v10 }
  0x2c   : > { %v312_v7 = vmul.f32 %v569_v62, %v664_v0  ;;  %v313_v8 = vmul.f32 %v570_v63, %v664_v0  ;;  %v361_v12 = vadd.f32 %v673_v9, %v306_v1  ;;  %v362_v13 = vadd.f32 %v673_v9, %v307_v2 }
  0x2d   : > { %v363_v14 = vadd.f32 %v673_v9, %v308_v3  ;;  %v364_v15 = vadd.f32 %v673_v9, %v309_v4  ;;  %v365_v18 = vadd.f32 %v673_v9, %v310_v5  ;;  %v366_v19 = vadd.f32 %v673_v9, %v311_v6 }
  0x2e   : > { %v367_v20 = vadd.f32 %v673_v9, %v312_v7  ;;  %v368_v21 = vadd.f32 %v673_v9, %v313_v8  ;;  %409 = vst [vmem:[%s682_s25 + $0x100] sm:$0xff] %v361_v12  ;;  %410 = vst [vmem:[%s682_s25 + $0x108] sm:$0xff] %v362_v13  ;;  %v577_v24 = vunpack.c.l.bf16 %v607_v11  ;;  %v578_v25 = vunpack.c.h.bf16 %v607_v11 }
  0x2f   : > { %411 = vst [vmem:[%s682_s25 + $0x110] sm:$0xff] %v363_v14  ;;  %412 = vst [vmem:[%s682_s25 + $0x118] sm:$0xff] %v364_v15  ;;  %v581_v26 = vunpack.c.l.bf16 %v608_v16  ;;  %v582_v27 = vunpack.c.h.bf16 %v608_v16  ;;  %v585_v28 = vunpack.c.l.bf16 %v609_v17  ;;  %v586_v29 = vunpack.c.h.bf16 %v609_v17 }
  0x30   : > { %413 = vst [vmem:[%s682_s25 + $0x120] sm:$0xff] %v365_v18  ;;  %414 = vst [vmem:[%s682_s25 + $0x128] sm:$0xff] %v366_v19  ;;  %v314_v30 = vmul.f32 %v573_v22, %v664_v0  ;;  %v315_v31 = vmul.f32 %v574_v23, %v664_v0  ;;  %v316_v32 = vmul.f32 %v577_v24, %v664_v0 }
  0x31   : > { %415 = vst [vmem:[%s682_s25 + $0x130] sm:$0xff] %v367_v20  ;;  %416 = vst [vmem:[%s682_s25 + $0x138] sm:$0xff] %v368_v21  ;;  %v317_v33 = vmul.f32 %v578_v25, %v664_v0  ;;  %v318_v34 = vmul.f32 %v581_v26, %v664_v0  ;;  %v319_v35 = vmul.f32 %v582_v27, %v664_v0 }
  0x32   : > { %v320_v36 = vmul.f32 %v585_v28, %v664_v0  ;;  %v321_v37 = vmul.f32 %v586_v29, %v664_v0  ;;  %v369_v38 = vadd.f32 %v673_v9, %v314_v30  ;;  %v370_v39 = vadd.f32 %v673_v9, %v315_v31 }
  0x33   : > { %v371_v40 = vadd.f32 %v673_v9, %v316_v32  ;;  %v372_v41 = vadd.f32 %v673_v9, %v317_v33  ;;  %v373_v42 = vadd.f32 %v673_v9, %v318_v34  ;;  %v374_v43 = vadd.f32 %v673_v9, %v319_v35 }
  0x34   : > { %v375_v44 = vadd.f32 %v673_v9, %v320_v36  ;;  %v376_v45 = vadd.f32 %v673_v9, %v321_v37  ;;  %417 = vst [vmem:[%s682_s25 + $0x140] sm:$0xff] %v369_v38  ;;  %418 = vst [vmem:[%s682_s25 + $0x148] sm:$0xff] %v370_v39 }
  0x35   : > { %419 = vst [vmem:[%s682_s25 + $0x150] sm:$0xff] %v371_v40  ;;  %420 = vst [vmem:[%s682_s25 + $0x158] sm:$0xff] %v372_v41 }
  0x36   : > { %421 = vst [vmem:[%s682_s25 + $0x160] sm:$0xff] %v373_v42  ;;  %422 = vst [vmem:[%s682_s25 + $0x168] sm:$0xff] %v374_v43 }
  0x37   : > { %423 = vst [vmem:[%s682_s25 + $0x170] sm:$0xff] %v375_v44  ;;  %424 = vst [vmem:[%s682_s25 + $0x178] sm:$0xff] %v376_v45 }
  0x38 PF: > { %s13_s12 = sadd.s32 1, %s626_s12  }
  0x39   : > { %p10_p4 = scmp.ge.s32.totalorder %s13_s12, 4  }
  0x3b   :  { %12 = sbr.rel (!%p10_p4) target bundleno = 1 (0x1), region = 62 }

// kernel: conv_bn2d.2
= control target key start
LH: loop header
LB: loop body
LE: loop exit
PB: predicated region body
PF: predicated region fallthrough
CT: control target
= control target key end

     0   :  { %s6235_s12 = smov 0   ;;  %s6237_s13 = smov 0   ;;  %s8044_s0 = inlined_call_operand.vmem [shape: bf16[2,440,128], index: 0, kind: input, shape index: {}]   ;;  %s8045_s1 = inlined_call_operand.vmem [shape: bf16[9,128,128], index: 1, kind: input, shape index: {}]   ;;  %s8046_s2 = inlined_call_operand.vmem [shape: bf16[2,384,128], index: 2, kind: output, shape index: {0}]   ;;  %s8047_s3 = inlined_call_operand.vmem [shape: f32[2,2,128], index: 3, kind: output, shape index: {1}]  }
   0x1   :  { %s6239_s14 = smov 0   ;;  %s6241_s15 = smov 0  }
   0x2   :  { %s6243_s16 = smov 0  }
   0x3 LB: > { %s23_s17 = sadd.s32 1, %s6204_s14  ;;  %s26_s18 = sadd.s32 1, %s6208_s15  ;;  %s6212_s16 = sphi %s6243_s16, %s14_s16   ;;  %s6208_s15 = sphi %s6241_s15, %s8365_s15   ;;  %s6204_s14 = sphi %s6239_s14, %s8364_s14   ;;  %s6200_s13 = sphi %s6237_s13, %s8363_s13   ;;  %s6196_s12 = sphi %s6235_s12, %s8362_s12  }
   0x4   : > { %p24_p0 = scmp.ge.s32.totalorder %s23_s17, 2  ;;  %p4884_p1 = scmp.ge.s32.totalorder %s6212_s16, 1 }
   0x5   : > { %p120_p2 = scmp.lt.s32.totalorder %s6212_s16, 5 }
   0x6   : > { %s8367_s17 = smov (%p24_p0, %s23_s17), 0  ;;  %s8369_s18 = smov (!%p24_p0, %s26_s18), %s6208_s15 }
   0x7   : > { %p121_p3 = pnand %p4884_p1, %p120_p2  ;;  %p28_p4 = scmp.ge.s32.totalorder %s8369_s18, 2 }
   0x9   : > { %s8371_s18 = smov (%p28_p4, %s8369_s18), 0  ;;  %124 = sbr.rel (%p121_p3) target bundleno = 570 (0x23a), region = 24 }
   0xe   : > { %s145_s19 = smul.u32 24, %s6196_s12  ;;  %p146_p5 = scmp.lt.s32.totalorder %s6200_s13, 1 }
   0xf   : > { %p160_p6 = scmp.lt.s32.totalorder %s6196_s12, 0  ;;  %s161_s20 = ssub.s32 0, %s6196_s12 }
  0x10   : > { %s147_s21 = scalar_select %p146_p5, %s6200_s13, 1 }
  0x11   : > { %p148_p7 = scmp.lt.s32.totalorder %s145_s19, 47  ;;  %s4887_s22 = smin.u32 %s6196_s12, %s161_s20 }
  0x12   : > { %s5896_s23 = smul.u32 48, %s147_s21  ;;  %s4886_s24 = sshll.u32 %s147_s21, 1 }
  0x13   : > { %s8373_s19 = smov (!%p148_p7, %s145_s19), 47  ;;  %s6278_s27 = scalar_lea.vmem %s8047_s3, %s4886_s24 }
  0x14   : > { %s163_s28 = sand.u32 1, %s4887_s22   ;;  %s151_s29 = sadd.s32 %s5896_s23, %s8373_s19 }
  0x15   : > { %s164_s30 = ssub.s32 0, %s163_s28  ;;  %s4885_s4 = sshll.u32 %s151_s29, 2 }
  0x16   : > { %s6283_s7 = scalar_lea.vmem %s8046_s2, %s4885_s4  ;;  %s8375_s30 = smov (!%p160_p6, %s164_s30), %s163_s28 }
  0x17   : > { %p4889_p8 = scmp.lt.s32.totalorder %s8375_s30, 0  ;;  %s170_s8 = sadd.s32 2, %s8375_s30 }
  0x18   : > { %p4890_p9 = scmp.ne.s32.totalorder %s6196_s12, 0 }
  0x19   : > { %s8377_s8 = smov (!%p4889_p8, %s170_s8), %s8375_s30  ;;  %s5242_s9 = smul.u32 (!%p4890_p9), 220, %s6200_s13 }
  0x1a   : > { %175 = sbr.rel (%p4890_p9) target bundleno = 41 (0x29), region = 28 }
  0x1b   : > { %s6296_s19 = scalar_lea.vmem (!%p4890_p9), %s8044_s0, %s5242_s9 }
  0x1f   : > { %v218_v0 = vld [vmem:[%s6296_s19] sm:$0xff]  ;;  %v220_v1 = vld [vmem:[%s6296_s19 + $0x8] sm:$0xff]  ;;  %v222_v2 = vld [vmem:[%s6296_s19 + $0x10] sm:$0xff] }
  0x20   : > { %219 = vst [vmem:[#allocation2] sm:$0xff] %v218_v0  ;;  %221 = vst [vmem:[#allocation2 + $0x8] sm:$0xff] %v220_v1  ;;  %v224_v3 = vld [vmem:[%s6296_s19 + $0x18] sm:$0xff]  ;;  %v226_v4 = vld [vmem:[%s6296_s19 + $0x20] sm:$0xff] }
  0x21   : > { %223 = vst [vmem:[#allocation2 + $0x10] sm:$0xff] %v222_v2  ;;  %v228_v5 = vld [vmem:[%s6296_s19 + $0x28] sm:$0xff]  ;;  %225 = vst [vmem:[#allocation2 + $0x18] sm:$0xff] %v224_v3  ;;  %v230_v6 = vld [vmem:[%s6296_s19 + $0x30] sm:$0xff] }
  0x22   : > { %227 = vst [vmem:[#allocation2 + $0x20] sm:$0xff] %v226_v4  ;;  %229 = vst [vmem:[#allocation2 + $0x28] sm:$0xff] %v228_v5  ;;  %v232_v7 = vld [vmem:[%s6296_s19 + $0x38] sm:$0xff]  ;;  %v234_v8 = vld [vmem:[%s6296_s19 + $0x40] sm:$0xff] }
  0x23   : > { %231 = vst [vmem:[#allocation2 + $0x30] sm:$0xff] %v230_v6  ;;  %233 = vst [vmem:[#allocation2 + $0x38] sm:$0xff] %v232_v7  ;;  %v236_v9 = vld [vmem:[%s6296_s19 + $0x48] sm:$0xff]  ;;  %v238_v10 = vld [vmem:[%s6296_s19 + $0x50] sm:$0xff] }
  0x24   : > { %235 = vst [vmem:[#allocation2 + $0x40] sm:$0xff] %v234_v8  ;;  %v240_v11 = vld [vmem:[%s6296_s19 + $0x58] sm:$0xff]  ;;  %237 = vst [vmem:[#allocation2 + $0x48] sm:$0xff] %v236_v9  ;;  %v242_v12 = vld [vmem:[%s6296_s19 + $0x60] sm:$0xff] }
  0x25   : > { %239 = vst [vmem:[#allocation2 + $0x50] sm:$0xff] %v238_v10  ;;  %241 = vst [vmem:[#allocation2 + $0x58] sm:$0xff] %v240_v11  ;;  %v244_v13 = vld [vmem:[%s6296_s19 + $0x68] sm:$0xff]  ;;  %v246_v14 = vld [vmem:[%s6296_s19 + $0x70] sm:$0xff] }
  0x26   : > { %243 = vst [vmem:[#allocation2 + $0x60] sm:$0xff] %v242_v12  ;;  %245 = vst [vmem:[#allocation2 + $0x68] sm:$0xff] %v244_v13  ;;  %v4892_v15 = vld [vmem:[%s6296_s19 + $0x78] sm:$0xf] }
  0x27   : > { %247 = vst [vmem:[#allocation2 + $0x70] sm:$0xff] %v246_v14  ;;  %259 = vst [vmem:[#allocation2 + $0x78] sm:$0xf] %v4892_v15 }
  0x28   : > { %263 = vsyncadd [#allocation3], 1984 }
  0x29 PF: > { %s5243_s20 = smul.u32 124, %s8377_s8  ;;  %s268_s22 = scalar_lea.sflag [#allocation3], %s8377_s8 }
  0x2b   : > { %s6315_s21 = scalar_lea.vmem [#allocation2], %s5243_s20 }
  0x2c   : > { %6192 = dma.done.wait %s268_s22, 1984 }
  0x2d   : > { %6193 = vsyncadd %s268_s22, 4294965312  ;;  %s273_s23 = sadd.s32 1, %s6196_s12 }
  0x2e   : > { %p4894_p10 = scmp.ge.s32.totalorder %s273_s23, 2 }
  0x2f   : > { %s278_s24 = ssub.s32 (!%p4894_p10), 1, %s8377_s8  ;;  %s279_s25 = smul.u32 (!%p4894_p10), 192, %s273_s23 }
  0x30   : > { %277 = sbr.rel (%p4894_p10) target bundleno = 64 (0x40), region = 69  ;;  %s289_s10 = scalar_lea.sflag (!%p4894_p10), [#allocation3], %s278_s24 }
  0x31   : > { %s282_s26 = smul.u32 (!%p4894_p10), 55, %s6200_s13  ;;  %s280_s28 = sshra.s32 (!%p4894_p10), %s279_s25, 3 }
  0x32   : > { %s5244_s29 = smul.u32 (!%p4894_p10), 124, %s278_s24 }
  0x33   : > { %s283_s30 = sadd.s32 (!%p4894_p10), %s282_s26, %s280_s28 }
  0x34   : > { %s4895_s4 = sshll.u32 (!%p4894_p10), %s283_s30, 2  ;;  %s288_s13 = scalar_lea.vmem (!%p4894_p10), [#allocation2], %s5244_s29 }
  0x35   : > { %s6326_s9 = scalar_lea.vmem %s8044_s0, %s4895_s4 }
  0x36   : > { %v328_v16 = vld [vmem:[%s6326_s9] sm:$0xff]  ;;  %v330_v17 = vld [vmem:[%s6326_s9 + $0x8] sm:$0xff]  ;;  %v332_v18 = vld [vmem:[%s6326_s9 + $0x10] sm:$0xff] }
  0x37   : > { %329 = vst [vmem:[%s288_s13] sm:$0xff] %v328_v16  ;;  %331 = vst [vmem:[%s288_s13 + $0x8] sm:$0xff] %v330_v17  ;;  %v334_v19 = vld [vmem:[%s6326_s9 + $0x18] sm:$0xff]  ;;  %v336_v20 = vld [vmem:[%s6326_s9 + $0x20] sm:$0xff] }
  0x38   : > { %333 = vst [vmem:[%s288_s13 + $0x10] sm:$0xff] %v332_v18  ;;  %v338_v21 = vld [vmem:[%s6326_s9 + $0x28] sm:$0xff]  ;;  %335 = vst [vmem:[%s288_s13 + $0x18] sm:$0xff] %v334_v19  ;;  %v340_v22 = vld [vmem:[%s6326_s9 + $0x30] sm:$0xff] }
  0x39   : > { %337 = vst [vmem:[%s288_s13 + $0x20] sm:$0xff] %v336_v20  ;;  %339 = vst [vmem:[%s288_s13 + $0x28] sm:$0xff] %v338_v21  ;;  %v342_v23 = vld [vmem:[%s6326_s9 + $0x38] sm:$0xff]  ;;  %v344_v24 = vld [vmem:[%s6326_s9 + $0x40] sm:$0xff] }
  0x3a   : > { %341 = vst [vmem:[%s288_s13 + $0x30] sm:$0xff] %v340_v22  ;;  %343 = vst [vmem:[%s288_s13 + $0x38] sm:$0xff] %v342_v23  ;;  %v346_v25 = vld [vmem:[%s6326_s9 + $0x48] sm:$0xff]  ;;  %v348_v26 = vld [vmem:[%s6326_s9 + $0x50] sm:$0xff] }
  0x3b   : > { %345 = vst [vmem:[%s288_s13 + $0x40] sm:$0xff] %v344_v24  ;;  %v350_v27 = vld [vmem:[%s6326_s9 + $0x58] sm:$0xff]  ;;  %347 = vst [vmem:[%s288_s13 + $0x48] sm:$0xff] %v346_v25  ;;  %v352_v28 = vld [vmem:[%s6326_s9 + $0x60] sm:$0xff] }
  0x3c   : > { %349 = vst [vmem:[%s288_s13 + $0x50] sm:$0xff] %v348_v26  ;;  %351 = vst [vmem:[%s288_s13 + $0x58] sm:$0xff] %v350_v27  ;;  %v354_v29 = vld [vmem:[%s6326_s9 + $0x68] sm:$0xff]  ;;  %v356_v30 = vld [vmem:[%s6326_s9 + $0x70] sm:$0xff] }
  0x3d   : > { %353 = vst [vmem:[%s288_s13 + $0x60] sm:$0xff] %v352_v28  ;;  %355 = vst [vmem:[%s288_s13 + $0x68] sm:$0xff] %v354_v29  ;;  %v4897_v31 = vld [vmem:[%s6326_s9 + $0x78] sm:$0xf] }
  0x3e   : > { %357 = vst [vmem:[%s288_s13 + $0x70] sm:$0xff] %v356_v30  ;;  %4898 = vst [vmem:[%s288_s13 + $0x78] sm:$0xf] %v4897_v31 }
  0x3f   : > { %373 = vsyncadd %s289_s10, 1984 }
  0x40 PF: > { %v5986_v32 = vld [vmem:[%s8045_s1 + $0x38] sm:$0xff]   ;;  %v5988_v34 = vld [vmem:[%s8045_s1 + $0x30] sm:$0xff]   ;;  %v5990_v36 = vld [vmem:[%s8045_s1 + $0x28] sm:$0xff]   ;;  %vm792_vm0 = vsmask.f32 7424  ;;  %vm1259_vm1 = vcmask 1046528  }
  0x41   : > { %v5987_v33 = vld [vmem:[%s8045_s1 + $0x78] sm:$0xff]   ;;  %5520 = vmatprep.subr.bf16.mxu0 %v5986_v32  ;;  %v5989_v35 = vld [vmem:[%s8045_s1 + $0x70] sm:$0xff]   ;;  %v5991_v37 = vld [vmem:[%s8045_s1 + $0x68] sm:$0xff]  }
  0x42   : > { %5560 = vmatprep.subr.bf16.mxu1 %v5987_v33  ;;  %5521 = vmatpush3.bf16.msra.mxu0 %v5986_v32  ;;  %v5992_v38 = vld [vmem:[%s8045_s1 + $0x20] sm:$0xff]   ;;  %v5994_v40 = vld [vmem:[%s8045_s1 + $0x18] sm:$0xff]   ;;  %v5996_v42 = vld [vmem:[%s8045_s1 + $0x10] sm:$0xff]  }
  0x43   : > { %5561 = vmatpush3.bf16.msra.mxu1 %v5987_v33  ;;  %5522 = vmatprep.subr.bf16.mxu0 %v5988_v34  ;;  %v5993_v39 = vld [vmem:[%s8045_s1 + $0x60] sm:$0xff]   ;;  %v5995_v41 = vld [vmem:[%s8045_s1 + $0x58] sm:$0xff]   ;;  %v5997_v43 = vld [vmem:[%s8045_s1 + $0x50] sm:$0xff]  }
  0x44   : > { %5562 = vmatprep.subr.bf16.mxu1 %v5989_v35  ;;  %v5998_v45 = vld [vmem:[%s8045_s1 + $0x8] sm:$0xff]   ;;  %v6000_v53 = vld [vmem:[%s8045_s1] sm:$0xff]   ;;  %v6007_v0 = vld [vmem:[%s8045_s1 + $0xb8] sm:$0xff]  }
  0x45   : > { %v6002_v44 = vld [vmem:[%s6315_s21] sm:$0xff]   ;;  %v6004_v47 = vld [vmem:[%s6315_s21 + $0x8] sm:$0xff]   ;;  %v6006_v52 = vld [vmem:[%s6315_s21 + $0x10] sm:$0xff]  }
  0x46   : > { %5523 = vmatpush3.bf16.msra.mxu0 %v5988_v34  ;;  %5536 = vmatprep.mubr.bf16.mxu0 %v6002_v44  ;;  %v6003_v46 = vld [vmem:[%s6315_s21] sm:$0xff]   ;;  %v5999_v48 = vld [vmem:[%s8045_s1 + $0x48] sm:$0xff]   ;;  %v801_v51 = vshll.u32 %v6004_v47, 16  ;;  %v809_v56 = vshll.u32 %v6006_v52, 16  ;;  %v805_v59 = vshrl.u32 %v6004_v47, 16  ;;  %v6010_v60 = vld [vmem:[%s6315_s21 + $0x18] sm:$0xff]  }
  0x47   : > { %5563 = vmatpush3.bf16.msra.mxu1 %v5989_v35  ;;  %5524 = vmatprep.subr.bf16.mxu0 %v5990_v36  ;;  %v794_v49 = vshrl.u32 %v6003_v46, 16  ;;  %v796_v50 = vshll.u32 %v6003_v46, 16  ;;  %v6001_v57 = vld [vmem:[%s8045_s1 + $0x40] sm:$0xff]   ;;  %v813_v62 = vshrl.u32 %v6006_v52, 16  ;;  %v817_v1 = vshll.u32 %v6010_v60, 16  ;;  %v6008_v6 = vld [vmem:[%s8045_s1 + $0xb0] sm:$0xff]  }
  0x48   : > { %5564 = vmatprep.subr.bf16.mxu1 %v5991_v37  ;;  %v803_v55 = vrot.slane %v801_v51, 1  ;;  %v811_v63 = vrot.slane %v809_v56, 1  ;;  %v6012_v2 = vld [vmem:[%s6315_s21 + $0x20] sm:$0xff]   ;;  %v6005_v4 = vld [vmem:[%s6315_s21 + $0x8] sm:$0xff]   ;;  %v6009_v9 = vld [vmem:[%s6315_s21 + $0x10] sm:$0xff]   ;;  %v821_v12 = vshrl.u32 %v6010_v60, 16 }
  0x49   : > { %v798_v54 = vrot.slane %v796_v50, 1  ;;  %v6015_v5 = vld [vmem:[%s6315_s21 + $0x28] sm:$0xff]   ;;  %v819_v8 = vrot.slane %v817_v1, 1  ;;  %v825_v10 = vshll.u32 %v6012_v2, 16  ;;  %v829_v13 = vshrl.u32 %v6012_v2, 16  ;;  %v6018_v15 = vld [vmem:[%s8045_s1 + $0xf8] sm:$0xff]  }
  0x4a   : > { %5525 = vmatpush3.bf16.msra.mxu0 %v5990_v36  ;;  %v807_v3 = vor.u32 %v805_v59, %v803_v55  ;;  %v815_v7 = vor.u32 %v813_v62, %v811_v63  ;;  %v833_v14 = vshll.u32 %v6015_v5, 16  ;;  %v6017_v17 = vld [vmem:[%s6315_s21 + $0x30] sm:$0xff]   ;;  %v6011_v20 = vld [vmem:[%s6315_s21 + $0x18] sm:$0xff]   ;;  %v6014_v26 = vld [vmem:[%s6315_s21 + $0x20] sm:$0xff]   ;;  %v837_v27 = vshrl.u32 %v6015_v5, 16 }
  0x4b   : > { %5565 = vmatpush3.bf16.msra.mxu1 %v5991_v37  ;;  %5526 = vmatprep.subr.bf16.mxu0 %v5992_v38  ;;  %v799_v58 = vor.u32 %v798_v54, %v794_v49  ;;  %v827_v18 = vrot.slane %v825_v10, 1  ;;  %v6020_v19 = vld [vmem:[%s8045_s1 + $0xf0] sm:$0xff]   ;;  %v823_v21 = vor.u32 %v821_v12, %v819_v8  ;;  %v6013_v22 = vld [vmem:[%s8045_s1 + $0xa8] sm:$0xff]   ;;  %v841_v28 = vshll.u32 %v6017_v17, 16  ;;  %v6019_v30 = vld [vmem:[%s8045_s1 + $0xa0] sm:$0xff]  }
  0x4c   : > { %5566 = vmatprep.subr.bf16.mxu1 %v5993_v39  ;;  %v812_v11 = vsel %vm792_vm0, %v807_v3, %v811_v63  ;;  %v820_v16 = vsel %vm792_vm0, %v815_v7, %v819_v8  ;;  %v835_v24 = vrot.slane %v833_v14, 1  ;;  %v6022_v25 = vld [vmem:[%s6315_s21 + $0x38] sm:$0xff]   ;;  %v845_v31 = vshrl.u32 %v6017_v17, 16  ;;  %v6024_v34 = vld [vmem:[%s6315_s21 + $0x40] sm:$0xff]   ;;  %v6026_v35 = vld [vmem:[%s8045_s1 + $0xe8] sm:$0xff]  }
  0x4d   : > { %v804_v61 = vsel %vm792_vm0, %v799_v58, %v803_v55  ;;  %v831_v23 = vor.u32 %v829_v13, %v827_v18  ;;  %v828_v29 = vsel %vm792_vm0, %v823_v21, %v827_v18  ;;  %v849_v33 = vshll.u32 %v6022_v25, 16  ;;  %v6027_v37 = vld [vmem:[%s8045_s1 + $0xe0] sm:$0xff]   ;;  %v6033_v51 = vld [vmem:[%s8045_s1 + $0xd8] sm:$0xff]   ;;  %v6032_v54 = vld [vmem:[%s6315_s21 + $0x50] sm:$0xff]  }
  0x4e   : > { %5527 = vmatpush3.bf16.msra.mxu0 %v5992_v38  ;;  %5576 = vmatprep.mubr.bf16.mxu1 %v804_v61  ;;  %v843_v36 = vrot.slane %v841_v28, 1  ;;  %v839_v38 = vor.u32 %v837_v27, %v835_v24  ;;  %v6030_v44 = vld [vmem:[%s6315_s21 + $0x48] sm:$0xff]   ;;  %v853_v46 = vshrl.u32 %v6022_v25, 16  ;;  %v861_v49 = vshrl.u32 %v6024_v34, 16  ;;  %v6035_v55 = vld [vmem:[%s8045_s1 + $0xd0] sm:$0xff]   ;;  %v6029_v62 = vld [vmem:[%s6315_s21 + $0x40] sm:$0xff]  }
  0x4f   : > { %5567 = vmatpush3.bf16.msra.mxu1 %v5993_v39  ;;  %5528 = vmatprep.subr.bf16.mxu0 %v5994_v40  ;;  %v836_v32 = vsel %vm792_vm0, %v831_v23, %v835_v24  ;;  %v6025_v39 = vld [vmem:[%s8045_s1 + $0x98] sm:$0xff]   ;;  %v865_v50 = vshll.u32 %v6030_v44, 16  ;;  %v869_v63 = vshrl.u32 %v6030_v44, 16  ;;  %v877_v2 = vshrl.u32 %v6032_v54, 16  ;;  %v6040_v3 = vld [vmem:[%s8045_s1 + $0xc8] sm:$0xff]   ;;  %v6041_v7 = vld [vmem:[%s8045_s1 + $0x80] sm:$0xff]  }
  0x50   : > { %5568 = vmatprep.subr.bf16.mxu1 %v5995_v41  ;;  %v844_v47 = vsel %vm792_vm0, %v839_v38, %v843_v36  ;;  %v6037_v60 = vld [vmem:[%s6315_s21 + $0x58] sm:$0xff]   ;;  %v6031_v10 = vld [vmem:[%s6315_s21 + $0x48] sm:$0xff]   ;;  %v6036_v12 = vld [vmem:[%s6315_s21 + $0x50] sm:$0xff]  }
  0x51   : > { %v867_v59 = vrot.slane %v865_v50, 1  ;;  %v6023_v61 = vld [vmem:[%s6315_s21 + $0x38] sm:$0xff]   ;;  %v881_v5 = vshll.u32 %v6037_v60, 16  ;;  %v6044_v17 = vld [vmem:[%s6315_s21 + $0x8] sm:$0xff]   ;;  %v6046_v27 = vld [vmem:[%s6315_s21 + $0x10] sm:$0xff]  }
  0x52   : > { %5529 = vmatpush3.bf16.msra.mxu0 %v5994_v40  ;;  %v6016_v40 = vld [vmem:[%s6315_s21 + $0x28] sm:$0xff]   ;;  %v1261_v25 = vrot.slane %v6044_v17, 1  ;;  %v6052_v38 = vld [vmem:[%s6315_s21 + $0x20] sm:$0xff]   ;;  %v6057_v50 = vld [vmem:[%s6315_s21 + $0x30] sm:$0xff]  }
  0x53   : > { %5569 = vmatpush3.bf16.msra.mxu1 %v5995_v41  ;;  %5530 = vmatprep.subr.bf16.mxu0 %v5996_v42  ;;  %v847_v41 = vor.u32 %v845_v31, %v843_v36  ;;  %v883_v14 = vrot.slane %v881_v5, 1  ;;  %v6050_v31 = vld [vmem:[%s6315_s21 + $0x18] sm:$0xff]   ;;  %v6054_v44 = vld [vmem:[%s8045_s1 + $0x128] sm:$0xff]  }
  0x54   : > { %5570 = vmatprep.subr.bf16.mxu1 %v5997_v43  ;;  %v6049_v36 = vld [vmem:[%s8045_s1 + $0x130] sm:$0xff]   ;;  %v6075_v5 = vld [vmem:[%s8045_s1 + $0x108] sm:$0xff]  }
  0x56   : > { %5531 = vmatpush3.bf16.msra.mxu0 %v5996_v42  ;;  %v851_v42 = vrot.slane %v849_v33, 1  ;;  %v6059_v33 = vld [vmem:[%s8045_s1 + $0x178] sm:$0xff]  }
  0x57   : > { %5571 = vmatpush3.bf16.msra.mxu1 %v5997_v43  ;;  %5532 = vmatprep.subr.bf16.mxu0 %v5998_v45  ;;  %v857_v43 = vshll.u32 %v6024_v34, 16  ;;  %v6047_v34 = vld [vmem:[%s6315_s21 + $0x14] sm:$0xff]  }
  0x58   : > { %5572 = vmatprep.subr.bf16.mxu1 %v5999_v48  ;;  %v852_v52 = vsel %vm792_vm0, %v847_v41, %v851_v42  ;;  %v855_v56 = vor.u32 %v853_v46, %v851_v42  ;;  %v6055_v41 = vld [vmem:[%s6315_s21 + $0x28] sm:$0xff]   ;;  %v6061_v42 = vld [vmem:[%s8045_s1 + $0x170] sm:$0xff]  }
  0x59   : > { %v1269_v46 = vrot.slane %v6055_v41, 1 }
  0x5a   : > { %5533 = vmatpush3.bf16.msra.mxu0 %v5998_v45  ;;  %v6021_v45 = vld [vmem:[%s6315_s21 + $0x30] sm:$0xff]  }
  0x5b   : > { %5573 = vmatpush3.bf16.msra.mxu1 %v5999_v48  ;;  %5534 = vmatprep.subr.bf16.mxu0 %v6000_v53  ;;  %v6028_v48 = vld [vmem:[%s8045_s1 + $0x90] sm:$0xff]  }
  0x5c   : > { %5574 = vmatprep.subr.bf16.mxu1 %v6001_v57 }
  0x5e   : > { %5535 = vmatpush3.bf16.msra.mxu0 %v6000_v53  ;;  %v859_v53 = vrot.slane %v857_v43, 1  ;;  %v1267_v43 = vrot.slane %v6052_v38, 1  ;;  %v6080_v38 = vld [vmem:[%s6315_s21 + $0x64] sm:$0xff]  }
  0x5f   : > { %5575 = vmatpush3.bf16.msra.mxu1 %v6001_v57  ;;  %5600 = vmatprep.subr.bf16.mxu0 %v6007_v0  ;;  %v6034_v57 = vld [vmem:[%s8045_s1 + $0x88] sm:$0xff]  }
  0x60   : > { %5640 = vmatprep.subr.bf16.mxu1 %v6018_v15  ;;  %v863_v58 = vor.u32 %v861_v49, %v859_v53  ;;  %v860_v1 = vsel %vm792_vm0, %v855_v56, %v859_v53  ;;  %v6060_v53 = vld [vmem:[%s8045_s1 + $0x120] sm:$0xff]  }
  0x61   : > { %5537 = vmatmul.mubr.bf16.vlgmr.msra.gmra.mxu0 %v6005_v4 }
  0x62   : > { %5577 = vmatmul.mubr.bf16.vlgmr.msra.gmra.mxu1 %v812_v11  ;;  %5601 = vmatpush3.bf16.msra.mxu0 %v6007_v0  ;;  %v873_v0 = vshll.u32 %v6032_v54, 16  ;;  %v868_v4 = vsel %vm792_vm0, %v863_v58, %v867_v59  ;;  %v871_v11 = vor.u32 %v869_v63, %v867_v59  ;;  %v6068_v54 = vld [vmem:[%s8045_s1 + $0x160] sm:$0xff]   ;;  %v6058_v58 = vld [vmem:[%s6315_s21 + $0x34] sm:$0xff]  }
  0x63   : > { %5602 = vmatprep.subr.bf16.mxu0 %v6008_v6  ;;  %5540 = vmatprep.mubr.bf16.mxu0 %v6009_v9  ;;  %v6042_v9 = vld [vmem:[%s8045_s1 + $0xc0] sm:$0xff]  }
  0x64   : > { %5580 = vmatprep.mubr.bf16.mxu1 %v820_v16  ;;  %5641 = vmatpush3.bf16.msra.mxu1 %v6018_v15  ;;  %v875_v8 = vrot.slane %v873_v0, 1  ;;  %v6043_v15 = vld [vmem:[%s6315_s21] sm:$0xfe]   ;;  %v6070_v0 = vld [vmem:[%s6315_s21 + $0x48] sm:$0xff]  }
  0x65   : > { %5642 = vmatprep.subr.bf16.mxu1 %v6020_v19  ;;  %v1260_v24 = vrot.slane %v6043_v15, 1  ;;  %v6064_v59 = vld [vmem:[%s6315_s21 + $0x40] sm:$0xff]  }
  0x66   : > { %5603 = vmatpush3.bf16.msra.mxu0 %v6008_v6  ;;  %v6039_v6 = vld [vmem:[%s6315_s21 + $0x60] ss:$0 sps:$4 sm:$0x11]   ;;  %v879_v13 = vor.u32 %v877_v2, %v875_v8  ;;  %v876_v18 = vsel %vm792_vm0, %v871_v11, %v875_v8  ;;  %v1275_v2 = vrot.slane %v6064_v59, 1 }
  0x67   : > { %5604 = vmatprep.subr.bf16.mxu0 %v6013_v22  ;;  %v889_v16 = vshll.u32 %v6039_v6, 16  ;;  %v6065_v6 = vld [vmem:[%s6315_s21 + $0x44] sm:$0xff]  }
  0x68   : > { %5643 = vmatpush3.bf16.msra.mxu1 %v6020_v19  ;;  %v885_v19 = vshrl.u32 %v6037_v60, 16  ;;  %v884_v21 = vsel %vm792_vm0, %v879_v13, %v883_v14  ;;  %v6074_v60 = vld [vmem:[%s8045_s1 + $0x158] sm:$0xff]   ;;  %v6084_v13 = vld [vmem:[%s6315_s21 + $0xc] sm:$0xff]   ;;  %v6083_v15 = vld [vmem:[%s8045_s1 + $0x140] sm:$0xff]  }
  0x69   : > { %5541 = vmatmul.mubr.bf16.gmra.mxu0 %v6011_v20  ;;  %5644 = vmatprep.subr.bf16.mxu1 %v6026_v35  ;;  %v6048_v20 = vld [vmem:[%s8045_s1 + $0x138] sm:$0xff]  }
  0x6a   : > { %5581 = vmatmul.mubr.bf16.gmra.mxu1 %v828_v29  ;;  %5605 = vmatpush3.bf16.msra.mxu0 %v6013_v22  ;;  %v891_v22 = vrot.slane %v889_v16, 1  ;;  %v887_v23 = vor.u32 %v885_v19, %v883_v14  ;;  %v1262_v29 = vsel %vm1259_vm1, %v1260_v24, %v1261_v25  ;;  %v6082_v14 = vld [vmem:[%s8045_s1 + $0x100] sm:$0xff]   ;;  %v2016_v19 = vshll.u32 %v6084_v13, 16 }
  0x6b   : > { %5544 = vmatprep.mubr.bf16.mxu0 %v6014_v26  ;;  %5584 = vmatprep.mubr.bf16.mxu1 %v836_v32  ;;  %v6038_v26 = vld [vmem:[%s6315_s21 + $0x58] sm:$0xff]   ;;  %v1263_v32 = vrot.slane %v6046_v27, 1 }
  0x6c   : > { %5606 = vmatprep.subr.bf16.mxu0 %v6019_v30  ;;  %5645 = vmatpush3.bf16.msra.mxu1 %v6026_v35  ;;  %v892_v28 = vsel %vm792_vm0, %v887_v23, %v891_v22  ;;  %v1265_v35 = vrot.slane %v6050_v31, 1  ;;  %v6073_v22 = vld [vmem:[%s6315_s21 + $0x54] sm:$0xff]   ;;  %v6078_v24 = vld [vmem:[%s6315_s21 + $0x5c] sm:$0xff]  }
  0x6d   : > { %5646 = vmatprep.subr.bf16.mxu1 %v6027_v37 }
  0x6e   : > { %5607 = vmatpush3.bf16.msra.mxu0 %v6019_v30  ;;  %v6045_v30 = vld [vmem:[%s6315_s21 + $0xc] sm:$0xff]   ;;  %v1268_v49 = vsel %vm1259_vm1, %v1265_v35, %v1267_v43 }
  0x6f   : > { %5608 = vmatprep.subr.bf16.mxu0 %v6025_v39 }
  0x70   : > { %5647 = vmatpush3.bf16.msra.mxu1 %v6027_v37  ;;  %v1264_v37 = vsel %vm1259_vm1, %v1261_v25, %v1263_v32  ;;  %v2014_v25 = vshrl.u32 %v6084_v13, 16 }
  0x71   : > { %5545 = vmatmul.mubr.bf16.gmra.mxu0 %v6016_v40  ;;  %5648 = vmatprep.subr.bf16.mxu1 %v6033_v51  ;;  %v1266_v40 = vsel %vm1259_vm1, %v1263_v32, %v1265_v35  ;;  %v6088_v32 = vld [vmem:[%s6315_s21 + $0x1c] sm:$0xff]  }
  0x72   : > { %5585 = vmatmul.mubr.bf16.gmra.mxu1 %v844_v47  ;;  %5548 = vmatprep.mubr.bf16.mxu0 %v6021_v45  ;;  %v6053_v45 = vld [vmem:[%s6315_s21 + $0x24] sm:$0xff]   ;;  %v6056_v47 = vld [vmem:[%s6315_s21 + $0x2c] sm:$0xff]   ;;  %v2029_v41 = vshll.u32 %v6088_v32, 16 }
  0x73   : > { %5588 = vmatprep.mubr.bf16.mxu1 %v852_v52  ;;  %5609 = vmatpush3.bf16.msra.mxu0 %v6025_v39  ;;  %v6051_v39 = vld [vmem:[%s6315_s21 + $0x1c] sm:$0xff]   ;;  %v1270_v52 = vsel %vm1259_vm1, %v1267_v43, %v1269_v46 }
  0x74   : > { %5610 = vmatprep.subr.bf16.mxu0 %v6028_v48  ;;  %5649 = vmatpush3.bf16.msra.mxu1 %v6033_v51  ;;  %v6062_v51 = vld [vmem:[%s6315_s21 + $0x38] sm:$0xff]  }
  0x75   : > { %5650 = vmatprep.subr.bf16.mxu1 %v6035_v55  ;;  %v1273_v56 = vrot.slane %v6062_v51, 1  ;;  %v2031_v51 = vrot.slane %v2029_v41, 1  ;;  %v6111_v41 = vld [vmem:[%s8045_s1 + $0x190] sm:$0xff]  }
  0x77   : > { %5611 = vmatpush3.bf16.msra.mxu0 %v6028_v48  ;;  %v6067_v48 = vld [vmem:[%s8045_s1 + $0x168] sm:$0xff]   ;;  %v1276_v8 = vsel %vm1259_vm1, %v1273_v56, %v1275_v2 }
  0x78   : > { %5612 = vmatprep.subr.bf16.mxu0 %v6034_v57  ;;  %5651 = vmatpush3.bf16.msra.mxu1 %v6035_v55  ;;  %v1271_v55 = vrot.slane %v6057_v50, 1 }
  0x79   : > { %5549 = vmatmul.mubr.bf16.gmra.mxu0 %v6023_v61  ;;  %5652 = vmatprep.subr.bf16.mxu1 %v6040_v3 }
  0x7a   : > { %5589 = vmatmul.mubr.bf16.gmra.mxu1 %v860_v1  ;;  %5552 = vmatprep.mubr.bf16.mxu0 %v6029_v62  ;;  %v1272_v61 = vsel %vm1259_vm1, %v1269_v46, %v1271_v55  ;;  %v6063_v62 = vld [vmem:[%s6315_s21 + $0x3c] sm:$0xff]   ;;  %v1274_v63 = vsel %vm1259_vm1, %v1271_v55, %v1273_v56  ;;  %v6069_v1 = vld [vmem:[%s8045_s1 + $0x110] sm:$0xff]  }
  0x7b   : > { %5592 = vmatprep.mubr.bf16.mxu1 %v868_v4  ;;  %5613 = vmatpush3.bf16.msra.mxu0 %v6034_v57  ;;  %v6066_v57 = vld [vmem:[%s8045_s1 + $0x118] sm:$0xff]   ;;  %v1277_v4 = vrot.slane %v6070_v0, 1  ;;  %v6091_v56 = vld [vmem:[%s8045_s1 + $0x1b0] sm:$0xff]  }
  0x7c   : > { %5614 = vmatprep.subr.bf16.mxu0 %v6041_v7  ;;  %5653 = vmatpush3.bf16.msra.mxu1 %v6040_v3  ;;  %v6076_v3 = vld [vmem:[%s8045_s1 + $0x150] sm:$0xff]  }
  0x7d   : > { %5654 = vmatprep.subr.bf16.mxu1 %v6042_v9  ;;  %v1278_v11 = vsel %vm1259_vm1, %v1275_v2, %v1277_v4  ;;  %v6097_v55 = vld [vmem:[%s6315_s21 + $0x34] sm:$0xff]  }
  0x7e   : > { %v6592_v0 = vld [vmem:[%s6315_s21 + $0x34] sm:$0xff]   ;;  %v2053_v2 = vshll.u32 %v6097_v55, 16 }
  0x7f   : > { %5615 = vmatpush3.bf16.msra.mxu0 %v6041_v7  ;;  %v6081_v7 = vld [vmem:[%s8045_s1 + $0x148] sm:$0xff]  }
  0x80   : > { %5655 = vmatpush3.bf16.msra.mxu1 %v6042_v9  ;;  %5680 = vmatprep.subr.bf16.mxu0 %v6048_v20  ;;  %v6072_v9 = vld [vmem:[%s6315_s21 + $0x50] sm:$0xff]   ;;  %v2055_v13 = vrot.slane %v2053_v2, 1 }
  0x81   : > { %5553 = vmatmul.mubr.bf16.gmra.mxu0 %v6031_v10  ;;  %5720 = vmatprep.subr.bf16.mxu1 %v6059_v33  ;;  %v6077_v10 = vld [vmem:[%s6315_s21 + $0x58] sm:$0xff]   ;;  %v1279_v16 = vrot.slane %v6072_v9, 1  ;;  %v6096_v9 = vld [vmem:[%s8045_s1 + $0x1a8] sm:$0xff]  }
  0x82   : > { %5593 = vmatmul.mubr.bf16.gmra.mxu1 %v876_v18  ;;  %5556 = vmatprep.mubr.bf16.mxu0 %v6036_v12  ;;  %v6071_v12 = vld [vmem:[%s6315_s21 + $0x4c] sm:$0xff]   ;;  %v1281_v17 = vrot.slane %v6077_v10, 1  ;;  %v6085_v18 = vld [vmem:[%s6315_s21 + $0x14] sm:$0xff]   ;;  %v2488_v10 = vrot.slane %v6592_v0, 1  ;;  %v6120_v0 = vld [vmem:[%s6315_s21 + $0x64] sm:$0xff]  }
  0x83   : > { %5596 = vmatprep.mubr.bf16.mxu1 %v884_v21  ;;  %v6563_v21 = vld [vmem:[%s8045_s1 + $0x1b8] sm:$0xff]   ;;  %v1280_v23 = vsel %vm1259_vm1, %v1277_v4, %v1279_v16 }
  0x84   : > { %v1282_v27 = vsel %vm1259_vm1, %v1279_v16, %v1281_v17  ;;  %v6100_v16 = vld [vmem:[%s6315_s21 + $0x3c] sm:$0xff]  }
  0x89   : > { %5557 = vmatmul.mubr.bf16.gmra.mxu0 %v6038_v26  ;;  %v6086_v26 = vld [vmem:[%s6315_s21 + $0xc] sm:$0xfe]  }
  0x8a   : > { %5597 = vmatmul.mubr.bf16.gmra.mxu1 %v892_v28  ;;  %5616 = vmatprep.mubr.bf16.mxu0 %v1262_v29  ;;  %v2018_v28 = vrot.slane %v2016_v19, 1  ;;  %v2021_v29 = vshll.u32 %v6085_v18, 16  ;;  %v2479_v35 = vrot.slane %v6086_v26, 1  ;;  %v6106_v26 = vld [vmem:[%s6315_s21 + $0x4c] sm:$0xff]  }
  0x8b   : > { %5656 = vmatprep.mubr.bf16.mxu1 %v6045_v30  ;;  %v6087_v30 = vld [vmem:[%s6315_s21 + $0x14] sm:$0xff]  }
  0x91   : > { %5617 = vmatmul.mubr.bf16.vlgmr.msra.gmra.mxu0 %v1264_v37  ;;  %v6092_v37 = vld [vmem:[%s6315_s21 + $0x24] sm:$0xff]  }
  0x92   : > { %5657 = vmatmul.mubr.bf16.vlgmr.msra.gmra.mxu1 %v6047_v34  ;;  %5681 = vmatpush3.bf16.msra.mxu0 %v6048_v20  ;;  %v6079_v20 = vld [vmem:[%s6315_s21 + $0x60] ss:$0 sps:$4 sm:$0x11]   ;;  %v2023_v34 = vrot.slane %v2021_v29, 1 }
  0x93   : > { %5682 = vmatprep.subr.bf16.mxu0 %v6049_v36  ;;  %5620 = vmatprep.mubr.bf16.mxu0 %v1266_v40  ;;  %v1283_v31 = vrot.slane %v6079_v20, 1  ;;  %v6102_v20 = vld [vmem:[%s8045_s1 + $0x1a0] sm:$0xff]  }
  0x94   : > { %5660 = vmatprep.mubr.bf16.mxu1 %v6051_v39  ;;  %5721 = vmatpush3.bf16.msra.mxu1 %v6059_v33  ;;  %v2019_v33 = vor.u32 %v2018_v28, %v2014_v25  ;;  %v2025_v39 = vshrl.u32 %v6085_v18, 16  ;;  %v6109_v18 = vld [vmem:[%s8045_s1 + $0x1e8] sm:$0xff]   ;;  %v6110_v28 = vld [vmem:[%s8045_s1 + $0x1e0] sm:$0xff]  }
  0x95   : > { %5722 = vmatprep.subr.bf16.mxu1 %v6061_v42  ;;  %v1284_v40 = vsel %vm1259_vm1, %v1281_v17, %v1283_v31  ;;  %v6628_v31 = vld [vmem:[%s6315_s21 + $0x54] sm:$0xff]  }
  0x96   : > { %5683 = vmatpush3.bf16.msra.mxu0 %v6049_v36  ;;  %v2480_v36 = vrot.slane %v6087_v30, 1  ;;  %v2024_v43 = vsel %vm792_vm0, %v2019_v33, %v2023_v34  ;;  %v2027_v50 = vor.u32 %v2025_v39, %v2023_v34  ;;  %v2490_v30 = vrot.slane %v6100_v16, 1  ;;  %v6108_v34 = vld [vmem:[%s8045_s1 + $0x198] sm:$0xff]   ;;  %v6107_v39 = vld [vmem:[%s6315_s21 + $0x4c] sm:$0xff]  }
  0x97   : > { %5684 = vmatprep.subr.bf16.mxu0 %v6054_v44 }
  0x98   : > { %5723 = vmatpush3.bf16.msra.mxu1 %v6061_v42  ;;  %v6101_v42 = vld [vmem:[%s8045_s1 + $0x1f8] sm:$0xff]   ;;  %v2481_v46 = vsel %vm1259_vm1, %v2479_v35, %v2480_v36 }
  0x99   : > { %5621 = vmatmul.mubr.bf16.gmra.mxu0 %v1268_v49  ;;  %5724 = vmatprep.subr.bf16.mxu1 %v6067_v48  ;;  %v6094_v49 = vld [vmem:[%s6315_s21 + $0x2c] sm:$0xff]  }
  0x9a   : > { %5661 = vmatmul.mubr.bf16.gmra.mxu1 %v6053_v45  ;;  %5685 = vmatpush3.bf16.msra.mxu0 %v6054_v44  ;;  %v6089_v44 = vld [vmem:[%s6315_s21 + $0x1c] sm:$0xff]   ;;  %v2033_v45 = vshrl.u32 %v6088_v32, 16  ;;  %v2045_v59 = vshll.u32 %v6094_v49, 16 }
  0x9b   : > { %5624 = vmatprep.mubr.bf16.mxu0 %v1270_v52  ;;  %5664 = vmatprep.mubr.bf16.mxu1 %v6056_v47  ;;  %v2037_v47 = vshll.u32 %v6092_v37, 16  ;;  %v2482_v52 = vrot.slane %v6089_v44, 1  ;;  %v6645_v44 = vld [vmem:[%s6315_s21 + $0x54] sm:$0xff]  }
  0x9c   : > { %5686 = vmatprep.subr.bf16.mxu0 %v6060_v53  ;;  %5725 = vmatpush3.bf16.msra.mxu1 %v6067_v48  ;;  %v6093_v48 = vld [vmem:[%s6315_s21 + $0x24] sm:$0xff]  }
  0x9d   : > { %5726 = vmatprep.subr.bf16.mxu1 %v6068_v54 }
  0x9e   : > { %5687 = vmatpush3.bf16.msra.mxu0 %v6060_v53  ;;  %v2035_v53 = vor.u32 %v2033_v45, %v2031_v51  ;;  %v2491_v45 = vsel %vm1259_vm1, %v2488_v10, %v2490_v30 }
  0x9f   : > { %5688 = vmatprep.subr.bf16.mxu0 %v6066_v57 }
  0xa0   : > { %5727 = vmatpush3.bf16.msra.mxu1 %v6068_v54  ;;  %v2039_v54 = vrot.slane %v2037_v47, 1 }
  0xa1   : > { %5625 = vmatmul.mubr.bf16.gmra.mxu0 %v1272_v61  ;;  %5728 = vmatprep.subr.bf16.mxu1 %v6074_v60  ;;  %v2032_v61 = vsel %vm792_vm0, %v2027_v50, %v2031_v51  ;;  %v6118_v50 = vld [vmem:[%s8045_s1 + $0x1d0] sm:$0xff]  }
  0xa2   : > { %5665 = vmatmul.mubr.bf16.gmra.mxu1 %v6058_v58  ;;  %5628 = vmatprep.mubr.bf16.mxu0 %v1274_v63  ;;  %v2041_v58 = vshrl.u32 %v6092_v37, 16  ;;  %v2049_v63 = vshrl.u32 %v6094_v49, 16  ;;  %v2077_v37 = vshll.u32 %v6106_v26, 16 }
  0xa3   : > { %5668 = vmatprep.mubr.bf16.mxu1 %v6063_v62  ;;  %5689 = vmatpush3.bf16.msra.mxu0 %v6066_v57  ;;  %v2484_v57 = vrot.slane %v6093_v48, 1  ;;  %v2483_v62 = vsel %vm1259_vm1, %v2480_v36, %v2482_v52  ;;  %v6114_v48 = vld [vmem:[%s6315_s21 + $0x5c] sm:$0xff]  }
  0xa4   : > { %5690 = vmatprep.subr.bf16.mxu0 %v6069_v1  ;;  %5729 = vmatpush3.bf16.msra.mxu1 %v6074_v60  ;;  %v6095_v60 = vld [vmem:[%s6315_s21 + $0x2c] sm:$0xff]   ;;  %v2079_v49 = vrot.slane %v2077_v37, 1 }
  0xa5   : > { %5730 = vmatprep.subr.bf16.mxu1 %v6076_v3  ;;  %v2485_v4 = vsel %vm1259_vm1, %v2482_v52, %v2484_v57  ;;  %v2494_v52 = vrot.slane %v6107_v39, 1 }
  0xa7   : > { %5691 = vmatpush3.bf16.msra.mxu0 %v6069_v1  ;;  %v2040_v1 = vsel %vm792_vm0, %v2035_v53, %v2039_v54 }
  0xa8   : > { %5692 = vmatprep.subr.bf16.mxu0 %v6075_v5  ;;  %5731 = vmatpush3.bf16.msra.mxu1 %v6076_v3  ;;  %v6099_v3 = vld [vmem:[%s6315_s21 + $0x3c] sm:$0xff]  }
  0xa9   : > { %5629 = vmatmul.mubr.bf16.gmra.mxu0 %v1276_v8  ;;  %5732 = vmatprep.subr.bf16.mxu1 %v6081_v7  ;;  %v2486_v8 = vrot.slane %v6095_v60, 1  ;;  %v2065_v17 = vshrl.u32 %v6099_v3, 16  ;;  %v6115_v60 = vld [vmem:[%s6315_s21 + $0x5c] sm:$0xff]  }
  0xaa   : > { %5669 = vmatmul.mubr.bf16.gmra.mxu1 %v6065_v6  ;;  %5632 = vmatprep.mubr.bf16.mxu0 %v1278_v11  ;;  %v2043_v6 = vor.u32 %v2041_v58, %v2039_v54  ;;  %v6606_v11 = vld [vmem:[%s6315_s21 + $0x44] sm:$0xff]   ;;  %v2089_v58 = vshrl.u32 %v6628_v31, 16 }
  0xab   : > { %5672 = vmatprep.mubr.bf16.mxu1 %v6071_v12  ;;  %5693 = vmatpush3.bf16.msra.mxu0 %v6075_v5  ;;  %v6103_v5 = vld [vmem:[%s8045_s1 + $0x1f0] sm:$0xff]   ;;  %v2489_v25 = vsel %vm1259_vm1, %v2486_v8, %v2488_v10  ;;  %v2073_v36 = vshrl.u32 %v6606_v11, 16 }
  0xac   : > { %5733 = vmatpush3.bf16.msra.mxu1 %v6081_v7  ;;  %5694 = vmatprep.subr.bf16.mxu0 %v6082_v14  ;;  %v2047_v7 = vrot.slane %v2045_v59, 1  ;;  %v2093_v59 = vshll.u32 %v6114_v48, 16 }
  0xad   : > { %5734 = vmatprep.subr.bf16.mxu1 %v6083_v15 }
  0xae   : > { %v2051_v12 = vor.u32 %v2049_v63, %v2047_v7  ;;  %v2048_v19 = vsel %vm792_vm0, %v2043_v6, %v2047_v7  ;;  %v2097_v63 = vshrl.u32 %v6114_v48, 16  ;;  %v6121_v6 = vld [vmem:[%s6315_s21 + $0x6c] ss:$0 sps:$4 sm:$0x11]   ;;  %v6127_v7 = vld [vmem:[%s6315_s21 + $0x18] sm:$0xff]  }
  0xaf   : > { %5695 = vmatpush3.bf16.msra.mxu0 %v6082_v14  ;;  %v2057_v14 = vshrl.u32 %v6097_v55, 16  ;;  %v6119_v55 = vld [vmem:[%s6315_s21 + $0x64] sm:$0xff]   ;;  %v3235_v16 = vshll.u32 %v6127_v7, 16 }
  0xb0   : > { %5735 = vmatpush3.bf16.msra.mxu1 %v6083_v15  ;;  %5760 = vmatprep.subr.bf16.mxu0 %v6563_v21  ;;  %v2061_v15 = vshll.u32 %v6099_v3, 16  ;;  %v2101_v3 = vshll.u32 %v6119_v55, 16 }
  0xb1   : > { %5633 = vmatmul.mubr.bf16.gmra.mxu0 %v1280_v23  ;;  %5800 = vmatprep.subr.bf16.mxu1 %v6101_v42  ;;  %v6619_v23 = vld [vmem:[%s6315_s21 + $0x44] sm:$0xff]   ;;  %v2059_v29 = vor.u32 %v2057_v14, %v2055_v13 }
  0xb2   : > { %5673 = vmatmul.mubr.bf16.gmra.mxu1 %v6073_v22  ;;  %5636 = vmatprep.mubr.bf16.mxu0 %v1282_v27  ;;  %v2069_v22 = vshll.u32 %v6606_v11, 16  ;;  %v2063_v27 = vrot.slane %v2061_v15, 1  ;;  %v2492_v35 = vrot.slane %v6619_v23, 1  ;;  %v2498_v11 = vrot.slane %v6115_v60, 1  ;;  %v6128_v15 = vld [vmem:[%s6315_s21 + $0x20] sm:$0xff]  }
  0xb3   : > { %5676 = vmatprep.mubr.bf16.mxu1 %v6078_v24  ;;  %v2056_v24 = vsel %vm792_vm0, %v2051_v12, %v2055_v13  ;;  %v2500_v12 = vrot.slane %v6120_v0, 1  ;;  %v2103_v14 = vrot.slane %v2101_v3, 1  ;;  %v6144_v0 = vld [vmem:[%s6315_s21 + $0x50] sm:$0xff]  }
  0xb4   : > { %v2067_v32 = vor.u32 %v2065_v17, %v2063_v27  ;;  %v2071_v33 = vrot.slane %v2069_v22, 1  ;;  %v2493_v47 = vsel %vm1259_vm1, %v2490_v30, %v2492_v35  ;;  %v6681_v17 = vld [vmem:[%s8045_s1 + $0x238] sm:$0xff]  }
  0xb6   : > { %v2075_v51 = vor.u32 %v2073_v36, %v2071_v33 }
  0xb9   : > { %5637 = vmatmul.mubr.bf16.gmra.mxu0 %v1284_v40  ;;  %v2064_v40 = vsel %vm792_vm0, %v2059_v29, %v2063_v27  ;;  %v3240_v27 = vshll.u32 %v6128_v15, 16 }
  0xba   : > { %5677 = vmatmul.mubr.bf16.gmra.mxu1 %v6080_v38  ;;  %5696 = vmatprep.mubr.bf16.mxu0 %v2024_v43  ;;  %v6116_v38 = vld [vmem:[%s8045_s1 + $0x1d8] sm:$0xff]   ;;  %v2085_v43 = vshll.u32 %v6628_v31, 16  ;;  %v6130_v31 = vld [vmem:[%s6315_s21 + $0x28] sm:$0xff]  }
  0xbb   : > { %5736 = vmatprep.mubr.bf16.mxu1 %v2481_v46  ;;  %v2072_v46 = vsel %vm792_vm0, %v2067_v32, %v2071_v33  ;;  %v3242_v33 = vrot.slane %v3240_v27, 1  ;;  %v3248_v39 = vshll.u32 %v6130_v31, 16  ;;  %v6152_v27 = vld [vmem:[%s6315_s21 + $0x68] sm:$0xff]  }
  0xbc   : > { %v2087_v54 = vrot.slane %v2085_v43, 1  ;;  %v6136_v43 = vld [vmem:[%s6315_s21 + $0x38] sm:$0xff]  }
  0xbe   : > { %v2091_v10 = vor.u32 %v2089_v58, %v2087_v54 }
  0xc1   : > { %5697 = vmatmul.mubr.bf16.vlgmr.msra.gmra.mxu0 %v2032_v61  ;;  %v6123_v61 = vld [vmem:[%s8045_s1 + $0x1c8] sm:$0xff]  }
  0xc2   : > { %5737 = vmatmul.mubr.bf16.vlgmr.msra.gmra.mxu1 %v2483_v62  ;;  %5761 = vmatpush3.bf16.msra.mxu0 %v6563_v21  ;;  %v2487_v21 = vsel %vm1259_vm1, %v2484_v57, %v2486_v8  ;;  %v6117_v57 = vld [vmem:[%s8045_s1 + $0x188] sm:$0xff]   ;;  %v2080_v62 = vsel %vm792_vm0, %v2075_v51, %v2079_v49  ;;  %v2095_v8 = vrot.slane %v2093_v59, 1  ;;  %v3264_v51 = vshll.u32 %v6136_v43, 16 }
  0xc3   : > { %5762 = vmatprep.subr.bf16.mxu0 %v6091_v56  ;;  %5700 = vmatprep.mubr.bf16.mxu0 %v2040_v1  ;;  %v2495_v1 = vsel %vm1259_vm1, %v2492_v35, %v2494_v52  ;;  %v6134_v35 = vld [vmem:[%s6315_s21 + $0x30] sm:$0xff]   ;;  %v6141_v59 = vld [vmem:[%s6315_s21 + $0x48] sm:$0xff]  }
  0xc4   : > { %5740 = vmatprep.mubr.bf16.mxu1 %v2485_v4  ;;  %5801 = vmatpush3.bf16.msra.mxu1 %v6101_v42  ;;  %v2081_v42 = vshrl.u32 %v6106_v26, 16  ;;  %v6124_v4 = vld [vmem:[%s8045_s1 + $0x180] sm:$0xff]   ;;  %v2099_v13 = vor.u32 %v2097_v63, %v2095_v8  ;;  %v3237_v26 = vrot.slane %v3235_v16, 1  ;;  %v3266_v58 = vrot.slane %v3264_v51, 1 }
  0xc5   : > { %5802 = vmatprep.subr.bf16.mxu1 %v6103_v5  ;;  %v3280_v3 = vshll.u32 %v6141_v59, 16  ;;  %v6150_v16 = vld [vmem:[%s6315_s21 + $0x60] sm:$0xff]  }
  0xc6   : > { %5763 = vmatpush3.bf16.msra.mxu0 %v6091_v56  ;;  %v2083_v53 = vor.u32 %v2081_v42, %v2079_v49  ;;  %v2496_v56 = vrot.slane %v6645_v44, 1  ;;  %v2104_v23 = vsel %vm792_vm0, %v2099_v13, %v2103_v14  ;;  %v3256_v42 = vshll.u32 %v6134_v35, 16  ;;  %v6147_v13 = vld [vmem:[%s8045_s1 + $0x218] sm:$0xff]  }
  0xc7   : > { %5764 = vmatprep.subr.bf16.mxu0 %v6096_v9 }
  0xc8   : > { %5803 = vmatpush3.bf16.msra.mxu1 %v6103_v5  ;;  %v2088_v2 = vsel %vm792_vm0, %v2083_v53, %v2087_v54  ;;  %v2497_v5 = vsel %vm1259_vm1, %v2494_v52, %v2496_v56  ;;  %v2499_v22 = vsel %vm1259_vm1, %v2496_v56, %v2498_v11  ;;  %v3258_v49 = vrot.slane %v3256_v42, 1  ;;  %v6133_v53 = vld [vmem:[%s6315_s21 + $0x28] sm:$0xff]  }
  0xc9   : > { %5701 = vmatmul.mubr.bf16.gmra.mxu0 %v2048_v19  ;;  %5804 = vmatprep.subr.bf16.mxu1 %v6109_v18  ;;  %v2096_v19 = vsel %vm792_vm0, %v2091_v10, %v2095_v8  ;;  %v3260_v54 = vshrl.u32 %v6134_v35, 16  ;;  %v3284_v8 = vshrl.u32 %v6141_v59, 16  ;;  %v3282_v10 = vrot.slane %v3280_v3, 1  ;;  %v6164_v3 = vld [vmem:[%s6315_s21 + $0x58] sm:$0xff]  }
  0xca   : > { %5741 = vmatmul.mubr.bf16.gmra.mxu1 %v2487_v21  ;;  %5765 = vmatpush3.bf16.msra.mxu0 %v6096_v9  ;;  %v6125_v9 = vld [vmem:[%s8045_s1 + $0x1c0] sm:$0xff]   ;;  %v2109_v21 = vshll.u32 %v6121_v6, 16  ;;  %v3312_v35 = vshll.u32 %v6152_v27, 16 }
  0xcb   : > { %5704 = vmatprep.mubr.bf16.mxu0 %v2056_v24  ;;  %5744 = vmatprep.mubr.bf16.mxu1 %v2489_v25  ;;  %v3233_v24 = vshrl.u32 %v6127_v7, 16  ;;  %v2501_v25 = vsel %vm1259_vm1, %v2498_v11, %v2500_v12  ;;  %v3262_v60 = vor.u32 %v3260_v54, %v3258_v49  ;;  %v6142_v6 = vld [vmem:[%s8045_s1 + $0x220] sm:$0xff]   ;;  %v6146_v11 = vld [vmem:[%s6315_s21 + $0x58] sm:$0xff]  }
  0xcc   : > { %5766 = vmatprep.subr.bf16.mxu0 %v6102_v20  ;;  %5805 = vmatpush3.bf16.msra.mxu1 %v6109_v18  ;;  %v6122_v18 = vld [vmem:[%s6315_s21 + $0x6c] ss:$0 sps:$4 sm:$0x11]   ;;  %v2111_v29 = vrot.slane %v2109_v21, 1  ;;  %v3292_v21 = vshrl.u32 %v6144_v0, 16  ;;  %v3314_v42 = vrot.slane %v3312_v35, 1 }
  0xcd   : > { %5806 = vmatprep.subr.bf16.mxu1 %v6110_v28  ;;  %v2502_v30 = vrot.slane %v6122_v18, 1  ;;  %v3238_v32 = vor.u32 %v3237_v26, %v3233_v24  ;;  %v6143_v18 = vld [vmem:[%s6315_s21 + $0x48] sm:$0xff]   ;;  %v3300_v24 = vshrl.u32 %v6146_v11, 16 }
  0xce   : > { %5767 = vmatpush3.bf16.msra.mxu0 %v6102_v20  ;;  %v2105_v20 = vshrl.u32 %v6119_v55, 16  ;;  %v3268_v55 = vshrl.u32 %v6136_v43, 16 }
  0xcf   : > { %5768 = vmatprep.subr.bf16.mxu0 %v6108_v34  ;;  %v2503_v37 = vsel %vm1259_vm1, %v2500_v12, %v2502_v30 }
  0xd0   : > { %5807 = vmatpush3.bf16.msra.mxu1 %v6110_v28  ;;  %v2107_v28 = vor.u32 %v2105_v20, %v2103_v14  ;;  %v3286_v14 = vor.u32 %v3284_v8, %v3282_v10  ;;  %v3713_v8 = vrot.slane %v6164_v3, 1 }
  0xd1   : > { %5705 = vmatmul.mubr.bf16.gmra.mxu0 %v2064_v40  ;;  %5808 = vmatprep.subr.bf16.mxu1 %v6116_v38  ;;  %v3243_v40 = vsel %vm792_vm0, %v3238_v32, %v3242_v33  ;;  %v6155_v32 = vld [vmem:[%s6315_s21 + $0x70] sm:$0xff]  }
  0xd2   : > { %5745 = vmatmul.mubr.bf16.gmra.mxu1 %v2491_v45  ;;  %5708 = vmatprep.mubr.bf16.mxu0 %v2072_v46  ;;  %v2112_v36 = vsel %vm792_vm0, %v2107_v28, %v2111_v29  ;;  %v3250_v45 = vrot.slane %v3248_v39, 1  ;;  %v6139_v46 = vld [vmem:[%s6315_s21 + $0x40] sm:$0xff]   ;;  %v3316_v39 = vshrl.u32 %v6152_v27, 16 }
  0xd3   : > { %5748 = vmatprep.mubr.bf16.mxu1 %v2493_v47  ;;  %5769 = vmatpush3.bf16.msra.mxu0 %v6108_v34  ;;  %v6126_v34 = vld [vmem:[%s6315_s21 + $0x18] sm:$0xff]   ;;  %v6129_v47 = vld [vmem:[%s6315_s21 + $0x20] sm:$0xff]   ;;  %v3272_v56 = vshll.u32 %v6139_v46, 16 }
  0xd4   : > { %5770 = vmatprep.subr.bf16.mxu0 %v6111_v41  ;;  %5809 = vmatpush3.bf16.msra.mxu1 %v6116_v38  ;;  %v3244_v38 = vshrl.u32 %v6128_v15, 16 }
  0xd5   : > { %5810 = vmatprep.subr.bf16.mxu1 %v6118_v50  ;;  %v3274_v63 = vrot.slane %v3272_v56, 1  ;;  %v6162_v56 = vld [vmem:[%s6315_s21 + $0x50] sm:$0xff]  }
  0xd6   : > { %v3246_v44 = vor.u32 %v3244_v38, %v3242_v33  ;;  %v6145_v33 = vld [vmem:[%s6315_s21 + $0x50] sm:$0xff]  }
  0xd7   : > { %5771 = vmatpush3.bf16.msra.mxu0 %v6111_v41  ;;  %v3252_v41 = vshrl.u32 %v6130_v31, 16  ;;  %v6153_v31 = vld [vmem:[%s8045_s1 + $0x208] sm:$0xff]  }
  0xd8   : > { %5772 = vmatprep.subr.bf16.mxu0 %v6117_v57  ;;  %5811 = vmatpush3.bf16.msra.mxu1 %v6118_v50  ;;  %v6132_v50 = vld [vmem:[%s8045_s1 + $0x230] sm:$0xff]   ;;  %v3251_v52 = vsel %vm792_vm0, %v3246_v44, %v3250_v45 }
  0xd9   : > { %5709 = vmatmul.mubr.bf16.gmra.mxu0 %v2080_v62  ;;  %5812 = vmatprep.subr.bf16.mxu1 %v6123_v61  ;;  %v3254_v48 = vor.u32 %v3252_v41, %v3250_v45  ;;  %v3270_v62 = vor.u32 %v3268_v55, %v3266_v58  ;;  %v6158_v41 = vld [vmem:[%s8045_s1 + $0x200] sm:$0xff]   ;;  %v6157_v44 = vld [vmem:[%s6315_s21 + $0x78] ss:$0 sps:$4 sm:$0x11]   ;;  %v3318_v45 = vor.u32 %v3316_v39, %v3314_v42 }
  0xda   : > { %5749 = vmatmul.mubr.bf16.gmra.mxu1 %v2495_v1  ;;  %5712 = vmatprep.mubr.bf16.mxu0 %v2088_v2  ;;  %v6135_v1 = vld [vmem:[%s6315_s21 + $0x30] sm:$0xff]   ;;  %v6138_v2 = vld [vmem:[%s6315_s21 + $0x38] sm:$0xff]   ;;  %v3328_v51 = vshll.u32 %v6157_v44, 16  ;;  %v6751_v55 = vld [vmem:[%s6315_s21 + $0x48] sm:$0xff]  }
  0xdb   : > { %5752 = vmatprep.mubr.bf16.mxu1 %v2497_v5  ;;  %5773 = vmatpush3.bf16.msra.mxu0 %v6117_v57  ;;  %v3259_v57 = vsel %vm792_vm0, %v3254_v48, %v3258_v49  ;;  %v3276_v5 = vshrl.u32 %v6139_v46, 16  ;;  %v3275_v7 = vsel %vm792_vm0, %v3270_v62, %v3274_v63  ;;  %v6154_v48 = vld [vmem:[%s6315_s21 + $0x68] sm:$0xff]   ;;  %v3711_v62 = vrot.slane %v6162_v56, 1 }
  0xdc   : > { %5813 = vmatpush3.bf16.msra.mxu1 %v6123_v61  ;;  %5774 = vmatprep.subr.bf16.mxu0 %v6124_v4  ;;  %v6137_v61 = vld [vmem:[%s8045_s1 + $0x228] sm:$0xff]  }
  0xdd   : > { %5814 = vmatprep.subr.bf16.mxu1 %v6125_v9  ;;  %v3278_v12 = vor.u32 %v3276_v5, %v3274_v63  ;;  %v6156_v63 = vld [vmem:[%s6315_s21 + $0x70] sm:$0xff]  }
  0xdf   : > { %5775 = vmatpush3.bf16.msra.mxu0 %v6124_v4  ;;  %v3267_v4 = vsel %vm792_vm0, %v3262_v60, %v3266_v58  ;;  %v3283_v20 = vsel %vm792_vm0, %v3278_v12, %v3282_v10  ;;  %v3330_v58 = vrot.slane %v3328_v51, 1  ;;  %v6167_v12 = vld [vmem:[%s6315_s21 + $0x38] sm:$0xff]  }
  0xe0   : > { %5815 = vmatpush3.bf16.msra.mxu1 %v6125_v9  ;;  %5840 = vmatprep.subr.bf16.mxu0 %v6681_v17  ;;  %v3288_v9 = vshll.u32 %v6144_v0, 16  ;;  %v6163_v0 = vld [vmem:[%s6315_s21 + $0x28] sm:$0xff]  }
  0xe1   : > { %5713 = vmatmul.mubr.bf16.gmra.mxu0 %v2096_v19  ;;  %5880 = vmatprep.subr.bf16.mxu1 %v6681_v17  ;;  %v3296_v19 = vshll.u32 %v6146_v11, 16 }
  0xe2   : > { %5753 = vmatmul.mubr.bf16.gmra.mxu1 %v2499_v22  ;;  %5716 = vmatprep.mubr.bf16.mxu0 %v2104_v23  ;;  %v3290_v15 = vrot.slane %v3288_v9, 1  ;;  %v6148_v23 = vld [vmem:[%s8045_s1 + $0x210] sm:$0xff]  }
  0xe3   : > { %5756 = vmatprep.mubr.bf16.mxu1 %v2501_v25  ;;  %v3304_v25 = vshll.u32 %v6150_v16, 16  ;;  %v3298_v26 = vrot.slane %v3296_v19, 1 }
  0xe4   : > { %v3291_v22 = vsel %vm792_vm0, %v3286_v14, %v3290_v15  ;;  %v3294_v28 = vor.u32 %v3292_v21, %v3290_v15  ;;  %v6168_v15 = vld [vmem:[%s6315_s21 + $0x68] sm:$0xff]   ;;  %v3705_v21 = vrot.slane %v6167_v12, 1 }
  0xe5   : > { %v3302_v29 = vor.u32 %v3300_v24, %v3298_v26  ;;  %v3306_v30 = vrot.slane %v3304_v25, 1  ;;  %v3717_v24 = vrot.slane %v6168_v15, 1 }
  0xe7   : > { %v3307_v38 = vsel %vm792_vm0, %v3302_v29, %v3306_v30 }
  0xe9   : > { %5717 = vmatmul.mubr.bf16.gmra.mxu0 %v2112_v36  ;;  %v3299_v36 = vsel %vm792_vm0, %v3294_v28, %v3298_v26 }
  0xea   : > { %5757 = vmatmul.mubr.bf16.gmra.mxu1 %v2503_v37  ;;  %5776 = vmatprep.mubr.bf16.mxu0 %v6126_v34  ;;  %v6149_v34 = vld [vmem:[%s6315_s21 + $0x58] sm:$0xff]   ;;  %v3308_v37 = vshrl.u32 %v6150_v16, 16  ;;  %v6169_v16 = vld [vmem:[%s6315_s21 + $0x40] sm:$0xff]  }
  0xeb   : > { %5816 = vmatprep.mubr.bf16.mxu1 %v3243_v40  ;;  %v3320_v40 = vshll.u32 %v6155_v32, 16  ;;  %v3707_v25 = vrot.slane %v6169_v16, 1 }
  0xec   : > { %v3310_v43 = vor.u32 %v3308_v37, %v3306_v30 }
  0xed   : > { %v3322_v46 = vrot.slane %v3320_v40, 1  ;;  %v3708_v35 = vsel %vm1259_vm1, %v3705_v21, %v3707_v25 }
  0xee   : > { %v3315_v49 = vsel %vm792_vm0, %v3310_v43, %v3314_v42 }
  0xef   : > { %v3323_v54 = vsel %vm792_vm0, %v3318_v45, %v3322_v46 }
  0xf1   : > { %5777 = vmatmul.mubr.bf16.vlgmr.msra.gmra.mxu0 %v6129_v47  ;;  %v6151_v47 = vld [vmem:[%s6315_s21 + $0x60] sm:$0xff]  }
  0xf2   : > { %5817 = vmatmul.mubr.bf16.vlgmr.msra.gmra.mxu1 %v3251_v52  ;;  %5841 = vmatpush3.bf16.msra.mxu0 %v6681_v17  ;;  %v6159_v52 = vld [vmem:[%s6315_s21 + $0x18] sm:$0xfe]  }
  0xf3   : > { %5842 = vmatprep.subr.bf16.mxu0 %v6132_v50  ;;  %5780 = vmatprep.mubr.bf16.mxu0 %v6133_v53  ;;  %v6160_v53 = vld [vmem:[%s6315_s21 + $0x20] sm:$0xff]   ;;  %v3698_v59 = vrot.slane %v6159_v52, 1 }
  0xf4   : > { %5820 = vmatprep.mubr.bf16.mxu1 %v3259_v57  ;;  %5888 = vmatpush3.bf16.msra.mxu1 %v6681_v17  ;;  %v6140_v17 = vld [vmem:[%s6315_s21 + $0x40] sm:$0xff]   ;;  %v3699_v60 = vrot.slane %v6160_v53, 1 }
  0xf5   : > { %5881 = vmatprep.subr.bf16.mxu1 %v6132_v50 }
  0xf6   : > { %5843 = vmatpush3.bf16.msra.mxu0 %v6132_v50 }
  0xf7   : > { %5844 = vmatprep.subr.bf16.mxu0 %v6137_v61 }
  0xf8   : > { %5889 = vmatpush3.bf16.msra.mxu1 %v6132_v50  ;;  %v3324_v50 = vshrl.u32 %v6155_v32, 16 }
  0xf9   : > { %5781 = vmatmul.mubr.bf16.gmra.mxu0 %v6135_v1  ;;  %5882 = vmatprep.subr.bf16.mxu1 %v6137_v61 }
  0xfa   : > { %5821 = vmatmul.mubr.bf16.gmra.mxu1 %v3267_v4  ;;  %5845 = vmatpush3.bf16.msra.mxu0 %v6137_v61  ;;  %v3326_v57 = vor.u32 %v3324_v50, %v3322_v46  ;;  %v6165_v4 = vld [vmem:[%s6315_s21 + $0x30] sm:$0xff]  }
  0xfb   : > { %5784 = vmatprep.mubr.bf16.mxu0 %v6138_v2  ;;  %5824 = vmatprep.mubr.bf16.mxu1 %v3275_v7  ;;  %v3700_v2 = vsel %vm1259_vm1, %v3698_v59, %v3699_v60  ;;  %v3701_v7 = vrot.slane %v6163_v0, 1  ;;  %v3703_v9 = vrot.slane %v6165_v4, 1 }
  0xfc   : > { %5846 = vmatprep.subr.bf16.mxu0 %v6142_v6  ;;  %5890 = vmatpush3.bf16.msra.mxu1 %v6137_v61  ;;  %v3709_v61 = vrot.slane %v6751_v55, 1  ;;  %v3331_v1 = vsel %vm792_vm0, %v3326_v57, %v3330_v58 }
  0xfd   : > { %5883 = vmatprep.subr.bf16.mxu1 %v6142_v6  ;;  %v3702_v11 = vsel %vm1259_vm1, %v3699_v60, %v3701_v7  ;;  %v3704_v14 = vsel %vm1259_vm1, %v3701_v7, %v3703_v9 }
  0xfe   : > { %5847 = vmatpush3.bf16.msra.mxu0 %v6142_v6  ;;  %v3712_v5 = vsel %vm1259_vm1, %v3709_v61, %v3711_v62 }
  0xff   : > { %5848 = vmatprep.subr.bf16.mxu0 %v6147_v13 }
 0x100   : > { %5891 = vmatpush3.bf16.msra.mxu1 %v6142_v6  ;;  %v6166_v6 = vld [vmem:[%s6315_s21 + $0x60] sm:$0xff]  }
 0x101   : > { %5785 = vmatmul.mubr.bf16.gmra.mxu0 %v6140_v17  ;;  %5884 = vmatprep.subr.bf16.mxu1 %v6147_v13  ;;  %v3715_v10 = vrot.slane %v6166_v6, 1 }
 0x102   : > { %5825 = vmatmul.mubr.bf16.gmra.mxu1 %v3283_v20  ;;  %5788 = vmatprep.mubr.bf16.mxu0 %v6143_v18  ;;  %v6170_v18 = vld [vmem:[%s6315_s21 + $0x70] sm:$0xff]  }
 0x103   : > { %5828 = vmatprep.mubr.bf16.mxu1 %v3291_v22  ;;  %5849 = vmatpush3.bf16.msra.mxu0 %v6147_v13  ;;  %v3716_v17 = vsel %vm1259_vm1, %v3713_v8, %v3715_v10  ;;  %v3719_v27 = vrot.slane %v6170_v18, 1 }
 0x104   : > { %5850 = vmatprep.subr.bf16.mxu0 %v6148_v23  ;;  %5892 = vmatpush3.bf16.msra.mxu1 %v6147_v13  ;;  %v3714_v13 = vsel %vm1259_vm1, %v3711_v62, %v3713_v8 }
 0x105   : > { %5885 = vmatprep.subr.bf16.mxu1 %v6148_v23 }
 0x107   : > { %5851 = vmatpush3.bf16.msra.mxu0 %v6148_v23 }
 0x108   : > { %5852 = vmatprep.subr.bf16.mxu0 %v6153_v31  ;;  %5893 = vmatpush3.bf16.msra.mxu1 %v6148_v23 }
 0x109   : > { %5789 = vmatmul.mubr.bf16.gmra.mxu0 %v6145_v33  ;;  %5886 = vmatprep.subr.bf16.mxu1 %v6153_v31 }
 0x10a   : > { %5829 = vmatmul.mubr.bf16.gmra.mxu1 %v3299_v36  ;;  %5792 = vmatprep.mubr.bf16.mxu0 %v6149_v34  ;;  %v3718_v34 = vsel %vm1259_vm1, %v3715_v10, %v3717_v24  ;;  %v6171_v36 = vld [vmem:[%s6315_s21 + $0x78] ss:$0 sps:$4 sm:$0x11]  }
 0x10b   : > { %5832 = vmatprep.mubr.bf16.mxu1 %v3307_v38  ;;  %5853 = vmatpush3.bf16.msra.mxu0 %v6153_v31  ;;  %v3720_v38 = vsel %vm1259_vm1, %v3717_v24, %v3719_v27  ;;  %v3721_v44 = vrot.slane %v6171_v36, 1 }
 0x10c   : > { %5894 = vmatpush3.bf16.msra.mxu1 %v6153_v31  ;;  %5854 = vmatprep.subr.bf16.mxu0 %v6158_v41  ;;  %v3706_v31 = vsel %vm1259_vm1, %v3703_v9, %v3705_v21 }
 0x10d   : > { %5887 = vmatprep.subr.bf16.mxu1 %v6158_v41  ;;  %v3722_v52 = vsel %vm1259_vm1, %v3719_v27, %v3721_v44 }
 0x10f   : > { %5855 = vmatpush3.bf16.msra.mxu0 %v6158_v41 }
 0x110   : > { %5895 = vmatpush3.bf16.msra.mxu1 %v6158_v41 }
 0x111   : > { %5793 = vmatmul.mubr.bf16.gmra.mxu0 %v6151_v47 }
 0x112   : > { %5833 = vmatmul.mubr.bf16.gmra.mxu1 %v3315_v49  ;;  %5796 = vmatprep.mubr.bf16.mxu0 %v6154_v48  ;;  %v3710_v49 = vsel %vm1259_vm1, %v3707_v25, %v3709_v61 }
 0x113   : > { %5836 = vmatprep.mubr.bf16.mxu1 %v3323_v54 }
 0x119   : > { %5797 = vmatmul.mubr.bf16.gmra.mxu0 %v6156_v63 }
 0x11a   : > { %5837 = vmatmul.mubr.bf16.gmra.mxu1 %v3331_v1  ;;  %5856 = vmatprep.mubr.bf16.mxu0 %v3700_v2 }
 0x11b   : > { %5868 = vmatprep.mubr.bf16.mxu1 %v3712_v5 }
 0x121   : > { %v5538_v19 = vpop.f32.mrf.mxu0  ;;  %5857 = vmatmul.mubr.bf16.vlgmr.msra.gmra.mxu0 %v3702_v11 }
 0x122   : > { %v5578_v20 = vpop.f32.mrf.mxu1  ;;  %5869 = vmatmul.mubr.bf16.vlgmr.msra.gmra.mxu1 %v3714_v13  ;;  %5860 = vmatprep.mubr.bf16.mxu0 %v3704_v14 }
 0x123   : > { %v6773_v22 = vadd.f32 %v5578_v20, %v5538_v19  ;;  %v568_v23 = vpop.f32.mrf.mxu0  ;;  %5872 = vmatprep.mubr.bf16.mxu1 %v3716_v17 }
 0x124   : > { %v987_v26 = vpop.f32.mrf.mxu1 }
 0x125   : > { %v6775_v28 = vadd.f32 %v987_v26, %v568_v23  ;;  %v5539_v29 = vpop.f32.mrf.mxu0 }
 0x126   : > { %v5579_v30 = vpop.f32.mrf.mxu1 }
 0x127   : > { %v6778_v32 = vadd.f32 %v5579_v30, %v5539_v29  ;;  %v571_v33 = vpop.f32.mrf.mxu0 }
 0x128   : > { %v990_v37 = vpop.f32.mrf.mxu1 }
 0x129   : > { %v6784_v39 = vadd.f32 %v990_v37, %v571_v33  ;;  %v5542_v40 = vpop.f32.mrf.mxu0  ;;  %5861 = vmatmul.mubr.bf16.gmra.mxu0 %v3706_v31 }
 0x12a   : > { %v5582_v41 = vpop.f32.mrf.mxu1  ;;  %5873 = vmatmul.mubr.bf16.gmra.mxu1 %v3718_v34  ;;  %5864 = vmatprep.mubr.bf16.mxu0 %v3708_v35 }
 0x12b   : > { %v6786_v42 = vadd.f32 %v5582_v41, %v5542_v40  ;;  %v584_v43 = vpop.f32.mrf.mxu0  ;;  %5876 = vmatprep.mubr.bf16.mxu1 %v3720_v38 }
 0x12c   : > { %v1003_v45 = vpop.f32.mrf.mxu1 }
 0x12d   : > { %v6788_v46 = vadd.f32 %v1003_v45, %v584_v43  ;;  %v5543_v47 = vpop.f32.mrf.mxu0 }
 0x12e   : > { %v5583_v48 = vpop.f32.mrf.mxu1 }
 0x12f   : > { %v6793_v50 = vadd.f32 %v5583_v48, %v5543_v47  ;;  %v587_v51 = vpop.f32.mrf.mxu0 }
 0x130   : > { %v1006_v53 = vpop.f32.mrf.mxu1 }
 0x131   : > { %v6796_v54 = vadd.f32 %v1006_v53, %v587_v51  ;;  %v5546_v56 = vpop.f32.mrf.mxu0  ;;  %5865 = vmatmul.mubr.bf16.gmra.mxu0 %v3710_v49 }
 0x132   : > { %v5586_v57 = vpop.f32.mrf.mxu1  ;;  %5877 = vmatmul.mubr.bf16.gmra.mxu1 %v3722_v52 }
 0x133   : > { %v6798_v58 = vadd.f32 %v5586_v57, %v5546_v56  ;;  %v600_v59 = vpop.f32.mrf.mxu0 }
 0x134   : > { %v1019_v60 = vpop.f32.mrf.mxu1 }
 0x135   : > { %v6800_v62 = vadd.f32 %v1019_v60, %v600_v59  ;;  %v5547_v55 = vpop.f32.mrf.mxu0 }
 0x136   : > { %v5587_v61 = vpop.f32.mrf.mxu1 }
 0x137   : > { %v6802_v63 = vadd.f32 %v5587_v61, %v5547_v55  ;;  %v603_v0 = vpop.f32.mrf.mxu0 }
 0x138   : > { %v1022_v1 = vpop.f32.mrf.mxu1 }
 0x139   : > { %v6804_v2 = vadd.f32 %v1022_v1, %v603_v0  ;;  %v5550_v3 = vpop.f32.mrf.mxu0 }
 0x13a   : > { %v5590_v4 = vpop.f32.mrf.mxu1 }
 0x13b   : > { %v6806_v5 = vadd.f32 %v5590_v4, %v5550_v3  ;;  %v616_v6 = vpop.f32.mrf.mxu0 }
 0x13c   : > { %v1035_v7 = vpop.f32.mrf.mxu1 }
 0x13d   : > { %v6808_v8 = vadd.f32 %v1035_v7, %v616_v6  ;;  %v5551_v9 = vpop.f32.mrf.mxu0 }
 0x13e   : > { %v5591_v10 = vpop.f32.mrf.mxu1 }
 0x13f   : > { %v6810_v11 = vadd.f32 %v5591_v10, %v5551_v9  ;;  %v619_v12 = vpop.f32.mrf.mxu0 }
 0x140   : > { %v1038_v13 = vpop.f32.mrf.mxu1 }
 0x141   : > { %v6812_v14 = vadd.f32 %v1038_v13, %v619_v12  ;;  %v5554_v15 = vpop.f32.mrf.mxu0 }
 0x142   : > { %v5594_v16 = vpop.f32.mrf.mxu1 }
 0x143   : > { %v6814_v17 = vadd.f32 %v5594_v16, %v5554_v15  ;;  %v632_v18 = vpop.f32.mrf.mxu0 }
 0x144   : > { %v1051_v19 = vpop.f32.mrf.mxu1 }
 0x145   : > { %v6816_v20 = vadd.f32 %v1051_v19, %v632_v18  ;;  %v5555_v21 = vpop.f32.mrf.mxu0 }
 0x146   : > { %v5595_v23 = vpop.f32.mrf.mxu1 }
 0x147   : > { %v6818_v24 = vadd.f32 %v5595_v23, %v5555_v21  ;;  %v635_v25 = vpop.f32.mrf.mxu0 }
 0x148   : > { %v1054_v26 = vpop.f32.mrf.mxu1 }
 0x149   : > { %v6820_v27 = vadd.f32 %v1054_v26, %v635_v25  ;;  %v5558_v29 = vpop.f32.mrf.mxu0 }
 0x14a   : > { %v5598_v30 = vpop.f32.mrf.mxu1 }
 0x14b   : > { %v6822_v31 = vadd.f32 %v5598_v30, %v5558_v29  ;;  %v648_v33 = vpop.f32.mrf.mxu0 }
 0x14c   : > { %v1067_v34 = vpop.f32.mrf.mxu1 }
 0x14d   : > { %v6824_v35 = vadd.f32 %v1067_v34, %v648_v33  ;;  %v5559_v36 = vpop.f32.mrf.mxu0 }
 0x14e   : > { %v5599_v37 = vpop.f32.mrf.mxu1 }
 0x14f   : > { %v6826_v38 = vadd.f32 %v5599_v37, %v5559_v36  ;;  %v651_v40 = vpop.f32.mrf.mxu0 }
 0x150   : > { %v1070_v41 = vpop.f32.mrf.mxu1 }
 0x151   : > { %v6828_v43 = vadd.f32 %v1070_v41, %v651_v40  ;;  %v5618_v44 = vpop.f32.mrf.mxu0 }
 0x152   : > { %v1500_v45 = vadd.f32 %v5618_v44, %v6773_v22  ;;  %v5658_v47 = vpop.f32.mrf.mxu1 }
 0x153   : > { %v1379_v48 = vpop.f32.mrf.mxu0 }
 0x154   : > { %v6831_v49 = vadd.f32 %v5658_v47, %v1500_v45  ;;  %v1498_v51 = vadd.f32 %v1379_v48, %v6775_v28  ;;  %v1741_v52 = vpop.f32.mrf.mxu1 }
 0x155   : > { %v5619_v53 = vpop.f32.mrf.mxu0 }
 0x156   : > { %v6834_v56 = vadd.f32 %v1741_v52, %v1498_v51  ;;  %v1501_v57 = vadd.f32 %v5619_v53, %v6778_v32  ;;  %v5659_v59 = vpop.f32.mrf.mxu1 }
 0x157   : > { %v1382_v60 = vpop.f32.mrf.mxu0 }
 0x158   : > { %v6837_v55 = vadd.f32 %v5659_v59, %v1501_v57  ;;  %v1499_v61 = vadd.f32 %v1382_v60, %v6784_v39  ;;  %v1744_v0 = vpop.f32.mrf.mxu1 }
 0x159   : > { %v5622_v22 = vpop.f32.mrf.mxu0 }
 0x15a   : > { %v6840_v1 = vadd.f32 %v1744_v0, %v1499_v61  ;;  %v1504_v3 = vadd.f32 %v5622_v22, %v6786_v42  ;;  %v5662_v4 = vpop.f32.mrf.mxu1 }
 0x15b   : > { %v1395_v28 = vpop.f32.mrf.mxu0 }
 0x15c   : > { %v6843_v6 = vadd.f32 %v5662_v4, %v1504_v3  ;;  %v1502_v7 = vadd.f32 %v1395_v28, %v6788_v46  ;;  %v1757_v9 = vpop.f32.mrf.mxu1 }
 0x15d   : > { %v5623_v32 = vpop.f32.mrf.mxu0 }
 0x15e   : > { %v6846_v10 = vadd.f32 %v1757_v9, %v1502_v7  ;;  %v1505_v12 = vadd.f32 %v5623_v32, %v6793_v50  ;;  %v5663_v13 = vpop.f32.mrf.mxu1 }
 0x15f   : > { %v1398_v39 = vpop.f32.mrf.mxu0 }
 0x160   : > { %v6849_v15 = vadd.f32 %v5663_v13, %v1505_v12  ;;  %v1503_v16 = vadd.f32 %v1398_v39, %v6796_v54  ;;  %v1760_v18 = vpop.f32.mrf.mxu1 }
 0x161   : > { %v5626_v42 = vpop.f32.mrf.mxu0 }
 0x162   : > { %v6852_v19 = vadd.f32 %v1760_v18, %v1503_v16  ;;  %v1508_v21 = vadd.f32 %v5626_v42, %v6798_v58  ;;  %v5666_v23 = vpop.f32.mrf.mxu1 }
 0x163   : > { %v1411_v46 = vpop.f32.mrf.mxu0 }
 0x164   : > { %v6855_v25 = vadd.f32 %v5666_v23, %v1508_v21  ;;  %v1506_v26 = vadd.f32 %v1411_v46, %v6800_v62  ;;  %v1773_v29 = vpop.f32.mrf.mxu1 }
 0x165   : > { %v5627_v50 = vpop.f32.mrf.mxu0 }
 0x166   : > { %v6858_v30 = vadd.f32 %v1773_v29, %v1506_v26  ;;  %v1509_v33 = vadd.f32 %v5627_v50, %v6802_v63  ;;  %v5667_v34 = vpop.f32.mrf.mxu1 }
 0x167   : > { %v1414_v54 = vpop.f32.mrf.mxu0 }
 0x168   : > { %v6861_v36 = vadd.f32 %v5667_v34, %v1509_v33  ;;  %v1507_v37 = vadd.f32 %v1414_v54, %v6804_v2  ;;  %v1776_v40 = vpop.f32.mrf.mxu1 }
 0x169   : > { %v5630_v58 = vpop.f32.mrf.mxu0 }
 0x16a   : > { %v6864_v41 = vadd.f32 %v1776_v40, %v1507_v37  ;;  %v1512_v44 = vadd.f32 %v5630_v58, %v6806_v5  ;;  %v5670_v45 = vpop.f32.mrf.mxu1 }
 0x16b   : > { %v1427_v62 = vpop.f32.mrf.mxu0 }
 0x16c   : > { %v6867_v47 = vadd.f32 %v5670_v45, %v1512_v44  ;;  %v1510_v48 = vadd.f32 %v1427_v62, %v6808_v8  ;;  %v1789_v51 = vpop.f32.mrf.mxu1 }
 0x16d   : > { %v5631_v63 = vpop.f32.mrf.mxu0 }
 0x16e   : > { %v6870_v52 = vadd.f32 %v1789_v51, %v1510_v48  ;;  %v1513_v53 = vadd.f32 %v5631_v63, %v6810_v11  ;;  %v5671_v57 = vpop.f32.mrf.mxu1 }
 0x16f   : > { %v1430_v2 = vpop.f32.mrf.mxu0 }
 0x170   : > { %v6873_v59 = vadd.f32 %v5671_v57, %v1513_v53  ;;  %v1511_v60 = vadd.f32 %v1430_v2, %v6812_v14  ;;  %v1792_v61 = vpop.f32.mrf.mxu1 }
 0x171   : > { %v5634_v5 = vpop.f32.mrf.mxu0 }
 0x172   : > { %v6876_v0 = vadd.f32 %v1792_v61, %v1511_v60  ;;  %v1516_v22 = vadd.f32 %v5634_v5, %v6814_v17  ;;  %v5674_v3 = vpop.f32.mrf.mxu1 }
 0x173   : > { %v1443_v8 = vpop.f32.mrf.mxu0 }
 0x174   : > { %v6879_v4 = vadd.f32 %v5674_v3, %v1516_v22  ;;  %v1514_v28 = vadd.f32 %v1443_v8, %v6816_v20  ;;  %v1805_v7 = vpop.f32.mrf.mxu1 }
 0x175   : > { %v5635_v11 = vpop.f32.mrf.mxu0 }
 0x176   : > { %v6882_v9 = vadd.f32 %v1805_v7, %v1514_v28  ;;  %v1517_v32 = vadd.f32 %v5635_v11, %v6818_v24  ;;  %v5675_v12 = vpop.f32.mrf.mxu1 }
 0x177   : > { %v1446_v14 = vpop.f32.mrf.mxu0 }
 0x178   : > { %v6885_v13 = vadd.f32 %v5675_v12, %v1517_v32  ;;  %v1515_v39 = vadd.f32 %v1446_v14, %v6820_v27  ;;  %v1808_v16 = vpop.f32.mrf.mxu1 }
 0x179   : > { %v5638_v17 = vpop.f32.mrf.mxu0 }
 0x17a   : > { %v6888_v18 = vadd.f32 %v1808_v16, %v1515_v39  ;;  %v1520_v42 = vadd.f32 %v5638_v17, %v6822_v31  ;;  %v5678_v21 = vpop.f32.mrf.mxu1 }
 0x17b   : > { %v1459_v20 = vpop.f32.mrf.mxu0 }
 0x17c   : > { %v6891_v23 = vadd.f32 %v5678_v21, %v1520_v42  ;;  %v1518_v46 = vadd.f32 %v1459_v20, %v6824_v35  ;;  %v1821_v26 = vpop.f32.mrf.mxu1  ;;  %v4128_v21 = vlaneseq }
 0x17d   : > { %v5639_v24 = vpop.f32.mrf.mxu0 }
 0x17e   : > { %v6894_v29 = vadd.f32 %v1821_v26, %v1518_v46  ;;  %v1521_v50 = vadd.f32 %v5639_v24, %v6826_v38  ;;  %v5679_v33 = vpop.f32.mrf.mxu1 }
 0x17f   : > { %v1462_v27 = vpop.f32.mrf.mxu0 }
 0x180   : > { %v6897_v34 = vadd.f32 %v5679_v33, %v1521_v50  ;;  %v1519_v54 = vadd.f32 %v1462_v27, %v6828_v43  ;;  %v1824_v37 = vpop.f32.mrf.mxu1  ;;  %v6933_v27 = vshrl.u32 %v4128_v21, 7 }
 0x181   : > { %v5698_v31 = vpop.f32.mrf.mxu0 }
 0x182   : > { %v6900_v40 = vadd.f32 %v1824_v37, %v1519_v54  ;;  %v2328_v58 = vadd.f32 %v5698_v31, %v6831_v49  ;;  %v5738_v44 = vpop.f32.mrf.mxu1 }
 0x183   : > { %v2207_v35 = vpop.f32.mrf.mxu0 }
 0x184   : > { %v6903_v45 = vadd.f32 %v5738_v44, %v2328_v58  ;;  %v2326_v62 = vadd.f32 %v2207_v35, %v6834_v56  ;;  %v2598_v48 = vpop.f32.mrf.mxu1 }
 0x185   : > { %v5699_v38 = vpop.f32.mrf.mxu0 }
 0x186   : > { %v6906_v51 = vadd.f32 %v2598_v48, %v2326_v62  ;;  %v2329_v63 = vadd.f32 %v5699_v38, %v6837_v55  ;;  %v5739_v53 = vpop.f32.mrf.mxu1  ;;  %v6942_v62 = vadd.s32 16, %v6933_v27 }
 0x187   : > { %v2210_v43 = vpop.f32.mrf.mxu0 }
 0x188   : > { %v6909_v57 = vadd.f32 %v5739_v53, %v2329_v63  ;;  %v2327_v2 = vadd.f32 %v2210_v43, %v6840_v1  ;;  %v2601_v60 = vpop.f32.mrf.mxu1  ;;  %v6948_v53 = vadd.s32 112, %v6933_v27 }
 0x189   : > { %v5702_v49 = vpop.f32.mrf.mxu0 }
 0x18a   : > { %v6912_v61 = vadd.f32 %v2601_v60, %v2327_v2  ;;  %v2332_v5 = vadd.f32 %v5702_v49, %v6843_v6  ;;  %v5742_v22 = vpop.f32.mrf.mxu1  ;;  %v6954_v60 = vmul.u32.u64.low 2863311531, %v6942_v62  ;;  %v6955_v49 = vmul.u32.u64.high 2863311531, %v6942_v62, %v6954_v60 }
 0x18b   : > { %v2223_v56 = vpop.f32.mrf.mxu0 }
 0x18c   : > { %v6915_v3 = vadd.f32 %v5742_v22, %v2332_v5  ;;  %v2330_v8 = vadd.f32 %v2223_v56, %v6846_v10  ;;  %v2614_v28 = vpop.f32.mrf.mxu1 }
 0x18d   : > { %v5703_v55 = vpop.f32.mrf.mxu0 }
 0x18e   : > { %v6918_v7 = vadd.f32 %v2614_v28, %v2330_v8  ;;  %v2333_v11 = vadd.f32 %v5703_v55, %v6849_v15  ;;  %v5743_v32 = vpop.f32.mrf.mxu1  ;;  %v6961_v8 = vmul.u32.u64.low 2863311531, %v6948_v53  ;;  %v6962_v28 = vmul.u32.u64.high 2863311531, %v6948_v53, %v6961_v8 }
 0x18f   : > { %v2226_v1 = vpop.f32.mrf.mxu0 }
 0x190   : > { %8082 = vst [vmem:[#allocation8_spill] sm:$0xff] %v6918_v7  ;;  %v6921_v12 = vadd.f32 %v5743_v32, %v2333_v11  ;;  %v2331_v14 = vadd.f32 %v2226_v1, %v6852_v19  ;;  %v2617_v39 = vpop.f32.mrf.mxu1  ;;  %v6968_v32 = vadd.s32 96, %v6933_v27 }
 0x191   : > { %v5706_v6 = vpop.f32.mrf.mxu0 }
 0x192   : > { %8083 = vst [vmem:[#allocation9_spill] sm:$0xff] %v6921_v12  ;;  %v6924_v16 = vadd.f32 %v2617_v39, %v2331_v14  ;;  %v2336_v17 = vadd.f32 %v5706_v6, %v6855_v25  ;;  %v5746_v42 = vpop.f32.mrf.mxu1  ;;  %v6971_v14 = vadd.s32 24, %v6933_v27 }
 0x193   : > { %v2239_v10 = vpop.f32.mrf.mxu0 }
 0x194   : > { %8084 = vst [vmem:[#allocation10_spill] sm:$0xff] %v6924_v16  ;;  %v6927_v20 = vadd.f32 %v5746_v42, %v2336_v17  ;;  %v2334_v46 = vadd.f32 %v2239_v10, %v6858_v30  ;;  %v2630_v15 = vpop.f32.mrf.mxu1  ;;  %v6977_v42 = vmul.u32.u64.low 2863311531, %v6933_v27  ;;  %v6978_v10 = vmul.u32.u64.high 2863311531, %v6933_v27, %v6977_v42 }
 0x195   : > { %v5707_v26 = vpop.f32.mrf.mxu0 }
 0x196   : > { %8085 = vst [vmem:[#allocation11_spill] sm:$0xff] %v6927_v20  ;;  %v6930_v24 = vadd.f32 %v2630_v15, %v2334_v46  ;;  %v2337_v50 = vadd.f32 %v5707_v26, %v6861_v36  ;;  %v5747_v19 = vpop.f32.mrf.mxu1 }
 0x197   : > { %v2242_v33 = vpop.f32.mrf.mxu0 }
 0x198   : > { %8086 = vst [vmem:[#allocation12_spill] sm:$0xff] %v6930_v24  ;;  %v6935_v54 = vadd.f32 %v5747_v19, %v2337_v50  ;;  %v2335_v25 = vadd.f32 %v2242_v33, %v6864_v41  ;;  %v2633_v37 = vpop.f32.mrf.mxu1  ;;  %v6987_v26 = vmul.u32.u64.low 2863311531, %v6968_v32  ;;  %v6988_v50 = vmul.u32.u64.high 2863311531, %v6968_v32, %v6987_v26 }
 0x199   : > { %v5710_v31 = vpop.f32.mrf.mxu0 }
 0x19a   : > { %8087 = vst [vmem:[#allocation13_spill] sm:$0xff] %v6935_v54  ;;  %v6938_v58 = vadd.f32 %v2633_v37, %v2335_v25  ;;  %v2340_v30 = vadd.f32 %v5710_v31, %v6867_v47  ;;  %v5750_v44 = vpop.f32.mrf.mxu1  ;;  %v6992_v33 = vmul.u32.u64.low 2863311531, %v6971_v14  ;;  %v6993_v25 = vmul.u32.u64.high 2863311531, %v6971_v14, %v6992_v33 }
 0x19b   : > { %v2255_v35 = vpop.f32.mrf.mxu0 }
 0x19c   : > { %8088 = vst [vmem:[#allocation14_spill] sm:$0xff] %v6938_v58  ;;  %v6944_v36 = vadd.f32 %v5750_v44, %v2340_v30  ;;  %v2338_v48 = vadd.f32 %v2255_v35, %v6870_v52  ;;  %v2646_v38 = vpop.f32.mrf.mxu1  ;;  %v6999_v44 = vadd.s32 8, %v6933_v27  ;;  %v4313_v35 = vshrl.u32 %v6962_v28, 4 }
 0x19d   : > { %v5711_v63 = vpop.f32.mrf.mxu0  ;;  %v4159_v28 = vshrl.u32 %v6978_v10, 4  ;;  %v7165_v58 = vadd.s32 64, %v6933_v27 }
 0x19e   : > { %8089 = vst [vmem:[#allocation15_spill] sm:$0xff] %v6944_v36  ;;  %v6950_v41 = vadd.f32 %v2646_v38, %v2338_v48  ;;  %v2341_v43 = vadd.f32 %v5711_v63, %v6873_v59  ;;  %v5751_v2 = vpop.f32.mrf.mxu1 }
 0x19f   : > { %v2258_v47 = vpop.f32.mrf.mxu0  ;;  %v4160_v33 = vmul.u32 24, %v4159_v28 }
 0x1a0   : > { %8090 = vst [vmem:[#allocation16_spill] sm:$0xff] %v6950_v41  ;;  %v6957_v5 = vadd.f32 %v5751_v2, %v2341_v43  ;;  %v2339_v22 = vadd.f32 %v2258_v47, %v6876_v0  ;;  %v2649_v52 = vpop.f32.mrf.mxu1 }
 0x1a1   : > { %v5714_v56 = vpop.f32.mrf.mxu0 }
 0x1a2   : > { %8091 = vst [vmem:[#allocation17_spill] sm:$0xff] %v6957_v5  ;;  %v6964_v55 = vadd.f32 %v2649_v52, %v2339_v22  ;;  %v2344_v59 = vadd.f32 %v5714_v56, %v6879_v4  ;;  %v5754_v11 = vpop.f32.mrf.mxu1  ;;  %v6981_v4 = vadd.s32 120, %v6933_v27 }
 0x1a3   : > { %v2271_v1 = vpop.f32.mrf.mxu0  ;;  %v7016_v56 = vmul.u32.u64.low 2863311531, %v6999_v44  ;;  %v7017_v8 = vmul.u32.u64.high 2863311531, %v6999_v44, %v7016_v56 }
 0x1a4   : > { %8092 = vst [vmem:[#allocation18_spill] sm:$0xff] %v6964_v55  ;;  %v6973_v39 = vadd.f32 %v5754_v11, %v2344_v59  ;;  %v2342_v0 = vadd.f32 %v2271_v1, %v6882_v9  ;;  %v2662_v6 = vpop.f32.mrf.mxu1  ;;  %v4181_v9 = vshrl.u32 %v6955_v49, 4  ;;  %v7021_v59 = vadd.s32 48, %v6933_v27 }
 0x1a5   : > { %v5715_v17 = vpop.f32.mrf.mxu0  ;;  %v7006_v43 = vmul.u32.u64.low 2863311531, %v6981_v4  ;;  %v7007_v2 = vmul.u32.u64.high 2863311531, %v6981_v4, %v7006_v43 }
 0x1a6   : > { %8093 = vst [vmem:[#allocation19_spill] sm:$0xff] %v6973_v39  ;;  %v6983_v21 = vadd.f32 %v2662_v6, %v2342_v0  ;;  %v2345_v46 = vadd.f32 %v5715_v17, %v6885_v13  ;;  %v5755_v15 = vpop.f32.mrf.mxu1  ;;  %v4182_v60 = vmul.u32 24, %v4181_v9  ;;  %v4314_v6 = vmul.u32 24, %v4313_v35 }
 0x1a7   : > { %v2274_v19 = vpop.f32.mrf.mxu0  ;;  %v4291_v17 = vshrl.u32 %v6988_v50, 4  ;;  %v7175_v39 = vadd.s32 136, %v6933_v27 }
 0x1a8   : > { %8094 = vst [vmem:[#allocation20_spill] sm:$0xff] %v6983_v21  ;;  %v6995_v37 = vadd.f32 %v5755_v15, %v2345_v46  ;;  %v2343_v31 = vadd.f32 %v2274_v19, %v6888_v18  ;;  %v2665_v30 = vpop.f32.mrf.mxu1  ;;  %v7010_v18 = vadd.s32 104, %v6933_v27  ;;  %v7028_v42 = vsub.s32 %v6942_v62, %v4182_v60 }
 0x1a9   : > { %v5718_v13 = vpop.f32.mrf.mxu0  ;;  %v4192_v46 = vshrl.u32 %v6993_v25, 4  ;;  %v7049_v25 = vsub.s32 %v6948_v53, %v4314_v6 }
 0x1aa   : > { %8095 = vst [vmem:[#allocation21_spill] sm:$0xff] %v6995_v37  ;;  %v7002_v48 = vadd.f32 %v2665_v30, %v2343_v31  ;;  %v2348_v38 = vadd.f32 %v5718_v13, %v6891_v23  ;;  %v5758_v63 = vpop.f32.mrf.mxu1  ;;  %v7035_v19 = vmul.u32.u64.low 2863311531, %v7010_v18  ;;  %v7036_v9 = vmul.u32.u64.high 2863311531, %v7010_v18, %v7035_v19 }
 0x1ab   : > { %v2287_v47 = vpop.f32.mrf.mxu0  ;;  %v7041_v50 = vmul.u32.u64.low 2863311531, %v7021_v59  ;;  %v7042_v31 = vmul.u32.u64.high 2863311531, %v7021_v59, %v7041_v50  ;;  %8102 = vst [vmem:[#allocation28_spill] sm:$0xff] %v7049_v25  ;;  %v4324_v13 = vshrl.u32 %v7007_v2, 4  ;;  %vm4419_vm2 = vcmp.ne.s32.totalorder %v7028_v42, 0 }
 0x1ac   : > { %8096 = vst [vmem:[#allocation22_spill] sm:$0xff] %v7002_v48  ;;  %v7012_v49 = vadd.f32 %v5758_v63, %v2348_v38  ;;  %v2346_v22 = vadd.f32 %v2287_v47, %v6894_v29  ;;  %v2678_v52 = vpop.f32.mrf.mxu1  ;;  %vm4443_vm3 = vcmp.lt.s32.totalorder %v7028_v42, 0  ;;  %v4193_v38 = vmul.u32 24, %v4192_v46 }
 0x1ad   : > { %v5719_v23 = vpop.f32.mrf.mxu0  ;;  %v7057_v63 = vadd.s32 144, %v6933_v27  ;;  %v4170_v47 = vshrl.u32 %v7017_v8, 4  ;;  %v7065_v53 = vadd.s32 24, %v7028_v42  ;;  %v7068_v2 = vsub.s32 %v6933_v27, %v4160_v33  ;;  %vm7072_vm4 = vmand %vm4443_vm3, %vm4419_vm2 }
 0x1ae   : > { %8097 = vst [vmem:[#allocation23_spill] sm:$0xff] %v7012_v49  ;;  %v7023_v11 = vadd.f32 %v2678_v52, %v2346_v22  ;;  %v2349_v1 = vadd.f32 %v5719_v23, %v6897_v34  ;;  %v5759_v0 = vpop.f32.mrf.mxu1  ;;  %v4325_v23 = vmul.u32 24, %v4324_v13  ;;  %vm4431_vm5 = vcmp.ne.s32.totalorder %v7049_v25, 0  ;;  %v8219_v52 = vld [vmem:[#allocation9_spill] sm:$0xff] }
 0x1af   : > { %v2290_v29 = vpop.f32.mrf.mxu0  ;;  %v7083_v8 = vsub.s32 %v6971_v14, %v4193_v38  ;;  %vm4455_vm6 = vcmp.lt.s32.totalorder %v7049_v25, 0  ;;  %vm4417_vm7 = vcmp.ne.s32.totalorder %v7068_v2, 0  ;;  %vm4441_vm8 = vcmp.lt.s32.totalorder %v7068_v2, 0 }
 0x1b0   : > { %8098 = vst [vmem:[#allocation24_spill] sm:$0xff] %v7023_v11  ;;  %v7031_v15 = vadd.f32 %v5759_v0, %v2349_v1  ;;  %v2347_v10 = vadd.f32 %v2290_v29, %v6900_v40  ;;  %v2681_v26 = vpop.f32.mrf.mxu1  ;;  %v4292_v40 = vmul.u32 24, %v4291_v17  ;;  %v4171_v17 = vmul.u32 24, %v4170_v47  ;;  %vm7195_vm0 = vmand %vm4455_vm6, %vm4431_vm5 }
 0x1b1   : > { %v7038_v34 = vpop.f32.mrf.mxu0  ;;  %v7086_v1 = vmul.u32.u64.low 2863311531, %v7057_v63  ;;  %v7087_v0 = vmul.u32.u64.high 2863311531, %v7057_v63, %v7086_v1  ;;  %v7094_v29 = vadd.s32 32, %v6933_v27  ;;  %v7115_v33 = vsub.s32 %v6981_v4, %v4325_v23  ;;  %vm7213_vm1 = vmand %vm4441_vm8, %vm4417_vm7 }
 0x1b2   : > { %8099 = vst [vmem:[#allocation25_spill] sm:$0xff] %v7031_v15  ;;  %v7044_v62 = vadd.f32 %v2681_v26, %v2347_v10  ;;  %v7046_v30 = vpop.f32.mrf.mxu1  ;;  %v7077_v56 = vsub.s32 %v6968_v32, %v4292_v40  ;;  %v4302_v32 = vshrl.u32 %v7036_v9, 4  ;;  %v7103_v10 = vadd.s32 24, %v7049_v25 }
 0x1b3   : > { %8101 = vst [vmem:[#allocation27_spill] sm:$0xff] %v7046_v30  ;;  %v7052_v35 = vpop.f32.mrf.mxu0  ;;  %v4225_v26 = vshrl.u32 %v7042_v31, 4  ;;  %v7111_v9 = vadd.s32 24, %v7068_v2  ;;  %8111 = vst [vmem:[#allocation35_spill] sm:$0xff] %v7115_v33  ;;  %vm4420_vm11 = vcmp.ne.s32.totalorder %v7083_v8, 0  ;;  %v7125_v31 = vadd.s32 128, %v6933_v27 }
 0x1b4   : > { %8100 = vst [vmem:[#allocation26_spill] sm:$0xff] %v7044_v62  ;;  %v7059_v43 = vpop.f32.mrf.mxu1  ;;  %8107 = vst [vmem:[#allocation31_spill] sm:$0xff] %v7077_v56  ;;  %vm4429_vm9 = vcmp.ne.s32.totalorder %v7077_v56, 0  ;;  %vm4453_vm10 = vcmp.lt.s32.totalorder %v7077_v56, 0  ;;  %v7121_v40 = vadd.s32 24, %v7077_v56  ;;  %v7130_v38 = vsub.s32 %v6999_v44, %v4171_v17 }
 0x1b5   : > { %8103 = vst [vmem:[#allocation29_spill] sm:$0xff] %v7059_v43  ;;  %v7062_v60 = vpop.f32.mrf.mxu0  ;;  %8109 = vst [vmem:[#allocation33_spill] sm:$0xff] %v7103_v10  ;;  %v4303_v47 = vmul.u32 24, %v4302_v32  ;;  %v7133_v4 = vmul.u32.u64.low 2863311531, %v7094_v29  ;;  %v7134_v23 = vmul.u32.u64.high 2863311531, %v7094_v29, %v7133_v4  ;;  %vm4444_vm12 = vcmp.lt.s32.totalorder %v7083_v8, 0 }
 0x1b6   : > { %v7070_v22 = vpop.f32.mrf.mxu1  ;;  %8113 = vst [vmem:[#allocation37_spill] sm:$0xff] %v7121_v40  ;;  %v7140_v14 = vadd.s32 24, %v7083_v8  ;;  %v4226_v62 = vmul.u32 24, %v4225_v26  ;;  %v7143_v11 = vadd.s32 56, %v6933_v27  ;;  %vm4432_vm13 = vcmp.ne.s32.totalorder %v7115_v33, 0  ;;  %vm7231_vm2 = vmand %vm4453_vm10, %vm4429_vm9 }
 0x1b7   : > { %8104 = vst [vmem:[#allocation30_spill] sm:$0xff] %v7070_v22  ;;  %v7079_v28 = vpop.f32.mrf.mxu0  ;;  %vm4456_vm14 = vcmp.lt.s32.totalorder %v7115_v33, 0  ;;  %v7150_v44 = vadd.s32 152, %v6933_v27  ;;  %v7153_v17 = vadd.s32 40, %v6933_v27  ;;  %v7162_v49 = vadd.s32 80, %v6933_v27  ;;  %vm7246_vm5 = vmand %vm4444_vm12, %vm4420_vm11 }
 0x1b8   : > { %v7089_v6 = vpop.f32.mrf.mxu1  ;;  %v7158_v4 = vmul.u32.u64.low 2863311531, %v7125_v31  ;;  %v7159_v26 = vmul.u32.u64.high 2863311531, %v7125_v31, %v7158_v4  ;;  %vm4418_vm15 = vcmp.ne.s32.totalorder %v7130_v38, 0  ;;  %v7171_v37 = vsub.s32 %v7010_v18, %v4303_v47  ;;  %vm7262_vm8 = vmand %vm4456_vm14, %vm4432_vm13 }
 0x1b9   : > { %8108 = vst [vmem:[#allocation32_spill] sm:$0xff] %v7089_v6  ;;  %v7096_v46 = vpop.f32.mrf.mxu0  ;;  %v4357_v21 = vshrl.u32 %v7087_v0, 4  ;;  %v7180_v4 = vsub.s32 %v7021_v59, %v4226_v62  ;;  %v8123_v18 = vmov 0  ;;  %vm4442_vm3 = vcmp.lt.s32.totalorder %v7130_v38, 0 }
 0x1ba   : > { %v7107_v19 = vpop.f32.mrf.mxu1  ;;  %8119 = vst [vmem:[#allocation43_spill] sm:$0xff] %v7171_v37  ;;  %v8124_v18 = vsel %vm7195_vm0, 4294967295, %v8123_v18  ;;  %v7200_v59 = vmul.u32.u64.low 2863311531, %v7150_v44  ;;  %v7201_v62 = vmul.u32.u64.high 2863311531, %v7150_v44, %v7200_v59  ;;  %v4203_v30 = vshrl.u32 %v7134_v23, 4  ;;  %vm7280_vm11 = vmand %vm4442_vm3, %vm4418_vm15 }
 0x1bb   : > { %8110 = vst [vmem:[#allocation34_spill] sm:$0xff] %v7107_v19  ;;  %v7117_v50 = vpop.f32.mrf.mxu0  ;;  %8121 = vst [vmem:[#allocation45_spill] sm:$0xff] %v7180_v4  ;;  %v7218_v19 = vmul.u32.u64.low 2863311531, %v7162_v49  ;;  %v7219_v6 = vmul.u32.u64.high 2863311531, %v7162_v49, %v7218_v19  ;;  %v7222_v59 = vmul.u32.u64.low 2863311531, %v7165_v58  ;;  %v7223_v22 = vmul.u32.u64.high 2863311531, %v7165_v58, %v7222_v59 }
 0x1bc   : > { %8112 = vst [vmem:[#allocation36_spill] sm:$0xff] %v7117_v50  ;;  %v7127_v13 = vpop.f32.mrf.mxu1  ;;  %8125 = vst [vmem:[#allocation47_spill] sm:$0xff] %v8124_v18  ;;  %v4358_v43 = vmul.u32 24, %v4357_v21  ;;  %v7238_v19 = vadd.s32 72, %v6933_v27  ;;  %vm4430_vm6 = vcmp.ne.s32.totalorder %v7171_v37, 0  ;;  %vm4454_vm7 = vcmp.lt.s32.totalorder %v7171_v37, 0 }
 0x1bd   : > { %8114 = vst [vmem:[#allocation38_spill] sm:$0xff] %v7127_v13  ;;  %v7136_v1 = vpop.f32.mrf.mxu0  ;;  %v7267_v36 = vadd.s32 24, %v7115_v33  ;;  %vm4423_vm9 = vcmp.ne.s32.totalorder %v7180_v4, 0  ;;  %vm4447_vm10 = vcmp.lt.s32.totalorder %v7180_v4, 0  ;;  %v7285_v24 = vadd.s32 24, %v7171_v37  ;;  %vm7298_vm12 = vmand %vm4454_vm7, %vm4430_vm6 }
 0x1be   : > { %8115 = vst [vmem:[#allocation39_spill] sm:$0xff] %v7136_v1  ;;  %v7145_v15 = vpop.f32.mrf.mxu1  ;;  %v7303_v1 = vadd.s32 24, %v7180_v4  ;;  %v4204_v12 = vmul.u32 24, %v4203_v30  ;;  %vm7323_vm13 = vmand %vm4447_vm10, %vm4423_vm9  ;;  %v4368_v25 = vshrl.u32 %v7201_v62, 4 }
 0x1bf   : > { %8116 = vst [vmem:[#allocation40_spill] sm:$0xff] %v7145_v15  ;;  %v7155_v32 = vpop.f32.mrf.mxu0  ;;  %v7183_v15 = vmul.u32.u64.low 2863311531, %v7143_v11  ;;  %v7184_v13 = vmul.u32.u64.high 2863311531, %v7143_v11, %v7183_v15  ;;  %8140 = vst [vmem:[#allocation54_spill] sm:$0xff] %v7267_v36 }
 0x1c0   : > { %8117 = vst [vmem:[#allocation41_spill] sm:$0xff] %v7155_v32  ;;  %v7167_v48 = vpop.f32.mrf.mxu1  ;;  %v7204_v0 = vmul.u32.u64.low 2863311531, %v7153_v17  ;;  %v7205_v15 = vmul.u32.u64.high 2863311531, %v7153_v17, %v7204_v0  ;;  %8144 = vst [vmem:[#allocation56_spill] sm:$0xff] %v7285_v24  ;;  %v7289_v20 = vmul.u32.u64.low 2863311531, %v7175_v39  ;;  %v7290_v32 = vmul.u32.u64.high 2863311531, %v7175_v39, %v7289_v20 }
 0x1c1   : > { %8118 = vst [vmem:[#allocation42_spill] sm:$0xff] %v7167_v48  ;;  %v7177_v54 = vpop.f32.mrf.mxu0  ;;  %v7187_v48 = vadd.s32 88, %v6933_v27  ;;  %v8130_v0 = vmov 0  ;;  %8149 = vst [vmem:[#allocation59_spill] sm:$0xff] %v7303_v1  ;;  %v4247_v20 = vshrl.u32 %v7223_v22, 4 }
 0x1c2   : > { %8120 = vst [vmem:[#allocation44_spill] sm:$0xff] %v7177_v54  ;;  %v7189_v55 = vpop.f32.mrf.mxu1  ;;  %v8131_v0 = vsel %vm7231_vm2, 4294967295, %v8130_v0  ;;  %v4335_v54 = vshrl.u32 %v7159_v26, 4  ;;  %v7306_v26 = vmul.u32.u64.low 2863311531, %v7238_v19  ;;  %v7307_v50 = vmul.u32.u64.high 2863311531, %v7238_v19, %v7306_v26 }
 0x1c3   : > { %8122 = vst [vmem:[#allocation46_spill] sm:$0xff] %v7189_v55  ;;  %v7207_v47 = vpop.f32.mrf.mxu0  ;;  %8132 = vst [vmem:[#allocation50_spill] sm:$0xff] %v8131_v0  ;;  %v7253_v21 = vmul.u32.u64.low 2863311531, %v7187_v48  ;;  %v7254_v23 = vmul.u32.u64.high 2863311531, %v7187_v48, %v7253_v21  ;;  %v7328_v26 = vsub.s32 %v7057_v63, %v4358_v43  ;;  %v4214_v10 = vshrl.u32 %v7205_v15, 4 }
 0x1c4   : > { %8126 = vst [vmem:[#allocation48_spill] sm:$0xff] %v7207_v47  ;;  %v7225_v41 = vpop.f32.mrf.mxu1  ;;  %v7270_v47 = vadd.s32 24, %v7130_v38  ;;  %v4269_v0 = vshrl.u32 %v7219_v6, 4  ;;  %v7366_v6 = vsub.s32 %v7094_v29, %v4204_v12  ;;  %v4248_v37 = vmul.u32 24, %v4247_v20 }
 0x1c5   : > { %8129 = vst [vmem:[#allocation49_spill] sm:$0xff] %v7225_v41  ;;  %v7240_v5 = vpop.f32.mrf.mxu0  ;;  %8153 = vst [vmem:[#allocation61_spill] sm:$0xff] %v7328_v26  ;;  %vm4435_vm14 = vcmp.ne.s32.totalorder %v7328_v26, 0  ;;  %v4280_v62 = vshrl.u32 %v7254_v23, 4  ;;  %vm4459_vm15 = vcmp.lt.s32.totalorder %v7328_v26, 0  ;;  %v7379_v15 = vadd.s32 24, %v7328_v26 }
 0x1c6   : > { %8133 = vst [vmem:[#allocation51_spill] sm:$0xff] %v7240_v5  ;;  %v7256_v41 = vpop.f32.mrf.mxu1  ;;  %v8137_v5 = vmov 0  ;;  %v4215_v12 = vmul.u32 24, %v4214_v10  ;;  %vm4421_vm3 = vcmp.ne.s32.totalorder %v7366_v6, 0  ;;  %v4346_v24 = vshrl.u32 %v7290_v32, 4  ;;  %vm7443_vm10 = vmand %vm4459_vm15, %vm4435_vm14 }
 0x1c7   : > { %8136 = vst [vmem:[#allocation52_spill] sm:$0xff] %v7256_v41  ;;  %v8138_v5 = vsel %vm7262_vm8, 4294967295, %v8137_v5  ;;  %v7274_v21 = vpop.f32.mrf.mxu0  ;;  %8155 = vst [vmem:[#allocation63_spill] sm:$0xff] %v7379_v15  ;;  %v4281_v20 = vmul.u32 24, %v4280_v62  ;;  %vm4445_vm6 = vcmp.lt.s32.totalorder %v7366_v6, 0  ;;  %v7410_v32 = vadd.s32 24, %v7366_v6 }
 0x1c8   : > { %8139 = vst [vmem:[#allocation53_spill] sm:$0xff] %v8138_v5  ;;  %8141 = vst [vmem:[#allocation55_spill] sm:$0xff] %v7274_v21  ;;  %v7292_v16 = vpop.f32.mrf.mxu1  ;;  %v8146_v21 = vmov 0  ;;  %v7387_v5 = vadd.s32 176, %v6933_v27  ;;  %v7426_v62 = vsub.s32 %v7165_v58, %v4248_v37  ;;  %v3081_v55 = vadd.f32 %v7038_v34, %v6903_v45  ;;  %v8217_v41 = vld [vmem:[#allocation8_spill] sm:$0xff]  ;;  %v8245_v59 = vld [vmem:[#allocation42_spill] sm:$0xff] }
 0x1c9   : > { %8145 = vst [vmem:[#allocation57_spill] sm:$0xff] %v7292_v16  ;;  %v8147_v21 = vsel %vm7298_vm12, 4294967295, %v8146_v21  ;;  %v7309_v7 = vpop.f32.mrf.mxu0  ;;  %v7372_v16 = vadd.s32 160, %v6933_v27  ;;  %vm7461_vm14 = vmand %vm4445_vm6, %vm4421_vm3  ;;  %v3085_v45 = vadd.f32 %v7096_v46, %v6915_v3  ;;  %v8209_v34 = vsel %vm7072_vm4, %v7065_v53, %v7028_v42 }
 0x1ca   : > { %8148 = vst [vmem:[#allocation58_spill] sm:$0xff] %v8147_v21  ;;  %8150 = vst [vmem:[#allocation60_spill] sm:$0xff] %v7309_v7  ;;  %v4236_v7 = vshrl.u32 %v7184_v13, 4  ;;  %v7331_v18 = vpop.f32.mrf.mxu1  ;;  %v4336_v13 = vmul.u32 24, %v4335_v54  ;;  %v4369_v54 = vmul.u32 24, %v4368_v25  ;;  %v7394_v21 = vadd.s32 184, %v6933_v27 }
 0x1cb   : > { %v7343_v63 = vpop.f32.mrf.mxu0  ;;  %8154 = vst [vmem:[#allocation62_spill] sm:$0xff] %v7372_v16  ;;  %8157 = vst [vmem:[#allocation65_spill] sm:$0xff] %v7387_v5  ;;  %v4258_v25 = vshrl.u32 %v7307_v50, 4  ;;  %v7416_v50 = vsub.s32 %v7153_v17, %v4215_v12  ;;  %v7435_v12 = vadd.s32 168, %v6933_v27  ;;  %v7453_v27 = vsub.s32 %v7187_v48, %v4281_v20 }
 0x1cc   : > { %v7351_v56 = vpop.f32.mrf.mxu1  ;;  %v4237_v43 = vmul.u32 24, %v4236_v7  ;;  %v7384_v36 = vsub.s32 %v7125_v31, %v4336_v13  ;;  %v4270_v7 = vmul.u32 24, %v4269_v0  ;;  %8158 = vst [vmem:[#allocation66_spill] sm:$0xff] %v7394_v21  ;;  %v7413_v4 = vsub.s32 %v7150_v44, %v4369_v54 }
 0x1cd   : > { %v7368_v22 = vpop.f32.mrf.mxu0  ;;  %v7403_v0 = vmul.u32.u64.low 2863311531, %v7372_v16  ;;  %v7404_v13 = vmul.u32.u64.high 2863311531, %v7372_v16, %v7403_v0  ;;  %v7431_v44 = vmul.u32.u64.low 2863311531, %v7387_v5  ;;  %v7432_v54 = vmul.u32.u64.high 2863311531, %v7387_v5, %v7431_v44  ;;  %8162 = vst [vmem:[#allocation70_spill] sm:$0xff] %v7435_v12 }
 0x1ce   : > { %v7375_v33 = vpop.f32.mrf.mxu1  ;;  %8156 = vst [vmem:[#allocation64_spill] sm:$0xff] %v7384_v36  ;;  %v7400_v31 = vsub.s32 %v7143_v11, %v4237_v43  ;;  %v7423_v43 = vsub.s32 %v7162_v49, %v4270_v7  ;;  %v4259_v17 = vmul.u32 24, %v4258_v25  ;;  %v8164_v49 = vmov 0 }
 0x1cf   : > { %v7381_v29 = vpop.f32.mrf.mxu0  ;;  %8161 = vst [vmem:[#allocation69_spill] sm:$0xff] %v7432_v54  ;;  %v8165_v49 = vsel %vm7443_vm10, 4294967295, %v8164_v49  ;;  %v7448_v58 = vadd.s32 24, %v7384_v36  ;;  %v4347_v44 = vmul.u32 24, %v4346_v24  ;;  %vm8172_vm9 = vcmp.ne.s32.totalorder %v7384_v36, 0 }
 0x1d0   : > { %v7389_v23 = vpop.f32.mrf.mxu1  ;;  %8166 = vst [vmem:[#allocation72_spill] sm:$0xff] %v8165_v49  ;;  %v7466_v25 = vadd.s32 24, %v7400_v31  ;;  %vm8173_vm8 = vcmp.lt.s32.totalorder %v7384_v36, 0  ;;  %v8174_v20 = vmov 0  ;;  %v7481_v5 = vadd.s32 24, %v7416_v50 }
 0x1d1   : > { %v7397_v10 = vpop.f32.mrf.mxu0  ;;  %8167 = vst [vmem:[#allocation73_spill] sm:$0xff] %v7448_v58  ;;  %vm7476_vm0 = vmand %vm8173_vm8, %vm8172_vm9  ;;  %vm4427_vm3 = vcmp.ne.s32.totalorder %v7423_v43, 0  ;;  %vm8178_vm15 = vcmp.ne.s32.totalorder %v7400_v31, 0  ;;  %vm8179_vm12 = vcmp.lt.s32.totalorder %v7400_v31, 0  ;;  %vm4449_vm8 = vcmp.lt.s32.totalorder %v7426_v62, 0 }
 0x1d2   : > { %v7406_v40 = vpop.f32.mrf.mxu1  ;;  %v8175_v20 = vsel %vm7476_vm0, 4294967295, %v8174_v20  ;;  %vm7492_vm2 = vmand %vm8179_vm12, %vm8178_vm15  ;;  %vm8184_vm9 = vcmp.ne.s32.totalorder %v7416_v50, 0  ;;  %vm8185_vm7 = vcmp.lt.s32.totalorder %v7416_v50, 0  ;;  %v7515_v1 = vadd.s32 24, %v7423_v43 }
 0x1d3   : > { %8159 = vst [vmem:[#allocation67_spill] sm:$0xff] %v7406_v40  ;;  %v7418_v11 = vpop.f32.mrf.mxu0  ;;  %8176 = vst [vmem:[#allocation76_spill] sm:$0xff] %v8175_v20  ;;  %vm4428_vm12 = vcmp.ne.s32.totalorder %v7453_v27, 0  ;;  %vm4452_vm15 = vcmp.lt.s32.totalorder %v7453_v27, 0  ;;  %v7555_v7 = vsub.s32 %v7175_v39, %v4347_v44  ;;  %v7566_v36 = vadd.s32 24, %v7453_v27 }
 0x1d4   : > { %v7428_v0 = vpop.f32.mrf.mxu1  ;;  %vm7510_vm6 = vmand %vm8185_vm7, %vm8184_vm9  ;;  %vm8189_vm7 = vcmp.lt.s32.totalorder %v7423_v43, 0  ;;  %v7603_v49 = vmul.u32.u64.low 2863311531, %v7394_v21  ;;  %v7604_v54 = vmul.u32.u64.high 2863311531, %v7394_v21, %v7603_v49  ;;  %v3082_v20 = vadd.f32 %v7062_v60, %v6909_v57  ;;  %v8218_v60 = vld [vmem:[#allocation36_spill] sm:$0xff] }
 0x1d5   : > { %8160 = vst [vmem:[#allocation68_spill] sm:$0xff] %v7428_v0  ;;  %v7437_v16 = vpop.f32.mrf.mxu0  ;;  %v7498_v0 = vsub.s32 %v7238_v19, %v4259_v17  ;;  %v4379_v19 = vshrl.u32 %v7404_v13, 4  ;;  %vm7538_vm9 = vmand %vm8189_vm7, %vm4427_vm3  ;;  %v7543_v17 = vadd.s32 24, %v7426_v62  ;;  %v3080_v49 = vadd.f32 %v7079_v28, %v6912_v61  ;;  %v8220_v28 = vld [vmem:[#allocation39_spill] sm:$0xff]  ;;  %v8225_v21 = vld [vmem:[#allocation44_spill] sm:$0xff] }
 0x1d6   : > { %8163 = vst [vmem:[#allocation71_spill] sm:$0xff] %v7437_v16  ;;  %v7455_v37 = vpop.f32.mrf.mxu1  ;;  %8194 = vst [vmem:[#allocation83_spill] sm:$0xff] %v7555_v7  ;;  %v8212_v57 = vsel %vm7280_vm11, %v7270_v47, %v7130_v38  ;;  %v3083_v53 = vadd.f32 %v8218_v60, %v8217_v41  ;;  %v3086_v46 = vadd.f32 %v8220_v28, %v8219_v52  ;;  %v8221_v38 = vld [vmem:[#allocation10_spill] sm:$0xff]  ;;  %v8222_v47 = vld [vmem:[#allocation41_spill] sm:$0xff] }
 0x1d7   : > { %8168 = vst [vmem:[#allocation74_spill] sm:$0xff] %v7455_v37  ;;  %v7470_v48 = vpop.f32.mrf.mxu0  ;;  %8182 = vst [vmem:[#allocation78_spill] sm:$0xff] %v7498_v0  ;;  %vm4426_vm7 = vcmp.ne.s32.totalorder %v7498_v0, 0  ;;  %v7600_v15 = vmul.u32 24, %v4379_v19  ;;  %v7618_v19 = vadd.s32 24, %v7498_v0  ;;  %v8228_v7 = vld [vmem:[#allocation15_spill] sm:$0xff]  ;;  %v8231_v28 = vsel %vm7246_vm5, %v7140_v14, %v7083_v8 }
 0x1d8   : > { %8171 = vst [vmem:[#allocation75_spill] sm:$0xff] %v7470_v48  ;;  %v7486_v24 = vpop.f32.mrf.mxu1  ;;  %v7501_v40 = vmul.u32.u64.low 2863311531, %v7435_v12  ;;  %v7502_v48 = vmul.u32.u64.high 2863311531, %v7435_v12, %v7501_v40  ;;  %v4517_v12 = vsel %vm7461_vm14, %v7410_v32, %v7366_v6  ;;  %v7552_v32 = vadd.s32 24, %v7413_v4  ;;  %8205 = vst [vmem:[#allocation86_spill] sm:$0xff] %v7604_v54  ;;  %v8226_v54 = vld [vmem:[#allocation12_spill] sm:$0xff] }
 0x1d9   : > { %8177 = vst [vmem:[#allocation77_spill] sm:$0xff] %v7486_v24  ;;  %v7504_v16 = vpop.f32.mrf.mxu0  ;;  %vm8195_vm14 = vcmp.ne.s32.totalorder %v7426_v62, 0  ;;  %v8201_v6 = vsel %vm7213_vm1, %v7111_v9, %v7068_v2  ;;  %8204 = vst [vmem:[#allocation85_spill] sm:$0xff] %v7600_v15  ;;  %v3079_v2 = vadd.f32 %v7052_v35, %v6906_v51  ;;  %vm7633_vm1 = vcmp.lt.s32.totalorder %v8209_v34, 16  ;;  %v8230_v41 = vld [vmem:[#allocation17_spill] sm:$0xff]  ;;  %v8238_v8 = vld [vmem:[#allocation32_spill] sm:$0xff] }
 0x1da   : > { %8183 = vst [vmem:[#allocation79_spill] sm:$0xff] %v7502_v48  ;;  %v7520_v40 = vpop.f32.mrf.mxu1  ;;  %8193 = vst [vmem:[#allocation82_spill] sm:$0xff] %v7552_v32  ;;  %vm7592_vm0 = vcmp.lt.s32.totalorder %v8201_v6, 16  ;;  %v3084_v34 = vadd.f32 %v8222_v47, %v8221_v38  ;;  %v8224_v6 = vld [vmem:[#allocation11_spill] sm:$0xff]  ;;  %v3094_v60 = vadd.f32 %v7368_v22, %v8230_v41  ;;  %vm7680_vm11 = vcmp.lt.s32.totalorder %v8231_v28, 16  ;;  %v8235_v47 = vld [vmem:[#allocation29_spill] sm:$0xff] }
 0x1db   : > { %8188 = vst [vmem:[#allocation80_spill] sm:$0xff] %v7520_v40  ;;  %v7545_v26 = vpop.f32.mrf.mxu0  ;;  %vm7561_vm3 = vmand %vm4449_vm8, %vm8195_vm14  ;;  %vm4450_vm14 = vcmp.lt.s32.totalorder %v7498_v0, 0  ;;  %v3089_v15 = vadd.f32 %v8225_v21, %v8224_v6  ;;  %v8234_v21 = vld [vmem:[#allocation27_spill] sm:$0xff]  ;;  %v8237_v22 = vld [vmem:[#allocation30_spill] sm:$0xff]  ;;  %v3546_v14 = vadd.f32 %v8238_v8, %v3080_v49  ;;  %vm7699_vm5 = vcmp.lt.s32.totalorder %v4517_v12, 16 }
 0x1dc   : > { %8192 = vst [vmem:[#allocation81_spill] sm:$0xff] %v7545_v26  ;;  %v7568_v58 = vpop.f32.mrf.mxu1  ;;  %vm7579_vm8 = vmand %vm4452_vm15, %vm4428_vm12  ;;  %vm7642_vm12 = vcmp.lt.s32.totalorder %v8212_v57, 16  ;;  %v3547_v6 = vadd.f32 %v8234_v21, %v3081_v55  ;;  %v3548_v41 = vadd.f32 %v8237_v22, %v3082_v20  ;;  %v8239_v28 = vld [vmem:[#allocation34_spill] sm:$0xff]  ;;  %v7706_v0 = vadd.f32 %v8245_v59, %v3084_v34  ;;  %v8247_v8 = vld [vmem:[#allocation49_spill] sm:$0xff] }
 0x1dd   : > { %8198 = vst [vmem:[#allocation84_spill] sm:$0xff] %v7568_v58  ;;  %v7585_v32 = vpop.f32.mrf.mxu0  ;;  %8207 = vst [vmem:[#allocation88_spill] sm:$0xff] %v7618_v19  ;;  %v8227_v58 = vld [vmem:[#allocation48_spill] sm:$0xff]  ;;  %v7695_v3 = vadd.f32 %v8239_v28, %v3085_v45  ;;  %v8240_v48 = vld [vmem:[#allocation18_spill] sm:$0xff]  ;;  %v3560_v12 = vadd.f32 %v7375_v33, %v3094_v60  ;;  %v8259_v30 = vsel %vm7510_vm6, %v7481_v5, %v7416_v50 }
 0x1de   : > { %v7611_v9 = vpop.f32.mrf.mxu1  ;;  %vm7654_vm4 = vmand %vm4450_vm14, %vm4426_vm7  ;;  %v3092_v55 = vadd.f32 %v7381_v29, %v8240_v48  ;;  %v8246_v22 = vld [vmem:[#allocation46_spill] sm:$0xff]  ;;  %v8248_v19 = vld [vmem:[#allocation13_spill] sm:$0xff]  ;;  %v8264_v35 = vsel %vm7492_vm2, %v7466_v25, %v7400_v31  ;;  %vm4460_vm7 = vcmp.lt.s32.totalorder %v7413_v4, 0 }
 0x1df   : > { %8206 = vst [vmem:[#allocation87_spill] sm:$0xff] %v7611_v9  ;;  %v7626_v51 = vpop.f32.mrf.mxu0  ;;  %v8229_v9 = vld [vmem:[#allocation60_spill] sm:$0xff]  ;;  %v7709_v45 = vadd.f32 %v8246_v22, %v3089_v15  ;;  %v8267_v61 = vld [vmem:[#allocation14_spill] sm:$0xff] }
 0x1e0   : > { %8208 = vst [vmem:[#allocation89_spill] sm:$0xff] %v7626_v51  ;;  %v7664_v57 = vpop.f32.mrf.mxu1  ;;  %v3087_v51 = vadd.f32 %v8227_v58, %v8226_v54  ;;  %v3093_v26 = vadd.f32 %v8229_v9, %v8228_v7  ;;  %v3545_v54 = vadd.f32 %v8235_v47, %v3079_v2  ;;  %v8236_v58 = vld [vmem:[#allocation16_spill] sm:$0xff]  ;;  %v3558_v15 = vadd.f32 %v7389_v23, %v3092_v55  ;;  %v8252_v23 = vld [vmem:[#allocation59_spill] sm:$0xff]  ;;  %v8274_v38 = vld [vmem:[#allocation74_spill] sm:$0xff] }
 0x1e1   : > { %8223 = vst [vmem:[#allocation8_spill] sm:$0xff] %v7664_v57  ;;  %v5858_v52 = vpop.f32.mrf.mxu0  ;;  %v3091_v7 = vadd.f32 %v7343_v63, %v8236_v58  ;;  %v8243_v63 = vld [vmem:[#allocation38_spill] sm:$0xff]  ;;  %v8244_v58 = vld [vmem:[#allocation40_spill] sm:$0xff]  ;;  %v8258_v55 = vld [vmem:[#allocation71_spill] sm:$0xff] }
 0x1e2   : > { %v5870_v9 = vpop.f32.mrf.mxu1  ;;  %v3549_v47 = vadd.f32 %v8243_v63, %v3083_v53  ;;  %v3552_v57 = vadd.f32 %v8244_v58, %v3086_v46  ;;  %v7712_v28 = vadd.f32 %v8247_v8, %v3087_v51  ;;  %v3559_v29 = vadd.f32 %v7331_v18, %v3093_v26  ;;  %v8249_v53 = vld [vmem:[#allocation51_spill] sm:$0xff]  ;;  %v8251_v26 = vld [vmem:[#allocation20_spill] sm:$0xff] }
 0x1e3   : > { %v3817_v2 = vpop.f32.mrf.mxu0  ;;  %v7718_v63 = vadd.f32 %v8249_v53, %v8248_v19  ;;  %v3557_v46 = vadd.f32 %v7351_v56, %v3091_v7  ;;  %v3938_v34 = vadd.f32 %v5858_v52, %v3547_v6  ;;  %v3095_v19 = vadd.f32 %v7418_v11, %v8251_v26 }
 0x1e4   : > { %v3936_v20 = vadd.f32 %v3817_v2, %v3545_v54  ;;  %v3865_v49 = vpop.f32.mrf.mxu1  ;;  %v8250_v2 = vld [vmem:[#allocation19_spill] sm:$0xff]  ;;  %v7724_v58 = vadd.f32 %v5870_v9, %v3559_v29  ;;  %v8287_v9 = vld [vmem:[#allocation24_spill] sm:$0xff] }
 0x1e5   : > { %v5859_v48 = vpop.f32.mrf.mxu0  ;;  %v3097_v51 = vadd.f32 %v7397_v10, %v8250_v2  ;;  %v8253_v10 = vld [vmem:[#allocation45_spill] sm:$0xff]  ;;  %v7743_v11 = vadd.f32 %v3865_v49, %v3557_v46  ;;  %v4611_v49 = vsel %vm7633_vm1, %v3938_v34, 0.0 }
 0x1e6   : > { %v3939_v54 = vadd.f32 %v5859_v48, %v3548_v41  ;;  %v5871_v59 = vpop.f32.mrf.mxu1  ;;  %v4609_v56 = vsel %vm7592_vm0, %v3936_v20, 0.0  ;;  %v8254_v7 = vsel %vm7323_vm13, %v8252_v23, %v8253_v10  ;;  %v8257_v41 = vld [vmem:[#allocation21_spill] sm:$0xff]  ;;  %vm7754_vm0 = vcmp.lt.s32.totalorder %v8259_v30, 16  ;;  %v8263_v48 = vld [vmem:[#allocation75_spill] sm:$0xff]  ;;  %v8270_v10 = vld [vmem:[#allocation68_spill] sm:$0xff] }
 0x1e7   : > { %v7726_v18 = vadd.f32 %v5871_v59, %v3560_v12  ;;  %v3820_v33 = vpop.f32.mrf.mxu0  ;;  %vm7737_vm15 = vcmp.lt.s32.totalorder %v8254_v7, 16  ;;  %v3098_v22 = vadd.f32 %v8258_v55, %v8257_v41  ;;  %v8262_v12 = vld [vmem:[#allocation22_spill] sm:$0xff]  ;;  %vm7773_vm13 = vcmp.lt.s32.totalorder %v8264_v35, 16 }
 0x1e8   : > { %v5277_v60 = vpack.c.bf16 %v3939_v54, %v3938_v34  ;;  %v3937_v52 = vadd.f32 %v3820_v33, %v3546_v14  ;;  %v3868_v6 = vpop.f32.mrf.mxu1  ;;  %v3096_v53 = vadd.f32 %v8263_v48, %v8262_v12  ;;  %v8268_v34 = vld [vmem:[#allocation55_spill] sm:$0xff]  ;;  %v3561_v37 = vadd.f32 %v8270_v10, %v3095_v19  ;;  %v8275_v12 = vld [vmem:[#allocation77_spill] sm:$0xff] }
 0x1e9   : > { %v5307_v39 = vpack.c.bf16 %v7726_v18, %v7724_v58  ;;  %v7747_v14 = vadd.f32 %v3868_v6, %v3558_v15  ;;  %v5862_v8 = vpop.f32.mrf.mxu0  ;;  %v4662_v15 = vmul.f32 %v4609_v56, %v4609_v56  ;;  %v3088_v26 = vadd.f32 %v8268_v34, %v8267_v61  ;;  %v8281_v61 = vld [vmem:[#allocation52_spill] sm:$0xff] }
 0x1ea   : > { %5329 = vst [vmem:[%s6283_s7 + $0x8] sm:$0xff] %v5277_v60   ;;  %v5272_v46 = vpack.c.bf16 %v3937_v52, %v3936_v20  ;;  %v4610_v59 = vsel %vm7642_vm12, %v3937_v52, 0.0  ;;  %v5874_v24 = vpop.f32.mrf.mxu1  ;;  %v8269_v60 = vld [vmem:[#allocation67_spill] sm:$0xff]  ;;  %v4664_v7 = vmul.f32 %v4611_v49, %v4611_v49  ;;  %v8271_v55 = vsel %vm7561_vm3, %v7543_v17, %v7426_v62 }
 0x1eb   : > { %5335 = vst [vmem:[%s6283_s7 + $0x38] sm:$0xff] %v5307_v39   ;;  %v4633_v5 = vadd.f32 %v4610_v59, %v4609_v56  ;;  %v4663_v50 = vmul.f32 %v4610_v59, %v4610_v59  ;;  %v5302_v2 = vpack.c.bf16 %v7747_v14, %v7743_v11  ;;  %v3833_v33 = vpop.f32.mrf.mxu0  ;;  %v3563_v52 = vadd.f32 %v8269_v60, %v3097_v51  ;;  %v8276_v17 = vld [vmem:[#allocation23_spill] sm:$0xff]  ;;  %v8314_v51 = vld [vmem:[#allocation88_spill] sm:$0xff] }
 0x1ec   : > { %v4612_v56 = vsel %vm7680_vm11, %v3939_v54, 0.0  ;;  %5273 = vst [vmem:[%s6283_s7] sm:$0xff] %v5272_v46   ;;  %v3940_v6 = vadd.f32 %v3833_v33, %v3549_v47  ;;  %v3881_v23 = vpop.f32.mrf.mxu1  ;;  %vm7790_vm2 = vcmp.lt.s32.totalorder %v8271_v55, 16  ;;  %v3564_v54 = vadd.f32 %v8274_v38, %v3098_v22  ;;  %v8290_v55 = vld [vmem:[#allocation50_spill] sm:$0xff]  ;;  %v8292_v38 = vld [vmem:[#allocation37_spill] sm:$0xff] }
 0x1ed   : > { %v4634_v41 = vadd.f32 %v4633_v5, %v4611_v49  ;;  %v4686_v31 = vadd.f32 %v4663_v50, %v4662_v15  ;;  %5334 = vst [vmem:[%s6283_s7 + $0x30] sm:$0xff] %v5302_v2   ;;  %v5863_v25 = vpop.f32.mrf.mxu0  ;;  %v3942_v47 = vadd.f32 %v5862_v8, %v7695_v3  ;;  %v3562_v48 = vadd.f32 %v8275_v12, %v3096_v53  ;;  %v8280_v8 = vld [vmem:[#allocation25_spill] sm:$0xff] }
 0x1ee   : > { %v4613_v19 = vsel %vm7699_vm5, %v3940_v6, 0.0  ;;  %v3943_v39 = vadd.f32 %v5863_v25, %v3552_v57  ;;  %v5875_v30 = vpop.f32.mrf.mxu1  ;;  %v4665_v49 = vmul.f32 %v4612_v56, %v4612_v56  ;;  %v3101_v59 = vadd.f32 %v7504_v16, %v8276_v17 }
 0x1ef   : > { %v4687_v13 = vadd.f32 %v4686_v31, %v4664_v7  ;;  %v4635_v46 = vadd.f32 %v4634_v41, %v4612_v56  ;;  %v3836_v62 = vpop.f32.mrf.mxu0  ;;  %v7801_v15 = vadd.f32 %v5874_v24, %v3563_v52  ;;  %v7803_v5 = vadd.f32 %v5875_v30, %v3564_v54  ;;  %v8289_v31 = vld [vmem:[#allocation87_spill] sm:$0xff] }
 0x1f0   : > { %v5287_v22 = vpack.c.bf16 %v3943_v39, %v3942_v47  ;;  %v3884_v3 = vpop.f32.mrf.mxu1  ;;  %v8277_v57 = vsel %vm7538_vm9, %v7515_v1, %v7423_v43  ;;  %v3102_v53 = vadd.f32 %v7585_v32, %v8280_v8  ;;  %v4666_v16 = vmul.f32 %v4613_v19, %v4613_v19  ;;  %v8282_v32 = vld [vmem:[#allocation57_spill] sm:$0xff]  ;;  %v8293_v54 = vld [vmem:[#allocation31_spill] sm:$0xff] }
 0x1f1   : > { %vm7810_vm6 = vcmp.lt.s32.totalorder %v8277_v57, 16  ;;  %v4636_v50 = vadd.f32 %v4635_v46, %v4613_v19  ;;  %v4688_v24 = vadd.f32 %v4687_v13, %v4665_v49  ;;  %v5866_v2 = vpop.f32.mrf.mxu0  ;;  %v7816_v33 = vadd.f32 %v3881_v23, %v3561_v37  ;;  %v8286_v37 = vld [vmem:[#allocation80_spill] sm:$0xff]  ;;  %v8297_v30 = vld [vmem:[#allocation83_spill] sm:$0xff]  ;;  %v8299_v49 = vld [vmem:[#allocation89_spill] sm:$0xff] }
 0x1f2   : > { %5331 = vst [vmem:[%s6283_s7 + $0x18] sm:$0xff] %v5287_v22   ;;  %v5317_v40 = vpack.c.bf16 %v7803_v5, %v7801_v15  ;;  %v3941_v1 = vadd.f32 %v3836_v62, %v7706_v0  ;;  %v7822_v43 = vadd.f32 %v3884_v3, %v3562_v48  ;;  %v5878_v35 = vpop.f32.mrf.mxu1  ;;  %v3556_v34 = vadd.f32 %v8281_v61, %v7718_v63  ;;  %v8298_v48 = vld [vmem:[#allocation26_spill] sm:$0xff]  ;;  %v8302_v3 = vld [vmem:[#allocation56_spill] sm:$0xff]  ;;  %v8303_v57 = vld [vmem:[#allocation43_spill] sm:$0xff] }
 0x1f3   : > { %v3554_v60 = vadd.f32 %v8282_v32, %v3088_v26  ;;  %v4615_v52 = vsel %vm7737_vm15, %v3942_v47, 0.0  ;;  %v4689_v56 = vadd.f32 %v4688_v24, %v4666_v16  ;;  %v3849_v23 = vpop.f32.mrf.mxu0  ;;  %v8283_v10 = vsel %vm7579_vm8, %v7566_v36, %v7453_v27  ;;  %v8288_v26 = vld [vmem:[#allocation81_spill] sm:$0xff]  ;;  %v8300_v22 = vld [vmem:[#allocation58_spill] sm:$0xff]  ;;  %v8307_v32 = vld [vmem:[#allocation47_spill] sm:$0xff] }
 0x1f4   : > { %vm7834_vm9 = vcmp.lt.s32.totalorder %v8283_v10, 16  ;;  %v3567_v7 = vadd.f32 %v8286_v37, %v3101_v59  ;;  %5337 = vst [vmem:[%s6283_s7 + $0x48] sm:$0xff] %v5317_v40   ;;  %vm4436_vm3 = vcmp.ne.s32.totalorder %v7413_v4, 0  ;;  %v5282_v63 = vpack.c.bf16 %v3941_v1, %v3940_v6  ;;  %v3897_v27 = vpop.f32.mrf.mxu1  ;;  %v8310_v10 = vld [vmem:[#allocation28_spill] sm:$0xff] }
 0x1f5   : > { %v4614_v44 = vsel %vm7754_vm0, %v3941_v1, 0.0  ;;  %v5312_v36 = vpack.c.bf16 %v7822_v43, %v7816_v33  ;;  %v3099_v41 = vadd.f32 %v8288_v26, %v8287_v9  ;;  %v3568_v25 = vadd.f32 %v8289_v31, %v3102_v53  ;;  %v5867_v12 = vpop.f32.mrf.mxu0 }
 0x1f6   : > { %vm8291_vm8 = vnez %v8290_v55  ;;  %v4637_v29 = vadd.f32 %v4636_v50, %v4614_v44  ;;  %v4667_v6 = vmul.f32 %v4614_v44, %v4614_v44  ;;  %vm4434_vm1 = vcmp.ne.s32.totalorder %v8297_v30, 0  ;;  %5330 = vst [vmem:[%s6283_s7 + $0x10] sm:$0xff] %v5282_v63   ;;  %v5879_v59 = vpop.f32.mrf.mxu1  ;;  %v8318_v44 = vld [vmem:[#allocation8_spill] sm:$0xff] }
 0x1f7   : > { %v8294_v47 = vsel %vm8291_vm8, %v8292_v38, %v8293_v54  ;;  %v3100_v13 = vadd.f32 %v8299_v49, %v8298_v48  ;;  %v4668_v46 = vmul.f32 %v4615_v52, %v4615_v52  ;;  %v4616_v62 = vsel %vm7773_vm13, %v3943_v39, 0.0  ;;  %5336 = vst [vmem:[%s6283_s7 + $0x40] sm:$0xff] %v5312_v36   ;;  %v3852_v39 = vpop.f32.mrf.mxu0  ;;  %v8319_v48 = vld [vmem:[#allocation86_spill] sm:$0xff]  ;;  %vm7921_vm13 = vmand %vm4460_vm7, %vm4436_vm3 }
 0x1f8   : > { %vm7854_vm14 = vcmp.lt.s32.totalorder %v8294_v47, 16  ;;  %v3944_v17 = vadd.f32 %v3849_v23, %v7712_v28  ;;  %vm8301_vm12 = vnez %v8300_v22  ;;  %v4638_v50 = vadd.f32 %v4637_v29, %v4615_v52  ;;  %v8309_v23 = vld [vmem:[#allocation33_spill] sm:$0xff] }
 0x1f9   : > { %v8304_v8 = vsel %vm8301_vm12, %v8302_v3, %v8303_v57  ;;  %v4690_v16 = vadd.f32 %v4689_v56, %v4667_v6  ;;  %v3946_v24 = vadd.f32 %v5866_v2, %v7709_v45  ;;  %v3947_v20 = vadd.f32 %v5867_v12, %v3556_v34  ;;  %v8315_v34 = vld [vmem:[#allocation78_spill] sm:$0xff] }
 0x1fa   : > { %vm7871_vm11 = vcmp.lt.s32.totalorder %v8304_v8, 16  ;;  %v7876_v40 = vadd.f32 %v5878_v35, %v3567_v7  ;;  %v4617_v28 = vsel %vm7790_vm2, %v3944_v17, 0.0  ;;  %v7880_v1 = vadd.f32 %v5879_v59, %v3568_v25  ;;  %v8317_v7 = vld [vmem:[#allocation84_spill] sm:$0xff]  ;;  %v8324_v8 = vld [vmem:[#allocation53_spill] sm:$0xff] }
 0x1fb   : > { %v3945_v61 = vadd.f32 %v3852_v39, %v3554_v60  ;;  %vm8308_vm5 = vnez %v8307_v32  ;;  %v4669_v45 = vmul.f32 %v4616_v62, %v4616_v62  ;;  %v4691_v2 = vadd.f32 %v4690_v16, %v4668_v46  ;;  %v3900_v60 = vpop.f32.mrf.mxu1  ;;  %v8327_v16 = vld [vmem:[#allocation35_spill] sm:$0xff]  ;;  %v8336_v32 = vld [vmem:[#allocation62_spill] sm:$0xff] }
 0x1fc   : > { %v8311_v37 = vsel %vm8308_vm5, %v8309_v23, %v8310_v10  ;;  %v4639_v35 = vadd.f32 %v4638_v50, %v4616_v62  ;;  %v8316_v56 = vsel %vm7654_vm4, %v8314_v51, %v8315_v34  ;;  %v3565_v63 = vadd.f32 %v8317_v7, %v3099_v41  ;;  %v8326_v50 = vld [vmem:[#allocation54_spill] sm:$0xff]  ;;  %v8343_v51 = vld [vmem:[#allocation76_spill] sm:$0xff]  ;;  %v8345_v34 = vld [vmem:[#allocation73_spill] sm:$0xff] }
 0x1fd   : > { %vm7887_vm15 = vcmp.lt.s32.totalorder %v8311_v37, 16  ;;  %vm4546_vm0 = vcmp.lt.s32.totalorder %v8316_v56, 16  ;;  %v3566_v36 = vadd.f32 %v8318_v44, %v3100_v13  ;;  %v5297_v9 = vpack.c.bf16 %v3947_v20, %v3946_v24  ;;  %v8320_v13 = vld [vmem:[#allocation79_spill] sm:$0xff]  ;;  %v8346_v56 = vld [vmem:[#allocation64_spill] sm:$0xff] }
 0x1fe   : > { %v5327_v26 = vpack.c.bf16 %v7880_v1, %v7876_v40  ;;  %v4619_v31 = vsel %vm7810_vm6, %v3946_v24, 0.0  ;;  %v4640_v25 = vadd.f32 %v4639_v35, %v4617_v28  ;;  %v4670_v55 = vmul.f32 %v4617_v28, %v4617_v28  ;;  %v8333_v28 = vld [vmem:[#allocation69_spill] sm:$0xff]  ;;  %v8338_v37 = vld [vmem:[#allocation63_spill] sm:$0xff] }
 0x1ff   : > { %v4692_v42 = vadd.f32 %v4691_v2, %v4669_v45  ;;  %v7902_v38 = vadd.f32 %v3897_v27, %v3565_v63  ;;  %5333 = vst [vmem:[%s6283_s7 + $0x28] sm:$0xff] %v5297_v9   ;;  %v5292_v54 = vpack.c.bf16 %v3945_v61, %v3944_v17  ;;  %v4618_v47 = vsel %vm4546_vm0, %v3945_v61, 0.0  ;;  %v8335_v61 = vld [vmem:[#allocation85_spill] sm:$0xff] }
 0x200   : > { %5339 = vst [vmem:[%s6283_s7 + $0x58] sm:$0xff] %v5327_v26   ;;  %v7906_v41 = vadd.f32 %v3900_v60, %v3566_v36  ;;  %vm4458_vm4 = vcmp.lt.s32.totalorder %v8297_v30, 0  ;;  %v4641_v6 = vadd.f32 %v4640_v25, %v4618_v47  ;;  %v4671_v12 = vmul.f32 %v4618_v47, %v4618_v47  ;;  %v8339_v45 = vld [vmem:[#allocation61_spill] sm:$0xff]  ;;  %v8350_v26 = vld [vmem:[#allocation82_spill] sm:$0xff] }
 0x201   : > { %v4693_v29 = vadd.f32 %v4692_v42, %v4670_v55  ;;  %v4620_v21 = vsel %vm7834_vm9, %v3947_v20, 0.0  ;;  %v4412_v49 = vshrl.u32 %v8319_v48, 4  ;;  %5332 = vst [vmem:[%s6283_s7 + $0x20] sm:$0xff] %v5292_v54   ;;  %v8321_v46 = vshrl.u32 %v8320_v13, 4  ;;  %vm7942_vm9 = vmand %vm4458_vm4, %vm4434_vm1  ;;  %v8351_v55 = vld [vmem:[#allocation70_spill] sm:$0xff] }
 0x202   : > { %v5322_v27 = vpack.c.bf16 %v7906_v41, %v7902_v38  ;;  %v4506_v0 = vadd.s32 24, %v8297_v30  ;;  %v4672_v59 = vmul.f32 %v4619_v31, %v4619_v31  ;;  %v4642_v22 = vadd.f32 %v4641_v6, %v4619_v31  ;;  %v8353_v13 = vld [vmem:[#allocation66_spill] sm:$0xff] }
 0x203   : > { %v4391_v62 = vmul.u32 24, %v8321_v46  ;;  %v4694_v3 = vadd.f32 %v4693_v29, %v4671_v12  ;;  %v4621_v57 = vsel %vm7854_vm14, %v7743_v11, 0.0  ;;  %vm8325_vm2 = vnez %v8324_v8 }
 0x204   : > { %v8328_v24 = vsel %vm8325_vm2, %v8326_v50, %v8327_v16  ;;  %v8334_v19 = vshrl.u32 %v8333_v28, 4  ;;  %v4381_v23 = vsub.s32 %v8336_v32, %v8335_v61  ;;  %5338 = vst [vmem:[%s6283_s7 + $0x50] sm:$0xff] %v5322_v27   ;;  %v8340_v2 = vsel %vm7443_vm10, %v8338_v37, %v8339_v45 }
 0x205   : > { %vm7934_vm6 = vcmp.lt.s32.totalorder %v8328_v24, 16  ;;  %vm7956_vm3 = vcmp.lt.s32.totalorder %v8340_v2, 16  ;;  %vm8344_vm7 = vnez %v8343_v51  ;;  %v4673_v63 = vmul.f32 %v4620_v21, %v4620_v21 }
 0x206   : > { %v4402_v11 = vmul.u32 24, %v8334_v19  ;;  %v8347_v60 = vsel %vm8344_vm7, %v8345_v34, %v8346_v56  ;;  %v4643_v44 = vadd.f32 %v4642_v22, %v4620_v21  ;;  %v4695_v36 = vadd.f32 %v4694_v3, %v4672_v59 }
 0x207   : > { %vm7965_vm8 = vcmp.lt.s32.totalorder %v8347_v60, 16  ;;  %v4622_v9 = vsel %vm7871_vm11, %v7747_v14, 0.0  ;;  %v4532_v31 = vsel %vm7921_vm13, %v8350_v26, %v7413_v4  ;;  %v4413_v25 = vmul.u32 24, %v4412_v49  ;;  %v8352_v14 = vld [vmem:[#allocation65_spill] sm:$0xff] }
 0x208   : > { %v4392_v42 = vsub.s32 %v8351_v55, %v4391_v62  ;;  %v4674_v54 = vmul.f32 %v4621_v57, %v4621_v57  ;;  %v4530_v47 = vsel %vm7942_vm9, %v4506_v0, %v8297_v30  ;;  %v4644_v29 = vadd.f32 %v4643_v44, %v4621_v57 }
 0x209   : > { %v4696_v6 = vadd.f32 %v4695_v36, %v4673_v63  ;;  %v4623_v53 = vsel %vm7887_vm15, %v7724_v58, 0.0  ;;  %v4403_v12 = vsub.s32 %v8352_v14, %v4402_v11  ;;  %vm4437_vm10 = vcmp.ne.s32.totalorder %v4381_v23, 0 }
 0x20a   : > { %vm4461_vm14 = vcmp.lt.s32.totalorder %v4381_v23, 0  ;;  %v4675_v21 = vmul.f32 %v4622_v9, %v4622_v9  ;;  %v4509_v4 = vadd.s32 24, %v4381_v23  ;;  %v4645_v48 = vadd.f32 %v4644_v29, %v4622_v9 }
 0x20b   : > { %v4697_v49 = vadd.f32 %v4696_v6, %v4674_v54  ;;  %v4624_v27 = vsel %vm7934_vm6, %v7726_v18, 0.0  ;;  %v4414_v30 = vsub.s32 %v8353_v13, %v4413_v25  ;;  %vm4438_vm1 = vcmp.ne.s32.totalorder %v4392_v42, 0  ;;  %vm7988_vm5 = vmand %vm4461_vm14, %vm4437_vm10 }
 0x20c   : > { %vm4462_vm12 = vcmp.lt.s32.totalorder %v4392_v42, 0  ;;  %v4676_v46 = vmul.f32 %v4623_v53, %v4623_v53  ;;  %vm4554_vm11 = vcmp.lt.s32.totalorder %v4530_v47, 16  ;;  %v4646_v52 = vadd.f32 %v4645_v48, %v4623_v53 }
 0x20d   : > { %v4698_v62 = vadd.f32 %v4697_v49, %v4675_v21  ;;  %v4625_v17 = vsel %vm7965_vm8, %v7816_v33, 0.0  ;;  %vm4439_vm15 = vcmp.ne.s32.totalorder %v4403_v12, 0  ;;  %vm4463_vm0 = vcmp.lt.s32.totalorder %v4403_v12, 0  ;;  %vm7995_vm4 = vmand %vm4462_vm12, %vm4438_vm1 }
 0x20e   : > { %v4510_v0 = vadd.s32 24, %v4392_v42  ;;  %v4677_v18 = vmul.f32 %v4624_v27, %v4624_v27  ;;  %v4511_v59 = vadd.s32 24, %v4403_v12  ;;  %v4647_v57 = vadd.f32 %v4646_v52, %v4624_v27  ;;  %vm8002_vm9 = vmand %vm4463_vm0, %vm4439_vm15 }
 0x20f   : > { %v4699_v22 = vadd.f32 %v4698_v62, %v4676_v46  ;;  %v4626_v8 = vsel %vm4554_vm11, %v7822_v43, 0.0  ;;  %v4533_v50 = vsel %vm7988_vm5, %v4509_v4, %v4381_v23  ;;  %vm4440_vm13 = vcmp.ne.s32.totalorder %v4414_v30, 0 }
 0x210   : > { %vm4464_vm2 = vcmp.lt.s32.totalorder %v4414_v30, 0  ;;  %v4678_v16 = vmul.f32 %v4625_v17, %v4625_v17  ;;  %vm4556_vm6 = vcmp.lt.s32.totalorder %v4532_v31, 16  ;;  %v4648_v24 = vadd.f32 %v4647_v57, %v4625_v17 }
 0x211   : > { %v4700_v20 = vadd.f32 %v4699_v22, %v4677_v18  ;;  %v4627_v39 = vsel %vm7956_vm3, %v7801_v15, 0.0  ;;  %v4512_v28 = vadd.s32 24, %v4414_v30  ;;  %v4534_v43 = vsel %vm7995_vm4, %v4510_v0, %v4392_v42  ;;  %vm8011_vm8 = vmand %vm4464_vm2, %vm4440_vm13 }
 0x212   : > { %v4679_v19 = vmul.f32 %v4626_v8, %v4626_v8  ;;  %vm4557_vm7 = vcmp.lt.s32.totalorder %v4533_v50, 16  ;;  %v4649_v61 = vadd.f32 %v4648_v24, %v4626_v8  ;;  %v4628_v23 = vsel %vm4556_vm6, %v7803_v5, 0.0 }
 0x213   : > { %v4701_v32 = vadd.f32 %v4700_v20, %v4678_v16  ;;  %v4535_v10 = vsel %vm8002_vm9, %v4511_v59, %v4403_v12  ;;  %v4680_v37 = vmul.f32 %v4627_v39, %v4627_v39  ;;  %vm4558_vm10 = vcmp.lt.s32.totalorder %v4534_v43, 16 }
 0x214   : > { %v4650_v15 = vadd.f32 %v4649_v61, %v4627_v39  ;;  %v4629_v2 = vsel %vm4557_vm7, %v7902_v38, 0.0  ;;  %v4536_v35 = vsel %vm8011_vm8, %v4512_v28, %v4414_v30  ;;  %v4681_v51 = vmul.f32 %v4628_v23, %v4628_v23 }
 0x215   : > { %v4702_v45 = vadd.f32 %v4701_v32, %v4679_v19  ;;  %vm4559_vm3 = vcmp.lt.s32.totalorder %v4535_v10, 16  ;;  %v4630_v60 = vsel %vm4558_vm10, %v7906_v41, 0.0  ;;  %v4682_v7 = vmul.f32 %v4629_v2, %v4629_v2 }
 0x216   : > { %v4651_v34 = vadd.f32 %v4650_v15, %v4628_v23  ;;  %vm4560_vm14 = vcmp.lt.s32.totalorder %v4536_v35, 16  ;;  %v4631_v44 = vsel %vm4559_vm3, %v7876_v40, 0.0  ;;  %v4683_v9 = vmul.f32 %v4630_v60, %v4630_v60 }
 0x217   : > { %v4703_v56 = vadd.f32 %v4702_v45, %v4680_v37  ;;  %v4632_v38 = vsel %vm4560_vm14, %v7880_v1, 0.0  ;;  %v4684_v31 = vmul.f32 %v4631_v44, %v4631_v44 }
 0x218   : > { %v4652_v5 = vadd.f32 %v4651_v34, %v4629_v2  ;;  %v4685_v42 = vmul.f32 %v4632_v38, %v4632_v38 }
 0x219   : > { %v4704_v63 = vadd.f32 %v4703_v56, %v4681_v51 }
 0x21a   : > { %v4653_v36 = vadd.f32 %v4652_v5, %v4630_v60 }
 0x21b   : > { %v4705_v26 = vadd.f32 %v4704_v63, %v4682_v7 }
 0x21c   : > { %v4654_v25 = vadd.f32 %v4653_v36, %v4631_v44 }
 0x21d   : > { %v4706_v55 = vadd.f32 %v4705_v26, %v4683_v9 }
 0x21e   : > { %v4655_v54 = vadd.f32 %v4654_v25, %v4632_v38 }
 0x21f   : > { %v4707_v47 = vadd.f32 %v4706_v55, %v4684_v31 }
 0x220   : > { %v4656_v29 = vrot.slane %v4655_v54, 4 }
 0x221   : > { %v4708_v6 = vadd.f32 %v4707_v47, %v4685_v42 }
 0x222   : > { %v4657_v41 = vadd.f32 %v4656_v29, %v4655_v54 }
 0x223   : > { %v4709_v53 = vrot.slane %v4708_v6, 4 }
 0x224   : > { %v4658_v14 = vrot.slane %v4657_v41, 2 }
 0x225   : > { %v4710_v12 = vadd.f32 %v4709_v53, %v4708_v6 }
 0x226   : > { %v4659_v21 = vadd.f32 %v4658_v14, %v4657_v41 }
 0x227   : > { %v4711_v4 = vrot.slane %v4710_v12, 2 }
 0x228   : > { %v4660_v40 = vrot.slane %v4659_v21, 1 }
 0x229   : > { %v4712_v48 = vadd.f32 %v4711_v4, %v4710_v12  ;;  %4717 = sbr.rel (%p4890_p9) target bundleno = 560 (0x230), region = 110 }
 0x22a   : > { %v4661_v49 = vadd.f32 %v4660_v40, %v4659_v21 }
 0x22b   : > { %v4713_v27 = vrot.slane %v4712_v48, 1 }
 0x22d   : > { %v4714_v13 = vadd.f32 %v4713_v27, %v4712_v48 }
 0x22e   : > { %v6214_v1 = vmov 0.0  }
 0x22f   : > { %4718 = vst [vmem:[%s6278_s27] sm:$0x3] %v6214_v1 }
 0x230 PF: > { %vm4720_vm1 = vcmask 1040384  }
 0x231   : > { %v4721_v46 = vsel %vm4720_vm1, %v4661_v49, %v4714_v13 }
 0x236   : > { %v4719_v30 = vld [vmem:[%s6278_s27] sm:$0x3] }
 0x237   : > { %v4722_v58 = vadd.f32 %v4721_v46, %v4719_v30 }
 0x239   : > { %4723 = vst [vmem:[%s6278_s27] sm:$0x3] %v4722_v58 }
 0x23a PF: > { %s14_s16 = sadd.s32 1, %s6212_s16   ;;  %s8362_s12 = smov %s6204_s14 }
 0x23b   : > { %p11_p11 = scmp.ge.s32.totalorder %s14_s16, 6   ;;  %s8363_s13 = smov %s6208_s15 }
 0x23c   : > { %s8364_s14 = smov %s8367_s17  ;;  %s8365_s15 = smov %s8371_s18 }
 0x23d   :  { %13 = sbr.rel (!%p11_p11) target bundleno = 3 (0x3), region = 192 }
 0x242   :  { %4768 = vsyncmov [#allocation3] }
 0x245   :  { %s4769_s27 = vpop.sfrf %4768 }
 0x246   :  { %p5240_p12 = scmp.ne.s32.totalorder %s4769_s27, 0 }
 0x248   :  { %4773 = shalt.err (%p5240_p12)  }
 0x249   :  { %4775 = vsyncmov [#allocation3 + $0x1] }
 0x24c   :  { %s4776_s7 = vpop.sfrf %4775 }
 0x24d   :  { %p5241_p13 = scmp.ne.s32.totalorder %s4776_s7, 0 }
 0x24f   :  { %4780 = shalt.err (%p5241_p13)  }

</bundles_post_ra>
